<compile_context>
chip_gen: v7x
topology: tpu7x:2x2x1
jax: 0.10.0
libtpu: 0.0.40
codegen_flags: <defaults>
</compile_context>

<pallas_src>
import functools

import jax
import jax.numpy as jnp
from jax.experimental import pallas as pl
from jax.experimental.pallas import tpu as pltpu

LN_EPS = 1e-5                          # nn.LayerNorm default eps
_SQRT_2_OVER_PI = 0.7978845608028654
_VMEM_LIMIT = 48 * 1024 * 1024         # per perf review; < v7x 64 MiB physical


# --------------------------------------------------------------------- helpers
def _pick_tile(n, cap=256):
    """Largest multiple-of-8 divisor of n that is <= cap (falls back to full n)."""
    t = min(cap, n)
    t -= t % 8
    while t >= 8:
        if n % t == 0:
            return t
        t -= 8
    return n


def _cparams(dims):
    return pltpu.CompilerParams(dimension_semantics=dims,
                                vmem_limit_bytes=_VMEM_LIMIT)


def _layernorm_f32(x, gamma, beta):
    mu = jnp.mean(x, axis=-1, keepdims=True)
    xc = x - mu
    var = jnp.mean(xc * xc, axis=-1, keepdims=True)
    return xc * jax.lax.rsqrt(var + LN_EPS) * gamma + beta


def _gelu(x):
    # tanh approximation (EUP tanh); reference uses exact erf GELU (diff < ~1e-3).
    # TODO(synk): switch to erf-based GELU if exact parity with F.gelu is required.
    return 0.5 * x * (1.0 + jnp.tanh(_SQRT_2_OVER_PI * (x + 0.044715 * x * x * x)))


# --------------------------------------------------------------------- kernels
def _ln_qkv_kernel(x_ref, g_ref, b_ref, w_ref, q_ref, k_ref, v_ref, *, inner):
    """LayerNorm1 + fused QKV projection (one MXU matmul, concat weight)."""
    x = x_ref[...].astype(jnp.float32)                               # (TR, D)
    y = _layernorm_f32(x, g_ref[...], b_ref[...]).astype(jnp.bfloat16)
    qkv = jnp.dot(y, w_ref[...], preferred_element_type=jnp.float32)  # (TR, 3*inner)
    q_ref[...] = qkv[:, :inner].astype(q_ref.dtype)
    k_ref[...] = qkv[:, inner:2 * inner].astype(k_ref.dtype)
    v_ref[...] = qkv[:, 2 * inner:].astype(v_ref.dtype)


def _kv_proj_kernel(c_ref, w_ref, k_ref, v_ref, *, inner):
    """Fused K|V projection of the raw (un-normed) context."""
    c = c_ref[...].astype(jnp.bfloat16)
    kv = jnp.dot(c, w_ref[...], preferred_element_type=jnp.float32)   # (TR, 2*inner)
    k_ref[...] = kv[:, :inner].astype(k_ref.dtype)
    v_ref[...] = kv[:, inner:].astype(v_ref.dtype)


def _flash_attn_kernel(q_ref, k_ref, v_ref, o_ref, m_sc, l_sc, acc_sc, *, heads, dh):
    """Flash attention over packed (rows, heads*dh) Q/K/V; all heads per grid step.

    grid = (batch, nq//tq, nkv//tk); online softmax with lane-replicated m/l stats.
    The 1/sqrt(dh) scale is folded into Wq in prepare_params.
    """
    ki = pl.program_id(2)

    @pl.when(ki == 0)
    def _():
        m_sc[...] = jnp.full(m_sc.shape, -jnp.inf, m_sc.dtype)
        l_sc[...] = jnp.zeros(l_sc.shape, l_sc.dtype)
        acc_sc[...] = jnp.zeros(acc_sc.shape, acc_sc.dtype)

    q = q_ref[...]                          # (TQ, heads*dh) bf16
    k = k_ref[...]                          # (TK, heads*dh) bf16
    v = v_ref[...]

    for h in range(heads):                  # static unroll; heads is small
        lo, hi = h * dh, (h + 1) * dh
        # Q.K^T contracting over the head dim -> no in-kernel transpose.
        s = jax.lax.dot_general(q[:, lo:hi], k[:, lo:hi],
                                (((1,), (1,)), ((), ())),
                                preferred_element_type=jnp.float32)   # (TQ, TK)
        m_prev = m_sc[h]                                              # (TQ, 128)
        m_next = jnp.maximum(m_prev, jnp.max(s, axis=-1, keepdims=True))
        alpha = jnp.exp(m_prev - m_next)                              # (TQ, 128)
        p = jnp.exp(s - m_next[:, :1])                                # (TQ, TK)
        l_sc[h] = alpha * l_sc[h] + jnp.sum(p, axis=-1, keepdims=True)
        m_sc[h] = m_next
        acc_sc[:, lo:hi] = (alpha[:, :1] * acc_sc[:, lo:hi] +
                            jnp.dot(p.astype(v.dtype), v[:, lo:hi],
                                    preferred_element_type=jnp.float32))

    @pl.when(ki == pl.num_programs(2) - 1)
    def _():
        for h in range(heads):
            lo, hi = h * dh, (h + 1) * dh
            inv = pl.reciprocal(l_sc[h][:, :1], approx=True)
            o_ref[:, lo:hi] = (acc_sc[:, lo:hi] * inv).astype(o_ref.dtype)


def _out_res_ln_q_kernel(a_ref, wo_ref, bo_ref, r_ref, g_ref, b_ref, wq_ref,
                         x_ref, q_ref):
    """attn1 out-projection + residual, then LayerNorm2 + Q2 projection (fused)."""
    h = jnp.dot(a_ref[...], wo_ref[...], preferred_element_type=jnp.float32)
    x = h + bo_ref[...] + r_ref[...].astype(jnp.float32)
    x_ref[...] = x.astype(x_ref.dtype)
    y = _layernorm_f32(x, g_ref[...], b_ref[...]).astype(jnp.bfloat16)
    q_ref[...] = jnp.dot(y, wq_ref[...],
                         preferred_element_type=jnp.float32).astype(q_ref.dtype)


def _out_res_ln_ff_kernel(a_ref, wo_ref, bo_ref, r_ref, g_ref, b_ref,
                          wa_ref, ba_ref, wg_ref, bg_ref, wf_ref, bff_ref,
                          o_ref, acc_ref, y_ref):
    """attn2 out-projection + residual + LayerNorm3 + GEGLU FF + residual.

    grid = (rows//TR, F//TF); the FF hidden axis is the reduction axis.
    LN(x) is computed once per row tile (fj==0) and cached in y_ref.
    """
    fj = pl.program_id(1)

    @pl.when(fj == 0)
    def _():
        h = jnp.dot(a_ref[...], wo_ref[...], preferred_element_type=jnp.float32)
        x = h + bo_ref[...] + r_ref[...].astype(jnp.float32)
        y_ref[...] = _layernorm_f32(x, g_ref[...], b_ref[...]).astype(jnp.bfloat16)
        acc_ref[...] = x + bff_ref[...]       # residual + FF output bias (added once)

    y = y_ref[...]                            # cached LN(x), bf16
    a = jnp.dot(y, wa_ref[...], preferred_element_type=jnp.float32) + ba_ref[...]
    gate = jnp.dot(y, wg_ref[...], preferred_element_type=jnp.float32) + bg_ref[...]
    u = (a * _gelu(gate)).astype(jnp.bfloat16)                        # (TR, TF)
    acc_ref[...] += jnp.dot(u, wf_ref[...], preferred_element_type=jnp.float32)

    @pl.when(fj == pl.num_programs(1) - 1)
    def _():
        o_ref[...] = acc_ref[...].astype(o_ref.dtype)


# --------------------------------------------------------------- pallas wrappers
def _ln_qkv(x2, gamma, beta, wqkvT):
    rows, d = x2.shape
    inner = wqkvT.shape[1] // 3
    tr = _pick_tile(rows)
    row = lambda c: pl.BlockSpec((tr, c), lambda i: (i, 0))
    const = lambda s: pl.BlockSpec(s, lambda i: (0, 0))
    return pl.pallas_call(
        functools.partial(_ln_qkv_kernel, inner=inner),
        out_shape=tuple(jax.ShapeDtypeStruct((rows, inner), jnp.bfloat16)
                        for _ in range(3)),
        grid_spec=pltpu.PrefetchScalarGridSpec(
            num_scalar_prefetch=0, grid=(rows // tr,),
            in_specs=[row(d), const((1, d)), const((1, d)),
                      const((d, 3 * inner))],
            out_specs=(row(inner), row(inner), row(inner))),
        compiler_params=_cparams(("parallel",)),
    )(x2, gamma, beta, wqkvT)


def _kv_proj(c2, wkvT):
    rows, dc = c2.shape
    inner = wkvT.shape[1] // 2
    tr = _pick_tile(rows)
    row = lambda c: pl.BlockSpec((tr, c), lambda i: (i, 0))
    const = lambda s: pl.BlockSpec(s, lambda i: (0, 0))
    return pl.pallas_call(
        functools.partial(_kv_proj_kernel, inner=inner),
        out_shape=tuple(jax.ShapeDtypeStruct((rows, inner), jnp.bfloat16)
                        for _ in range(2)),
        grid_spec=pltpu.PrefetchScalarGridSpec(
            num_scalar_prefetch=0, grid=(rows // tr,),
            in_specs=[row(dc), const((dc, 2 * inner))],
            out_specs=(row(inner), row(inner))),
        compiler_params=_cparams(("parallel",)),
    )(c2, wkvT)


def _flash_attention(q, k, v, batch, nq, nkv, heads):
    inner = q.shape[1]
    dh = inner // heads
    tq = _pick_tile(nq, cap=512)
    tk = _pick_tile(nkv, cap=512)
    nqb = nq // tq
    nkb = nkv // tk
    return pl.pallas_call(
        functools.partial(_flash_attn_kernel, heads=heads, dh=dh),
        out_shape=jax.ShapeDtypeStruct((batch * nq, inner), jnp.bfloat16),
        grid_spec=pltpu.PrefetchScalarGridSpec(
            num_scalar_prefetch=0, grid=(batch, nqb, nkb),
            in_specs=[pl.BlockSpec((tq, inner), lambda b, qi, ki: (b * nqb + qi, 0)),
                      pl.BlockSpec((tk, inner), lambda b, qi, ki: (b * nkb + ki, 0)),
                      pl.BlockSpec((tk, inner), lambda b, qi, ki: (b * nkb + ki, 0))],
            out_specs=pl.BlockSpec((tq, inner), lambda b, qi, ki: (b * nqb + qi, 0)),
            scratch_shapes=[pltpu.VMEM((heads, tq, 128), jnp.float32),   # m
                            pltpu.VMEM((heads, tq, 128), jnp.float32),   # l
                            pltpu.VMEM((tq, inner), jnp.float32)]),      # acc
        compiler_params=_cparams(("parallel", "parallel", "arbitrary")),
    )(q, k, v)


def _out_res_ln_q(attn, woT, bo, resid, gamma, beta, wqT):
    rows, inner = attn.shape
    d = woT.shape[1]
    tr = _pick_tile(rows)
    row = lambda c: pl.BlockSpec((tr, c), lambda i: (i, 0))
    const = lambda s: pl.BlockSpec(s, lambda i: (0, 0))
    return pl.pallas_call(
        _out_res_ln_q_kernel,
        out_shape=(jax.ShapeDtypeStruct((rows, d), jnp.float32),
                   jax.ShapeDtypeStruct((rows, inner), jnp.bfloat16)),
        grid_spec=pltpu.PrefetchScalarGridSpec(
            num_scalar_prefetch=0, grid=(rows // tr,),
            in_specs=[row(inner), const((inner, d)), const((1, d)), row(d),
                      const((1, d)), const((1, d)), const((d, inner))],
            out_specs=(row(d), row(inner))),
        compiler_params=_cparams(("parallel",)),
    )(attn, woT, bo, resid, gamma, beta, wqT)


def _out_res_ln_ff(attn, woT, bo, resid, gamma, beta, waT, ba, wgT, bg, wfT, bff):
    rows, inner = attn.shape
    d = woT.shape[1]
    f = waT.shape[1]
    tr = _pick_tile(rows)
    tf = _pick_tile(f, cap=512)
    row = lambda c: pl.BlockSpec((tr, c), lambda i, j: (i, 0))
    const = lambda s: pl.BlockSpec(s, lambda i, j: (0, 0))
    return pl.pallas_call(
        _out_res_ln_ff_kernel,
        out_shape=jax.ShapeDtypeStruct((rows, d), jnp.float32),
        grid_spec=pltpu.PrefetchScalarGridSpec(
            num_scalar_prefetch=0, grid=(rows // tr, f // tf),
            in_specs=[row(inner), const((inner, d)), const((1, d)), row(d),
                      const((1, d)), const((1, d)),
                      pl.BlockSpec((d, tf), lambda i, j: (0, j)),
                      pl.BlockSpec((1, tf), lambda i, j: (0, j)),
                      pl.BlockSpec((d, tf), lambda i, j: (0, j)),
                      pl.BlockSpec((1, tf), lambda i, j: (0, j)),
                      pl.BlockSpec((tf, d), lambda i, j: (j, 0)),
                      const((1, d))],
            out_specs=row(d),
            scratch_shapes=[pltpu.VMEM((tr, d), jnp.float32),     # accumulator
                            pltpu.VMEM((tr, d), jnp.bfloat16)]),  # cached LN(x)
        compiler_params=_cparams(("parallel", "arbitrary")),
        input_output_aliases={3: 0},   # residual (rows, d) f32 reuses output buffer
    )(attn, woT, bo, resid, gamma, beta, waT, ba, wgT, bg, wfT, bff)


# ----------------------------------------------------------------- weight prep
def prepare_params(params, heads):
    """One-time weight prep: transpose, fold 1/sqrt(dh) into Wq, bf16 cast,
    QKV/KV weight concatenation.  Hoisted out of the jitted forward so no
    per-call transpose/convert ops remain in the graph."""
    d = params["g1"].shape[0]
    inner = params["wq1"].shape[0]
    dh = inner // heads
    scale = float(dh) ** -0.5
    f = params["w_ff2"].shape[1]
    bft, f32 = jnp.bfloat16, jnp.float32
    return {
        "g1": params["g1"].reshape(1, d).astype(f32),
        "b1": params["b1"].reshape(1, d).astype(f32),
        "g2": params["g2"].reshape(1, d).astype(f32),
        "b2": params["b2"].reshape(1, d).astype(f32),
        "g3": params["g3"].reshape(1, d).astype(f32),
        "b3": params["b3"].reshape(1, d).astype(f32),
        "wqkv1T": jnp.concatenate([params["wq1"].T * scale, params["wk1"].T,
                                   params["wv1"].T], axis=1).astype(bft),
        "wo1T": params["wo1"].T.astype(bft),
        "bo1": params["bo1"].reshape(1, d).astype(f32),
        "wq2T": (params["wq2"].T * scale).astype(bft),
        "wkv2T": jnp.concatenate([params["wk2"].T, params["wv2"].T],
                                 axis=1).astype(bft),
        "wo2T": params["wo2"].T.astype(bft),
        "bo2": params["bo2"].reshape(1, d).astype(f32),
        "waT": params["w_ff1"][:f].T.astype(bft),
        "ba": params["b_ff1"][:f].reshape(1, f).astype(f32),
        "wgT": params["w_ff1"][f:].T.astype(bft),
        "bg": params["b_ff1"][f:].reshape(1, f).astype(f32),
        "wfT": params["w_ff2"].T.astype(bft),
        "bff": params["b_ff2"].reshape(1, d).astype(f32),
    }


# ------------------------------------------------------------- full block forward
def _basic_transformer_block(x, context, prep, heads):
    b, n, d = x.shape
    _, m, dc = context.shape

    xr = x.reshape(b * n, d).astype(jnp.float32)
    cr = context.reshape(b * m, dc)

    # attn1: self-attention on LayerNorm1(x); packed-head layout throughout.
    q1, k1, v1 = _ln_qkv(xr, prep["g1"], prep["b1"], prep["wqkv1T"])
    a1 = _flash_attention(q1, k1, v1, b, n, n, heads)
    # out-proj1 + residual, fused with LayerNorm2 + Q2 projection.
    x1, q2 = _out_res_ln_q(a1, prep["wo1T"], prep["bo1"], xr,
                           prep["g2"], prep["b2"], prep["wq2T"])

    # attn2: cross-attention, K/V from the raw context.
    k2, v2 = _kv_proj(cr, prep["wkv2T"])
    a2 = _flash_attention(q2, k2, v2, b, n, m, heads)
    # out-proj2 + residual + LayerNorm3 + GEGLU feed-forward + residual (one kernel).
    out = _out_res_ln_ff(a2, prep["wo2T"], prep["bo2"], x1,
                         prep["g3"], prep["b3"],
                         prep["waT"], prep["ba"], prep["wgT"], prep["bg"],
                         prep["wfT"], prep["bff"])
    return out.reshape(b, n, d)


basic_transformer_block = jax.jit(_basic_transformer_block, static_argnames=("heads",))


# --------------------------------------------------------------- pure-JAX reference
def _reference(x, context, params, heads):
    def ln(t, g, b):
        mu = jnp.mean(t, axis=-1, keepdims=True)
        var = jnp.mean((t - mu) ** 2, axis=-1, keepdims=True)
        return (t - mu) / jnp.sqrt(var + LN_EPS) * g + b

    def attention(xq, ctx, wq, wk, wv, wo, bo):
        q = xq @ wq.T
        k = ctx @ wk.T
        v = ctx @ wv.T
        bb, nn, ii = q.shape
        mm = k.shape[1]
        dh = ii // heads
        qh = q.reshape(bb, nn, heads, dh).transpose(0, 2, 1, 3)
        kh = k.reshape(bb, mm, heads, dh).transpose(0, 2, 1, 3)
        vh = v.reshape(bb, mm, heads, dh).transpose(0, 2, 1, 3)
        s = jnp.einsum("bhnd,bhmd->bhnm", qh, kh) * (float(dh) ** -0.5)
        p = jax.nn.softmax(s, axis=-1)
        o = jnp.einsum("bhnm,bhmd->bhnd", p, vh)
        o = o.transpose(0, 2, 1, 3).reshape(bb, nn, ii)
        return o @ wo.T + bo

    h = x
    hn = ln(h, params["g1"], params["b1"])
    h = h + attention(hn, hn, params["wq1"], params["wk1"], params["wv1"],
                      params["wo1"], params["bo1"])
    hn = ln(h, params["g2"], params["b2"])
    h = h + attention(hn, context, params["wq2"], params["wk2"], params["wv2"],
                      params["wo2"], params["bo2"])
    hn = ln(h, params["g3"], params["b3"])
    f = params["w_ff2"].shape[1]
    proj = hn @ params["w_ff1"].T + params["b_ff1"]
    a, gate = proj[..., :f], proj[..., f:]
    u = a * jax.nn.gelu(gate, approximate=False)
    h = h + u @ params["w_ff2"].T + params["b_ff2"]
    return h


if __name__ == "__main__":
    B, N, D = 2, 16, 32          # batch, tokens, model dim
    H, DH = 4, 8                 # heads, dim_head  -> inner_dim = 32
    M, DC = 8, 64                # context tokens, context dim
    INNER = H * DH
    F = 4 * D                    # feed-forward hidden dim (GEGLU)

    keys = iter(jax.random.split(jax.random.PRNGKey(0), 24))

    def rnd(shape, scl=1.0):
        return scl * jax.random.normal(next(keys), shape, dtype=jnp.float32)

    x = rnd((B, N, D))
    context = rnd((B, M, DC))

    params = {
        # norm1 / attn1 (self-attention)
        "g1": 1.0 + 0.1 * rnd((D,)), "b1": 0.1 * rnd((D,)),
        "wq1": rnd((INNER, D), D ** -0.5),
        "wk1": rnd((INNER, D), D ** -0.5),
        "wv1": rnd((INNER, D), D ** -0.5),
        "wo1": rnd((D, INNER), INNER ** -0.5), "bo1": 0.05 * rnd((D,)),
        # norm2 / attn2 (cross-attention)
        "g2": 1.0 + 0.1 * rnd((D,)), "b2": 0.1 * rnd((D,)),
        "wq2": rnd((INNER, D), D ** -0.5),
        "wk2": rnd((INNER, DC), DC ** -0.5),
        "wv2": rnd((INNER, DC), DC ** -0.5),
        "wo2": rnd((D, INNER), INNER ** -0.5), "bo2": 0.05 * rnd((D,)),
        # norm3 / GEGLU feed-forward
        "g3": 1.0 + 0.1 * rnd((D,)), "b3": 0.1 * rnd((D,)),
        "w_ff1": rnd((2 * F, D), D ** -0.5), "b_ff1": 0.05 * rnd((2 * F,)),
        "w_ff2": rnd((D, F), F ** -0.5), "b_ff2": 0.05 * rnd((D,)),
    }

    prep = jax.block_until_ready(prepare_params(params, heads=H))   # one-time prep

    out = jax.block_until_ready(basic_transformer_block(x, context, prep, heads=H))
    ref = jax.block_until_ready(_reference(x, context, params, heads=H))

    assert out.shape == (B, N, D)
    assert bool(jnp.all(jnp.isfinite(out)))
    max_err = float(jnp.max(jnp.abs(out - ref)))
    # bf16 MXU operands + tanh GELU -> looser tolerance than pure-f32.
    assert bool(jnp.allclose(out, ref, atol=5e-2, rtol=5e-2)), max_err

    print("KERNEL_OK")
</pallas_src>

<mosaic_0001>
module attributes {stable_mosaic.version = 11 : i64} {
  func.func @_ln_qkv_kernel(%arg0: i32, %arg1: memref<32x32xf32, #tpu.memory_space<vmem>>, %arg2: memref<1x32xf32, #tpu.memory_space<vmem>>, %arg3: memref<1x32xf32, #tpu.memory_space<vmem>>, %arg4: memref<32x96xbf16, #tpu.memory_space<vmem>>, %arg5: memref<32x32xbf16, #tpu.memory_space<vmem>>, %arg6: memref<32x32xbf16, #tpu.memory_space<vmem>>, %arg7: memref<32x32xbf16, #tpu.memory_space<vmem>>) attributes {dimension_semantics = [#tpu.dimension_semantics<parallel>], iteration_bounds = array<i64: 1>, scalar_prefetch = 0 : i64, scratch_operands = 0 : i64, tpu.core_type = #tpu.core_type<tc>, window_params = [{transform_indices = @transform_0, window_bounds = array<i64: 32, 32>}, {pipeline_mode = #tpu.pipeline_mode<synchronous>, transform_indices = @transform_1, window_bounds = array<i64: 1, 32>}, {pipeline_mode = #tpu.pipeline_mode<synchronous>, transform_indices = @transform_2, window_bounds = array<i64: 1, 32>}, {pipeline_mode = #tpu.pipeline_mode<synchronous>, transform_indices = @transform_3, window_bounds = array<i64: 32, 96>}, {transform_indices = @transform_4, window_bounds = array<i64: 32, 32>}, {transform_indices = @transform_5, window_bounds = array<i64: 32, 32>}, {transform_indices = @transform_6, window_bounds = array<i64: 32, 32>}]} {
    %c0 = arith.constant 0 : index
    %c0_0 = arith.constant 0 : index
    %0 = vector.load %arg1[%c0, %c0_0] : memref<32x32xf32, #tpu.memory_space<vmem>>, vector<32x32xf32>
    %c0_1 = arith.constant 0 : index
    %c0_2 = arith.constant 0 : index
    %1 = vector.load %arg2[%c0_1, %c0_2] : memref<1x32xf32, #tpu.memory_space<vmem>>, vector<1x32xf32>
    %c0_3 = arith.constant 0 : index
    %c0_4 = arith.constant 0 : index
    %2 = vector.load %arg3[%c0_3, %c0_4] : memref<1x32xf32, #tpu.memory_space<vmem>>, vector<1x32xf32>
    %cst = arith.constant dense<0.000000e+00> : vector<32xf32>
    %3 = vector.multi_reduction <add>, %0, %cst [1] : vector<32x32xf32> to vector<32xf32>
    %4 = vector.shape_cast %3 : vector<32xf32> to vector<32x1xf32>
    %cst_5 = arith.constant 3.200000e+01 : f32
    %5 = vector.broadcast %cst_5 : f32 to vector<32x1xf32>
    %6 = arith.divf %4, %5 : vector<32x1xf32>
    %7 = vector.broadcast %6 : vector<32x1xf32> to vector<32x32xf32>
    %8 = arith.subf %0, %7 : vector<32x32xf32>
    %9 = arith.mulf %8, %8 : vector<32x32xf32>
    %cst_6 = arith.constant dense<0.000000e+00> : vector<32xf32>
    %10 = vector.multi_reduction <add>, %9, %cst_6 [1] : vector<32x32xf32> to vector<32xf32>
    %11 = vector.shape_cast %10 : vector<32xf32> to vector<32x1xf32>
    %cst_7 = arith.constant 3.200000e+01 : f32
    %12 = vector.broadcast %cst_7 : f32 to vector<32x1xf32>
    %13 = arith.divf %11, %12 : vector<32x1xf32>
    %cst_8 = arith.constant 9.99999974E-6 : f32
    %14 = vector.broadcast %cst_8 : f32 to vector<32x1xf32>
    %15 = arith.addf %13, %14 : vector<32x1xf32>
    %16 = math.rsqrt %15 : vector<32x1xf32>
    %17 = vector.broadcast %16 : vector<32x1xf32> to vector<32x32xf32>
    %18 = arith.mulf %8, %17 : vector<32x32xf32>
    %19 = vector.broadcast %1 : vector<1x32xf32> to vector<32x32xf32>
    %20 = arith.mulf %18, %19 : vector<32x32xf32>
    %21 = vector.broadcast %2 : vector<1x32xf32> to vector<32x32xf32>
    %22 = arith.addf %20, %21 : vector<32x32xf32>
    %23 = arith.truncf %22 : vector<32x32xf32> to vector<32x32xbf16>
    %c0_9 = arith.constant 0 : index
    %c0_10 = arith.constant 0 : index
    %24 = vector.load %arg4[%c0_9, %c0_10] : memref<32x96xbf16, #tpu.memory_space<vmem>>, vector<32x96xbf16>
    %cst_11 = arith.constant dense<0.000000e+00> : vector<32x96xf32>
    %25 = tpu.matmul %23, %24, %cst_11 {dimension_numbers = #tpu.dot_dimension_numbers<[1], [0], [0], [1], [0, 0, 1, 1], [], []>} : vector<32x32xbf16>, vector<32x96xbf16>, vector<32x96xf32> -> vector<32x96xf32>
    %26 = vector.extract_strided_slice %25 {offsets = [0, 0], sizes = [32, 32], strides = [1, 1]} : vector<32x96xf32> to vector<32x32xf32>
    %27 = arith.truncf %26 : vector<32x32xf32> to vector<32x32xbf16>
    %c0_12 = arith.constant 0 : index
    %c0_13 = arith.constant 0 : index
    %28 = vector.load %arg5[%c0_12, %c0_13] : memref<32x32xbf16, #tpu.memory_space<vmem>>, vector<32x32xbf16>
    tpu.vector_store %arg5[%c0_12, %c0_13], %27 {strides = array<i32>} : memref<32x32xbf16, #tpu.memory_space<vmem>>, vector<32x32xbf16>,
    %29 = vector.extract_strided_slice %25 {offsets = [0, 32], sizes = [32, 32], strides = [1, 1]} : vector<32x96xf32> to vector<32x32xf32>
    %30 = arith.truncf %29 : vector<32x32xf32> to vector<32x32xbf16>
    %c0_14 = arith.constant 0 : index
    %c0_15 = arith.constant 0 : index
    %31 = vector.load %arg6[%c0_14, %c0_15] : memref<32x32xbf16, #tpu.memory_space<vmem>>, vector<32x32xbf16>
    tpu.vector_store %arg6[%c0_14, %c0_15], %30 {strides = array<i32>} : memref<32x32xbf16, #tpu.memory_space<vmem>>, vector<32x32xbf16>,
    %32 = vector.extract_strided_slice %25 {offsets = [0, 64], sizes = [32, 32], strides = [1, 1]} : vector<32x96xf32> to vector<32x32xf32>
    %33 = arith.truncf %32 : vector<32x32xf32> to vector<32x32xbf16>
    %c0_16 = arith.constant 0 : index
    %c0_17 = arith.constant 0 : index
    %34 = vector.load %arg7[%c0_16, %c0_17] : memref<32x32xbf16, #tpu.memory_space<vmem>>, vector<32x32xbf16>
    tpu.vector_store %arg7[%c0_16, %c0_17], %33 {strides = array<i32>} : memref<32x32xbf16, #tpu.memory_space<vmem>>, vector<32x32xbf16>,
    return
  }
  func.func @transform_0(%arg0: i32) -> (i32, i32) {
    %c0_i32 = arith.constant 0 : i32
    %c0_i32_0 = arith.constant 0 : i32
    return %arg0, %c0_i32 : i32, i32
  }
  func.func @transform_1(%arg0: i32) -> (i32, i32) {
    %c0_i32 = arith.constant 0 : i32
    %c0_i32_0 = arith.constant 0 : i32
    %c0_i32_1 = arith.constant 0 : i32
    return %c0_i32, %c0_i32_0 : i32, i32
  }
  func.func @transform_2(%arg0: i32) -> (i32, i32) {
    %c0_i32 = arith.constant 0 : i32
    %c0_i32_0 = arith.constant 0 : i32
    %c0_i32_1 = arith.constant 0 : i32
    return %c0_i32, %c0_i32_0 : i32, i32
  }
  func.func @transform_3(%arg0: i32) -> (i32, i32) {
    %c0_i32 = arith.constant 0 : i32
    %c0_i32_0 = arith.constant 0 : i32
    %c0_i32_1 = arith.constant 0 : i32
    return %c0_i32, %c0_i32_0 : i32, i32
  }
  func.func @transform_4(%arg0: i32) -> (i32, i32) {
    %c0_i32 = arith.constant 0 : i32
    %c0_i32_0 = arith.constant 0 : i32
    return %arg0, %c0_i32 : i32, i32
  }
  func.func @transform_5(%arg0: i32) -> (i32, i32) {
    %c0_i32 = arith.constant 0 : i32
    %c0_i32_0 = arith.constant 0 : i32
    return %arg0, %c0_i32 : i32, i32
  }
  func.func @transform_6(%arg0: i32) -> (i32, i32) {
    %c0_i32 = arith.constant 0 : i32
    %c0_i32_0 = arith.constant 0 : i32
    return %arg0, %c0_i32 : i32, i32
  }
}

module attributes {stable_mosaic.version = 11 : i64} {
  func.func @_out_res_ln_q_kernel(%arg0: i32, %arg1: memref<32x32xbf16, #tpu.memory_space<vmem>>, %arg2: memref<32x32xbf16, #tpu.memory_space<vmem>>, %arg3: memref<1x32xf32, #tpu.memory_space<vmem>>, %arg4: memref<32x32xf32, #tpu.memory_space<vmem>>, %arg5: memref<1x32xf32, #tpu.memory_space<vmem>>, %arg6: memref<1x32xf32, #tpu.memory_space<vmem>>, %arg7: memref<32x32xbf16, #tpu.memory_space<vmem>>, %arg8: memref<32x32xf32, #tpu.memory_space<vmem>>, %arg9: memref<32x32xbf16, #tpu.memory_space<vmem>>) attributes {dimension_semantics = [#tpu.dimension_semantics<parallel>], iteration_bounds = array<i64: 1>, scalar_prefetch = 0 : i64, scratch_operands = 0 : i64, tpu.core_type = #tpu.core_type<tc>, window_params = [{transform_indices = @transform_0, window_bounds = array<i64: 32, 32>}, {pipeline_mode = #tpu.pipeline_mode<synchronous>, transform_indices = @transform_1, window_bounds = array<i64: 32, 32>}, {pipeline_mode = #tpu.pipeline_mode<synchronous>, transform_indices = @transform_2, window_bounds = array<i64: 1, 32>}, {transform_indices = @transform_3, window_bounds = array<i64: 32, 32>}, {pipeline_mode = #tpu.pipeline_mode<synchronous>, transform_indices = @transform_4, window_bounds = array<i64: 1, 32>}, {pipeline_mode = #tpu.pipeline_mode<synchronous>, transform_indices = @transform_5, window_bounds = array<i64: 1, 32>}, {pipeline_mode = #tpu.pipeline_mode<synchronous>, transform_indices = @transform_6, window_bounds = array<i64: 32, 32>}, {transform_indices = @transform_7, window_bounds = array<i64: 32, 32>}, {transform_indices = @transform_8, window_bounds = array<i64: 32, 32>}]} {
    %c0 = arith.constant 0 : index
    %c0_0 = arith.constant 0 : index
    %0 = vector.load %arg1[%c0, %c0_0] : memref<32x32xbf16, #tpu.memory_space<vmem>>, vector<32x32xbf16>
    %c0_1 = arith.constant 0 : index
    %c0_2 = arith.constant 0 : index
    %1 = vector.load %arg2[%c0_1, %c0_2] : memref<32x32xbf16, #tpu.memory_space<vmem>>, vector<32x32xbf16>
    %cst = arith.constant dense<0.000000e+00> : vector<32x32xf32>
    %2 = tpu.matmul %0, %1, %cst {dimension_numbers = #tpu.dot_dimension_numbers<[1], [0], [0], [1], [0, 0, 1, 1], [], []>} : vector<32x32xbf16>, vector<32x32xbf16>, vector<32x32xf32> -> vector<32x32xf32>
    %c0_3 = arith.constant 0 : index
    %c0_4 = arith.constant 0 : index
    %3 = vector.load %arg3[%c0_3, %c0_4] : memref<1x32xf32, #tpu.memory_space<vmem>>, vector<1x32xf32>
    %4 = vector.broadcast %3 : vector<1x32xf32> to vector<32x32xf32>
    %5 = arith.addf %2, %4 : vector<32x32xf32>
    %c0_5 = arith.constant 0 : index
    %c0_6 = arith.constant 0 : index
    %6 = vector.load %arg4[%c0_5, %c0_6] : memref<32x32xf32, #tpu.memory_space<vmem>>, vector<32x32xf32>
    %7 = arith.addf %5, %6 : vector<32x32xf32>
    %c0_7 = arith.constant 0 : index
    %c0_8 = arith.constant 0 : index
    %8 = vector.load %arg8[%c0_7, %c0_8] : memref<32x32xf32, #tpu.memory_space<vmem>>, vector<32x32xf32>
    tpu.vector_store %arg8[%c0_7, %c0_8], %7 {strides = array<i32>} : memref<32x32xf32, #tpu.memory_space<vmem>>, vector<32x32xf32>,
    %c0_9 = arith.constant 0 : index
    %c0_10 = arith.constant 0 : index
    %9 = vector.load %arg5[%c0_9, %c0_10] : memref<1x32xf32, #tpu.memory_space<vmem>>, vector<1x32xf32>
    %c0_11 = arith.constant 0 : index
    %c0_12 = arith.constant 0 : index
    %10 = vector.load %arg6[%c0_11, %c0_12] : memref<1x32xf32, #tpu.memory_space<vmem>>, vector<1x32xf32>
    %cst_13 = arith.constant dense<0.000000e+00> : vector<32xf32>
    %11 = vector.multi_reduction <add>, %7, %cst_13 [1] : vector<32x32xf32> to vector<32xf32>
    %12 = vector.shape_cast %11 : vector<32xf32> to vector<32x1xf32>
    %cst_14 = arith.constant 3.200000e+01 : f32
    %13 = vector.broadcast %cst_14 : f32 to vector<32x1xf32>
    %14 = arith.divf %12, %13 : vector<32x1xf32>
    %15 = vector.broadcast %14 : vector<32x1xf32> to vector<32x32xf32>
    %16 = arith.subf %7, %15 : vector<32x32xf32>
    %17 = arith.mulf %16, %16 : vector<32x32xf32>
    %cst_15 = arith.constant dense<0.000000e+00> : vector<32xf32>
    %18 = vector.multi_reduction <add>, %17, %cst_15 [1] : vector<32x32xf32> to vector<32xf32>
    %19 = vector.shape_cast %18 : vector<32xf32> to vector<32x1xf32>
    %cst_16 = arith.constant 3.200000e+01 : f32
    %20 = vector.broadcast %cst_16 : f32 to vector<32x1xf32>
    %21 = arith.divf %19, %20 : vector<32x1xf32>
    %cst_17 = arith.constant 9.99999974E-6 : f32
    %22 = vector.broadcast %cst_17 : f32 to vector<32x1xf32>
    %23 = arith.addf %21, %22 : vector<32x1xf32>
    %24 = math.rsqrt %23 : vector<32x1xf32>
    %25 = vector.broadcast %24 : vector<32x1xf32> to vector<32x32xf32>
    %26 = arith.mulf %16, %25 : vector<32x32xf32>
    %27 = vector.broadcast %9 : vector<1x32xf32> to vector<32x32xf32>
    %28 = arith.mulf %26, %27 : vector<32x32xf32>
    %29 = vector.broadcast %10 : vector<1x32xf32> to vector<32x32xf32>
    %30 = arith.addf %28, %29 : vector<32x32xf32>
    %31 = arith.truncf %30 : vector<32x32xf32> to vector<32x32xbf16>
    %c0_18 = arith.constant 0 : index
    %c0_19 = arith.constant 0 : index
    %32 = vector.load %arg7[%c0_18, %c0_19] : memref<32x32xbf16, #tpu.memory_space<vmem>>, vector<32x32xbf16>
    %cst_20 = arith.constant dense<0.000000e+00> : vector<32x32xf32>
    %33 = tpu.matmul %31, %32, %cst_20 {dimension_numbers = #tpu.dot_dimension_numbers<[1], [0], [0], [1], [0, 0, 1, 1], [], []>} : vector<32x32xbf16>, vector<32x32xbf16>, vector<32x32xf32> -> vector<32x32xf32>
    %34 = arith.truncf %33 : vector<32x32xf32> to vector<32x32xbf16>
    %c0_21 = arith.constant 0 : index
    %c0_22 = arith.constant 0 : index
    %35 = vector.load %arg9[%c0_21, %c0_22] : memref<32x32xbf16, #tpu.memory_space<vmem>>, vector<32x32xbf16>
    tpu.vector_store %arg9[%c0_21, %c0_22], %34 {strides = array<i32>} : memref<32x32xbf16, #tpu.memory_space<vmem>>, vector<32x32xbf16>,
    return
  }
  func.func @transform_0(%arg0: i32) -> (i32, i32) {
    %c0_i32 = arith.constant 0 : i32
    %c0_i32_0 = arith.constant 0 : i32
    return %arg0, %c0_i32 : i32, i32
  }
  func.func @transform_1(%arg0: i32) -> (i32, i32) {
    %c0_i32 = arith.constant 0 : i32
    %c0_i32_0 = arith.constant 0 : i32
    %c0_i32_1 = arith.constant 0 : i32
    return %c0_i32, %c0_i32_0 : i32, i32
  }
  func.func @transform_2(%arg0: i32) -> (i32, i32) {
    %c0_i32 = arith.constant 0 : i32
    %c0_i32_0 = arith.constant 0 : i32
    %c0_i32_1 = arith.constant 0 : i32
    return %c0_i32, %c0_i32_0 : i32, i32
  }
  func.func @transform_3(%arg0: i32) -> (i32, i32) {
    %c0_i32 = arith.constant 0 : i32
    %c0_i32_0 = arith.constant 0 : i32
    return %arg0, %c0_i32 : i32, i32
  }
  func.func @transform_4(%arg0: i32) -> (i32, i32) {
    %c0_i32 = arith.constant 0 : i32
    %c0_i32_0 = arith.constant 0 : i32
    %c0_i32_1 = arith.constant 0 : i32
    return %c0_i32, %c0_i32_0 : i32, i32
  }
  func.func @transform_5(%arg0: i32) -> (i32, i32) {
    %c0_i32 = arith.constant 0 : i32
    %c0_i32_0 = arith.constant 0 : i32
    %c0_i32_1 = arith.constant 0 : i32
    return %c0_i32, %c0_i32_0 : i32, i32
  }
  func.func @transform_6(%arg0: i32) -> (i32, i32) {
    %c0_i32 = arith.constant 0 : i32
    %c0_i32_0 = arith.constant 0 : i32
    %c0_i32_1 = arith.constant 0 : i32
    return %c0_i32, %c0_i32_0 : i32, i32
  }
  func.func @transform_7(%arg0: i32) -> (i32, i32) {
    %c0_i32 = arith.constant 0 : i32
    %c0_i32_0 = arith.constant 0 : i32
    return %arg0, %c0_i32 : i32, i32
  }
  func.func @transform_8(%arg0: i32) -> (i32, i32) {
    %c0_i32 = arith.constant 0 : i32
    %c0_i32_0 = arith.constant 0 : i32
    return %arg0, %c0_i32 : i32, i32
  }
}

module attributes {stable_mosaic.version = 11 : i64} {
  func.func @_flash_attn_kernel(%arg0: i32, %arg1: i32, %arg2: i32, %arg3: memref<16x32xbf16, #tpu.memory_space<vmem>>, %arg4: memref<16x32xbf16, #tpu.memory_space<vmem>>, %arg5: memref<16x32xbf16, #tpu.memory_space<vmem>>, %arg6: memref<16x32xbf16, #tpu.memory_space<vmem>>, %arg7: memref<4x16x128xf32, #tpu.memory_space<vmem>>, %arg8: memref<4x16x128xf32, #tpu.memory_space<vmem>>, %arg9: memref<16x32xf32, #tpu.memory_space<vmem>>) attributes {dimension_semantics = [#tpu.dimension_semantics<parallel>, #tpu.dimension_semantics<parallel>, #tpu.dimension_semantics<arbitrary>], iteration_bounds = array<i64: 2, 1, 1>, scalar_prefetch = 0 : i64, scratch_operands = 3 : i64, tpu.core_type = #tpu.core_type<tc>, window_params = [{transform_indices = @transform_0, window_bounds = array<i64: 16, 32>}, {transform_indices = @transform_1, window_bounds = array<i64: 16, 32>}, {transform_indices = @transform_2, window_bounds = array<i64: 16, 32>}, {transform_indices = @transform_3, window_bounds = array<i64: 16, 32>}]} {
    %c0_i32 = arith.constant 0 : i32
    %0 = arith.cmpi eq, %arg2, %c0_i32 : i32
    %1 = arith.extui %0 : i1 to i32
    %c0_i32_0 = arith.constant 0 : i32
    %2 = arith.cmpi ne, %1, %c0_i32_0 : i32
    scf.if %2 {
      %cst_81 = arith.constant 0xFF800000 : f32
      %157 = vector.broadcast %cst_81 : f32 to vector<4x16x128xf32>
      %c0_82 = arith.constant 0 : index
      %c0_83 = arith.constant 0 : index
      %c0_84 = arith.constant 0 : index
      %158 = vector.load %arg7[%c0_82, %c0_83, %c0_84] : memref<4x16x128xf32, #tpu.memory_space<vmem>>, vector<4x16x128xf32>
      tpu.vector_store %arg7[%c0_82, %c0_83, %c0_84], %157 {strides = array<i32>} : memref<4x16x128xf32, #tpu.memory_space<vmem>>, vector<4x16x128xf32>,
      %cst_85 = arith.constant 0.000000e+00 : f32
      %159 = vector.broadcast %cst_85 : f32 to vector<4x16x128xf32>
      %c0_86 = arith.constant 0 : index
      %c0_87 = arith.constant 0 : index
      %c0_88 = arith.constant 0 : index
      %160 = vector.load %arg8[%c0_86, %c0_87, %c0_88] : memref<4x16x128xf32, #tpu.memory_space<vmem>>, vector<4x16x128xf32>
      tpu.vector_store %arg8[%c0_86, %c0_87, %c0_88], %159 {strides = array<i32>} : memref<4x16x128xf32, #tpu.memory_space<vmem>>, vector<4x16x128xf32>,
      %cst_89 = arith.constant 0.000000e+00 : f32
      %161 = vector.broadcast %cst_89 : f32 to vector<16x32xf32>
      %c0_90 = arith.constant 0 : index
      %c0_91 = arith.constant 0 : index
      %162 = vector.load %arg9[%c0_90, %c0_91] : memref<16x32xf32, #tpu.memory_space<vmem>>, vector<16x32xf32>
      tpu.vector_store %arg9[%c0_90, %c0_91], %161 {strides = array<i32>} : memref<16x32xf32, #tpu.memory_space<vmem>>, vector<16x32xf32>,
    } else {
    }
    %c0 = arith.constant 0 : index
    %c0_1 = arith.constant 0 : index
    %3 = vector.load %arg3[%c0, %c0_1] : memref<16x32xbf16, #tpu.memory_space<vmem>>, vector<16x32xbf16>
    %c0_2 = arith.constant 0 : index
    %c0_3 = arith.constant 0 : index
    %4 = vector.load %arg4[%c0_2, %c0_3] : memref<16x32xbf16, #tpu.memory_space<vmem>>, vector<16x32xbf16>
    %c0_4 = arith.constant 0 : index
    %c0_5 = arith.constant 0 : index
    %5 = vector.load %arg5[%c0_4, %c0_5] : memref<16x32xbf16, #tpu.memory_space<vmem>>, vector<16x32xbf16>
    %6 = vector.extract_strided_slice %3 {offsets = [0, 0], sizes = [16, 8], strides = [1, 1]} : vector<16x32xbf16> to vector<16x8xbf16>
    %7 = vector.extract_strided_slice %4 {offsets = [0, 0], sizes = [16, 8], strides = [1, 1]} : vector<16x32xbf16> to vector<16x8xbf16>
    %cst = arith.constant dense<0.000000e+00> : vector<16x16xf32>
    %8 = tpu.matmul %6, %7, %cst {dimension_numbers = #tpu.dot_dimension_numbers<[1], [1], [0], [0], [0, 0, 1, 0], [], []>} : vector<16x8xbf16>, vector<16x8xbf16>, vector<16x16xf32> -> vector<16x16xf32>
    %c0_6 = arith.constant 0 : index
    %c0_7 = arith.constant 0 : index
    %c0_8 = arith.constant 0 : index
    %9 = vector.load %arg7[%c0_6, %c0_7, %c0_8] : memref<4x16x128xf32, #tpu.memory_space<vmem>>, vector<1x16x128xf32>
    %10 = vector.shape_cast %9 : vector<1x16x128xf32> to vector<16x128xf32>
    %cst_9 = arith.constant dense<0xFF800000> : vector<16xf32>
    %11 = vector.multi_reduction <maximumf>, %8, %cst_9 [1] : vector<16x16xf32> to vector<16xf32>
    %12 = vector.shape_cast %11 : vector<16xf32> to vector<16x1xf32>
    %13 = vector.broadcast %12 : vector<16x1xf32> to vector<16x128xf32>
    %14 = arith.maximumf %10, %13 : vector<16x128xf32>
    %15 = arith.subf %10, %14 : vector<16x128xf32>
    %16 = math.exp %15 : vector<16x128xf32>
    %17 = vector.extract_strided_slice %14 {offsets = [0, 0], sizes = [16, 1], strides = [1, 1]} : vector<16x128xf32> to vector<16x1xf32>
    %18 = vector.broadcast %17 : vector<16x1xf32> to vector<16x16xf32>
    %19 = arith.subf %8, %18 : vector<16x16xf32>
    %20 = math.exp %19 : vector<16x16xf32>
    %c0_10 = arith.constant 0 : index
    %c0_11 = arith.constant 0 : index
    %c0_12 = arith.constant 0 : index
    %21 = vector.load %arg8[%c0_10, %c0_11, %c0_12] : memref<4x16x128xf32, #tpu.memory_space<vmem>>, vector<1x16x128xf32>
    %22 = vector.shape_cast %21 : vector<1x16x128xf32> to vector<16x128xf32>
    %23 = arith.mulf %16, %22 : vector<16x128xf32>
    %cst_13 = arith.constant dense<0.000000e+00> : vector<16xf32>
    %24 = vector.multi_reduction <add>, %20, %cst_13 [1] : vector<16x16xf32> to vector<16xf32>
    %25 = vector.shape_cast %24 : vector<16xf32> to vector<16x1xf32>
    %26 = vector.broadcast %25 : vector<16x1xf32> to vector<16x128xf32>
    %27 = arith.addf %23, %26 : vector<16x128xf32>
    %c0_14 = arith.constant 0 : index
    %c0_15 = arith.constant 0 : index
    %c0_16 = arith.constant 0 : index
    %28 = vector.load %arg8[%c0_14, %c0_15, %c0_16] : memref<4x16x128xf32, #tpu.memory_space<vmem>>, vector<1x16x128xf32>
    %29 = vector.shape_cast %28 : vector<1x16x128xf32> to vector<16x128xf32>
    %30 = vector.shape_cast %27 : vector<16x128xf32> to vector<1x16x128xf32>
    tpu.vector_store %arg8[%c0_14, %c0_15, %c0_16], %30 {strides = array<i32>} : memref<4x16x128xf32, #tpu.memory_space<vmem>>, vector<1x16x128xf32>,
    %c0_17 = arith.constant 0 : index
    %c0_18 = arith.constant 0 : index
    %c0_19 = arith.constant 0 : index
    %31 = vector.load %arg7[%c0_17, %c0_18, %c0_19] : memref<4x16x128xf32, #tpu.memory_space<vmem>>, vector<1x16x128xf32>
    %32 = vector.shape_cast %31 : vector<1x16x128xf32> to vector<16x128xf32>
    %33 = vector.shape_cast %14 : vector<16x128xf32> to vector<1x16x128xf32>
    tpu.vector_store %arg7[%c0_17, %c0_18, %c0_19], %33 {strides = array<i32>} : memref<4x16x128xf32, #tpu.memory_space<vmem>>, vector<1x16x128xf32>,
    %34 = vector.extract_strided_slice %16 {offsets = [0, 0], sizes = [16, 1], strides = [1, 1]} : vector<16x128xf32> to vector<16x1xf32>
    %c0_20 = arith.constant 0 : index
    %c0_21 = arith.constant 0 : index
    %35 = vector.load %arg9[%c0_20, %c0_21] : memref<16x32xf32, #tpu.memory_space<vmem>>, vector<16x8xf32>
    %36 = vector.broadcast %34 : vector<16x1xf32> to vector<16x8xf32>
    %37 = arith.mulf %36, %35 : vector<16x8xf32>
    %38 = arith.truncf %20 : vector<16x16xf32> to vector<16x16xbf16>
    %39 = vector.extract_strided_slice %5 {offsets = [0, 0], sizes = [16, 8], strides = [1, 1]} : vector<16x32xbf16> to vector<16x8xbf16>
    %cst_22 = arith.constant dense<0.000000e+00> : vector<16x8xf32>
    %40 = tpu.matmul %38, %39, %cst_22 {dimension_numbers = #tpu.dot_dimension_numbers<[1], [0], [0], [1], [0, 0, 1, 1], [], []>} : vector<16x16xbf16>, vector<16x8xbf16>, vector<16x8xf32> -> vector<16x8xf32>
    %41 = arith.addf %37, %40 : vector<16x8xf32>
    %c0_23 = arith.constant 0 : index
    %c0_24 = arith.constant 0 : index
    %42 = vector.load %arg9[%c0_23, %c0_24] : memref<16x32xf32, #tpu.memory_space<vmem>>, vector<16x8xf32>
    tpu.vector_store %arg9[%c0_23, %c0_24], %41 {strides = array<i32>} : memref<16x32xf32, #tpu.memory_space<vmem>>, vector<16x8xf32>,
    %43 = vector.extract_strided_slice %3 {offsets = [0, 8], sizes = [16, 8], strides = [1, 1]} : vector<16x32xbf16> to vector<16x8xbf16>
    %44 = vector.extract_strided_slice %4 {offsets = [0, 8], sizes = [16, 8], strides = [1, 1]} : vector<16x32xbf16> to vector<16x8xbf16>
    %cst_25 = arith.constant dense<0.000000e+00> : vector<16x16xf32>
    %45 = tpu.matmul %43, %44, %cst_25 {dimension_numbers = #tpu.dot_dimension_numbers<[1], [1], [0], [0], [0, 0, 1, 0], [], []>} : vector<16x8xbf16>, vector<16x8xbf16>, vector<16x16xf32> -> vector<16x16xf32>
    %c1 = arith.constant 1 : index
    %c0_26 = arith.constant 0 : index
    %c0_27 = arith.constant 0 : index
    %46 = vector.load %arg7[%c1, %c0_26, %c0_27] : memref<4x16x128xf32, #tpu.memory_space<vmem>>, vector<1x16x128xf32>
    %47 = vector.shape_cast %46 : vector<1x16x128xf32> to vector<16x128xf32>
    %cst_28 = arith.constant dense<0xFF800000> : vector<16xf32>
    %48 = vector.multi_reduction <maximumf>, %45, %cst_28 [1] : vector<16x16xf32> to vector<16xf32>
    %49 = vector.shape_cast %48 : vector<16xf32> to vector<16x1xf32>
    %50 = vector.broadcast %49 : vector<16x1xf32> to vector<16x128xf32>
    %51 = arith.maximumf %47, %50 : vector<16x128xf32>
    %52 = arith.subf %47, %51 : vector<16x128xf32>
    %53 = math.exp %52 : vector<16x128xf32>
    %54 = vector.extract_strided_slice %51 {offsets = [0, 0], sizes = [16, 1], strides = [1, 1]} : vector<16x128xf32> to vector<16x1xf32>
    %55 = vector.broadcast %54 : vector<16x1xf32> to vector<16x16xf32>
    %56 = arith.subf %45, %55 : vector<16x16xf32>
    %57 = math.exp %56 : vector<16x16xf32>
    %c1_29 = arith.constant 1 : index
    %c0_30 = arith.constant 0 : index
    %c0_31 = arith.constant 0 : index
    %58 = vector.load %arg8[%c1_29, %c0_30, %c0_31] : memref<4x16x128xf32, #tpu.memory_space<vmem>>, vector<1x16x128xf32>
    %59 = vector.shape_cast %58 : vector<1x16x128xf32> to vector<16x128xf32>
    %60 = arith.mulf %53, %59 : vector<16x128xf32>
    %cst_32 = arith.constant dense<0.000000e+00> : vector<16xf32>
    %61 = vector.multi_reduction <add>, %57, %cst_32 [1] : vector<16x16xf32> to vector<16xf32>
    %62 = vector.shape_cast %61 : vector<16xf32> to vector<16x1xf32>
    %63 = vector.broadcast %62 : vector<16x1xf32> to vector<16x128xf32>
    %64 = arith.addf %60, %63 : vector<16x128xf32>
    %c1_33 = arith.constant 1 : index
    %c0_34 = arith.constant 0 : index
    %c0_35 = arith.constant 0 : index
    %65 = vector.load %arg8[%c1_33, %c0_34, %c0_35] : memref<4x16x128xf32, #tpu.memory_space<vmem>>, vector<1x16x128xf32>
    %66 = vector.shape_cast %65 : vector<1x16x128xf32> to vector<16x128xf32>
    %67 = vector.shape_cast %64 : vector<16x128xf32> to vector<1x16x128xf32>
    tpu.vector_store %arg8[%c1_33, %c0_34, %c0_35], %67 {strides = array<i32>} : memref<4x16x128xf32, #tpu.memory_space<vmem>>, vector<1x16x128xf32>,
    %c1_36 = arith.constant 1 : index
    %c0_37 = arith.constant 0 : index
    %c0_38 = arith.constant 0 : index
    %68 = vector.load %arg7[%c1_36, %c0_37, %c0_38] : memref<4x16x128xf32, #tpu.memory_space<vmem>>, vector<1x16x128xf32>
    %69 = vector.shape_cast %68 : vector<1x16x128xf32> to vector<16x128xf32>
    %70 = vector.shape_cast %51 : vector<16x128xf32> to vector<1x16x128xf32>
    tpu.vector_store %arg7[%c1_36, %c0_37, %c0_38], %70 {strides = array<i32>} : memref<4x16x128xf32, #tpu.memory_space<vmem>>, vector<1x16x128xf32>,
    %71 = vector.extract_strided_slice %53 {offsets = [0, 0], sizes = [16, 1], strides = [1, 1]} : vector<16x128xf32> to vector<16x1xf32>
    %c0_39 = arith.constant 0 : index
    %c8 = arith.constant 8 : index
    %72 = vector.load %arg9[%c0_39, %c8] : memref<16x32xf32, #tpu.memory_space<vmem>>, vector<16x8xf32>
    %73 = vector.broadcast %71 : vector<16x1xf32> to vector<16x8xf32>
    %74 = arith.mulf %73, %72 : vector<16x8xf32>
    %75 = arith.truncf %57 : vector<16x16xf32> to vector<16x16xbf16>
    %76 = vector.extract_strided_slice %5 {offsets = [0, 8], sizes = [16, 8], strides = [1, 1]} : vector<16x32xbf16> to vector<16x8xbf16>
    %cst_40 = arith.constant dense<0.000000e+00> : vector<16x8xf32>
    %77 = tpu.matmul %75, %76, %cst_40 {dimension_numbers = #tpu.dot_dimension_numbers<[1], [0], [0], [1], [0, 0, 1, 1], [], []>} : vector<16x16xbf16>, vector<16x8xbf16>, vector<16x8xf32> -> vector<16x8xf32>
    %78 = arith.addf %74, %77 : vector<16x8xf32>
    %c0_41 = arith.constant 0 : index
    %c8_42 = arith.constant 8 : index
    %79 = vector.load %arg9[%c0_41, %c8_42] : memref<16x32xf32, #tpu.memory_space<vmem>>, vector<16x8xf32>
    tpu.vector_store %arg9[%c0_41, %c8_42], %78 {strides = array<i32>} : memref<16x32xf32, #tpu.memory_space<vmem>>, vector<16x8xf32>,
    %80 = vector.extract_strided_slice %3 {offsets = [0, 16], sizes = [16, 8], strides = [1, 1]} : vector<16x32xbf16> to vector<16x8xbf16>
    %81 = vector.extract_strided_slice %4 {offsets = [0, 16], sizes = [16, 8], strides = [1, 1]} : vector<16x32xbf16> to vector<16x8xbf16>
    %cst_43 = arith.constant dense<0.000000e+00> : vector<16x16xf32>
    %82 = tpu.matmul %80, %81, %cst_43 {dimension_numbers = #tpu.dot_dimension_numbers<[1], [1], [0], [0], [0, 0, 1, 0], [], []>} : vector<16x8xbf16>, vector<16x8xbf16>, vector<16x16xf32> -> vector<16x16xf32>
    %c2 = arith.constant 2 : index
    %c0_44 = arith.constant 0 : index
    %c0_45 = arith.constant 0 : index
    %83 = vector.load %arg7[%c2, %c0_44, %c0_45] : memref<4x16x128xf32, #tpu.memory_space<vmem>>, vector<1x16x128xf32>
    %84 = vector.shape_cast %83 : vector<1x16x128xf32> to vector<16x128xf32>
    %cst_46 = arith.constant dense<0xFF800000> : vector<16xf32>
    %85 = vector.multi_reduction <maximumf>, %82, %cst_46 [1] : vector<16x16xf32> to vector<16xf32>
    %86 = vector.shape_cast %85 : vector<16xf32> to vector<16x1xf32>
    %87 = vector.broadcast %86 : vector<16x1xf32> to vector<16x128xf32>
    %88 = arith.maximumf %84, %87 : vector<16x128xf32>
    %89 = arith.subf %84, %88 : vector<16x128xf32>
    %90 = math.exp %89 : vector<16x128xf32>
    %91 = vector.extract_strided_slice %88 {offsets = [0, 0], sizes = [16, 1], strides = [1, 1]} : vector<16x128xf32> to vector<16x1xf32>
    %92 = vector.broadcast %91 : vector<16x1xf32> to vector<16x16xf32>
    %93 = arith.subf %82, %92 : vector<16x16xf32>
    %94 = math.exp %93 : vector<16x16xf32>
    %c2_47 = arith.constant 2 : index
    %c0_48 = arith.constant 0 : index
    %c0_49 = arith.constant 0 : index
    %95 = vector.load %arg8[%c2_47, %c0_48, %c0_49] : memref<4x16x128xf32, #tpu.memory_space<vmem>>, vector<1x16x128xf32>
    %96 = vector.shape_cast %95 : vector<1x16x128xf32> to vector<16x128xf32>
    %97 = arith.mulf %90, %96 : vector<16x128xf32>
    %cst_50 = arith.constant dense<0.000000e+00> : vector<16xf32>
    %98 = vector.multi_reduction <add>, %94, %cst_50 [1] : vector<16x16xf32> to vector<16xf32>
    %99 = vector.shape_cast %98 : vector<16xf32> to vector<16x1xf32>
    %100 = vector.broadcast %99 : vector<16x1xf32> to vector<16x128xf32>
    %101 = arith.addf %97, %100 : vector<16x128xf32>
    %c2_51 = arith.constant 2 : index
    %c0_52 = arith.constant 0 : index
    %c0_53 = arith.constant 0 : index
    %102 = vector.load %arg8[%c2_51, %c0_52, %c0_53] : memref<4x16x128xf32, #tpu.memory_space<vmem>>, vector<1x16x128xf32>
    %103 = vector.shape_cast %102 : vector<1x16x128xf32> to vector<16x128xf32>
    %104 = vector.shape_cast %101 : vector<16x128xf32> to vector<1x16x128xf32>
    tpu.vector_store %arg8[%c2_51, %c0_52, %c0_53], %104 {strides = array<i32>} : memref<4x16x128xf32, #tpu.memory_space<vmem>>, vector<1x16x128xf32>,
    %c2_54 = arith.constant 2 : index
    %c0_55 = arith.constant 0 : index
    %c0_56 = arith.constant 0 : index
    %105 = vector.load %arg7[%c2_54, %c0_55, %c0_56] : memref<4x16x128xf32, #tpu.memory_space<vmem>>, vector<1x16x128xf32>
    %106 = vector.shape_cast %105 : vector<1x16x128xf32> to vector<16x128xf32>
    %107 = vector.shape_cast %88 : vector<16x128xf32> to vector<1x16x128xf32>
    tpu.vector_store %arg7[%c2_54, %c0_55, %c0_56], %107 {strides = array<i32>} : memref<4x16x128xf32, #tpu.memory_space<vmem>>, vector<1x16x128xf32>,
    %108 = vector.extract_strided_slice %90 {offsets = [0, 0], sizes = [16, 1], strides = [1, 1]} : vector<16x128xf32> to vector<16x1xf32>
    %c0_57 = arith.constant 0 : index
    %c16 = arith.constant 16 : index
    %109 = vector.load %arg9[%c0_57, %c16] : memref<16x32xf32, #tpu.memory_space<vmem>>, vector<16x8xf32>
    %110 = vector.broadcast %108 : vector<16x1xf32> to vector<16x8xf32>
    %111 = arith.mulf %110, %109 : vector<16x8xf32>
    %112 = arith.truncf %94 : vector<16x16xf32> to vector<16x16xbf16>
    %113 = vector.extract_strided_slice %5 {offsets = [0, 16], sizes = [16, 8], strides = [1, 1]} : vector<16x32xbf16> to vector<16x8xbf16>
    %cst_58 = arith.constant dense<0.000000e+00> : vector<16x8xf32>
    %114 = tpu.matmul %112, %113, %cst_58 {dimension_numbers = #tpu.dot_dimension_numbers<[1], [0], [0], [1], [0, 0, 1, 1], [], []>} : vector<16x16xbf16>, vector<16x8xbf16>, vector<16x8xf32> -> vector<16x8xf32>
    %115 = arith.addf %111, %114 : vector<16x8xf32>
    %c0_59 = arith.constant 0 : index
    %c16_60 = arith.constant 16 : index
    %116 = vector.load %arg9[%c0_59, %c16_60] : memref<16x32xf32, #tpu.memory_space<vmem>>, vector<16x8xf32>
    tpu.vector_store %arg9[%c0_59, %c16_60], %115 {strides = array<i32>} : memref<16x32xf32, #tpu.memory_space<vmem>>, vector<16x8xf32>,
    %117 = vector.extract_strided_slice %3 {offsets = [0, 24], sizes = [16, 8], strides = [1, 1]} : vector<16x32xbf16> to vector<16x8xbf16>
    %118 = vector.extract_strided_slice %4 {offsets = [0, 24], sizes = [16, 8], strides = [1, 1]} : vector<16x32xbf16> to vector<16x8xbf16>
    %cst_61 = arith.constant dense<0.000000e+00> : vector<16x16xf32>
    %119 = tpu.matmul %117, %118, %cst_61 {dimension_numbers = #tpu.dot_dimension_numbers<[1], [1], [0], [0], [0, 0, 1, 0], [], []>} : vector<16x8xbf16>, vector<16x8xbf16>, vector<16x16xf32> -> vector<16x16xf32>
    %c3 = arith.constant 3 : index
    %c0_62 = arith.constant 0 : index
    %c0_63 = arith.constant 0 : index
    %120 = vector.load %arg7[%c3, %c0_62, %c0_63] : memref<4x16x128xf32, #tpu.memory_space<vmem>>, vector<1x16x128xf32>
    %121 = vector.shape_cast %120 : vector<1x16x128xf32> to vector<16x128xf32>
    %cst_64 = arith.constant dense<0xFF800000> : vector<16xf32>
    %122 = vector.multi_reduction <maximumf>, %119, %cst_64 [1] : vector<16x16xf32> to vector<16xf32>
    %123 = vector.shape_cast %122 : vector<16xf32> to vector<16x1xf32>
    %124 = vector.broadcast %123 : vector<16x1xf32> to vector<16x128xf32>
    %125 = arith.maximumf %121, %124 : vector<16x128xf32>
    %126 = arith.subf %121, %125 : vector<16x128xf32>
    %127 = math.exp %126 : vector<16x128xf32>
    %128 = vector.extract_strided_slice %125 {offsets = [0, 0], sizes = [16, 1], strides = [1, 1]} : vector<16x128xf32> to vector<16x1xf32>
    %129 = vector.broadcast %128 : vector<16x1xf32> to vector<16x16xf32>
    %130 = arith.subf %119, %129 : vector<16x16xf32>
    %131 = math.exp %130 : vector<16x16xf32>
    %c3_65 = arith.constant 3 : index
    %c0_66 = arith.constant 0 : index
    %c0_67 = arith.constant 0 : index
    %132 = vector.load %arg8[%c3_65, %c0_66, %c0_67] : memref<4x16x128xf32, #tpu.memory_space<vmem>>, vector<1x16x128xf32>
    %133 = vector.shape_cast %132 : vector<1x16x128xf32> to vector<16x128xf32>
    %134 = arith.mulf %127, %133 : vector<16x128xf32>
    %cst_68 = arith.constant dense<0.000000e+00> : vector<16xf32>
    %135 = vector.multi_reduction <add>, %131, %cst_68 [1] : vector<16x16xf32> to vector<16xf32>
    %136 = vector.shape_cast %135 : vector<16xf32> to vector<16x1xf32>
    %137 = vector.broadcast %136 : vector<16x1xf32> to vector<16x128xf32>
    %138 = arith.addf %134, %137 : vector<16x128xf32>
    %c3_69 = arith.constant 3 : index
    %c0_70 = arith.constant 0 : index
    %c0_71 = arith.constant 0 : index
    %139 = vector.load %arg8[%c3_69, %c0_70, %c0_71] : memref<4x16x128xf32, #tpu.memory_space<vmem>>, vector<1x16x128xf32>
    %140 = vector.shape_cast %139 : vector<1x16x128xf32> to vector<16x128xf32>
    %141 = vector.shape_cast %138 : vector<16x128xf32> to vector<1x16x128xf32>
    tpu.vector_store %arg8[%c3_69, %c0_70, %c0_71], %141 {strides = array<i32>} : memref<4x16x128xf32, #tpu.memory_space<vmem>>, vector<1x16x128xf32>,
    %c3_72 = arith.constant 3 : index
    %c0_73 = arith.constant 0 : index
    %c0_74 = arith.constant 0 : index
    %142 = vector.load %arg7[%c3_72, %c0_73, %c0_74] : memref<4x16x128xf32, #tpu.memory_space<vmem>>, vector<1x16x128xf32>
    %143 = vector.shape_cast %142 : vector<1x16x128xf32> to vector<16x128xf32>
    %144 = vector.shape_cast %125 : vector<16x128xf32> to vector<1x16x128xf32>
    tpu.vector_store %arg7[%c3_72, %c0_73, %c0_74], %144 {strides = array<i32>} : memref<4x16x128xf32, #tpu.memory_space<vmem>>, vector<1x16x128xf32>,
    %145 = vector.extract_strided_slice %127 {offsets = [0, 0], sizes = [16, 1], strides = [1, 1]} : vector<16x128xf32> to vector<16x1xf32>
    %c0_75 = arith.constant 0 : index
    %c24 = arith.constant 24 : index
    %146 = vector.load %arg9[%c0_75, %c24] : memref<16x32xf32, #tpu.memory_space<vmem>>, vector<16x8xf32>
    %147 = vector.broadcast %145 : vector<16x1xf32> to vector<16x8xf32>
    %148 = arith.mulf %147, %146 : vector<16x8xf32>
    %149 = arith.truncf %131 : vector<16x16xf32> to vector<16x16xbf16>
    %150 = vector.extract_strided_slice %5 {offsets = [0, 24], sizes = [16, 8], strides = [1, 1]} : vector<16x32xbf16> to vector<16x8xbf16>
    %cst_76 = arith.constant dense<0.000000e+00> : vector<16x8xf32>
    %151 = tpu.matmul %149, %150, %cst_76 {dimension_numbers = #tpu.dot_dimension_numbers<[1], [0], [0], [1], [0, 0, 1, 1], [], []>} : vector<16x16xbf16>, vector<16x8xbf16>, vector<16x8xf32> -> vector<16x8xf32>
    %152 = arith.addf %148, %151 : vector<16x8xf32>
    %c0_77 = arith.constant 0 : index
    %c24_78 = arith.constant 24 : index
    %153 = vector.load %arg9[%c0_77, %c24_78] : memref<16x32xf32, #tpu.memory_space<vmem>>, vector<16x8xf32>
    tpu.vector_store %arg9[%c0_77, %c24_78], %152 {strides = array<i32>} : memref<16x32xf32, #tpu.memory_space<vmem>>, vector<16x8xf32>,
    %c0_i32_79 = arith.constant 0 : i32
    %154 = arith.cmpi eq, %arg2, %c0_i32_79 : i32
    %155 = arith.extui %154 : i1 to i32
    %c0_i32_80 = arith.constant 0 : i32
    %156 = arith.cmpi ne, %155, %c0_i32_80 : i32
    scf.if %156 {
      %c0_81 = arith.constant 0 : index
      %c0_82 = arith.constant 0 : index
      %c0_83 = arith.constant 0 : index
      %157 = vector.load %arg8[%c0_81, %c0_82, %c0_83] : memref<4x16x128xf32, #tpu.memory_space<vmem>>, vector<1x16x128xf32>
      %158 = vector.shape_cast %157 : vector<1x16x128xf32> to vector<16x128xf32>
      %159 = vector.extract_strided_slice %158 {offsets = [0, 0], sizes = [16, 1], strides = [1, 1]} : vector<16x128xf32> to vector<16x1xf32>
      %160 = tpu.reciprocal %159 {approx = true} : vector<16x1xf32> -> vector<16x1xf32>
      %c0_84 = arith.constant 0 : index
      %c0_85 = arith.constant 0 : index
      %161 = vector.load %arg9[%c0_84, %c0_85] : memref<16x32xf32, #tpu.memory_space<vmem>>, vector<16x8xf32>
      %162 = vector.broadcast %160 : vector<16x1xf32> to vector<16x8xf32>
      %163 = arith.mulf %161, %162 : vector<16x8xf32>
      %164 = arith.truncf %163 : vector<16x8xf32> to vector<16x8xbf16>
      %c0_86 = arith.constant 0 : index
      %c0_87 = arith.constant 0 : index
      %165 = vector.load %arg6[%c0_86, %c0_87] : memref<16x32xbf16, #tpu.memory_space<vmem>>, vector<16x8xbf16>
      tpu.vector_store %arg6[%c0_86, %c0_87], %164 {strides = array<i32>} : memref<16x32xbf16, #tpu.memory_space<vmem>>, vector<16x8xbf16>,
      %c1_88 = arith.constant 1 : index
      %c0_89 = arith.constant 0 : index
      %c0_90 = arith.constant 0 : index
      %166 = vector.load %arg8[%c1_88, %c0_89, %c0_90] : memref<4x16x128xf32, #tpu.memory_space<vmem>>, vector<1x16x128xf32>
      %167 = vector.shape_cast %166 : vector<1x16x128xf32> to vector<16x128xf32>
      %168 = vector.extract_strided_slice %167 {offsets = [0, 0], sizes = [16, 1], strides = [1, 1]} : vector<16x128xf32> to vector<16x1xf32>
      %169 = tpu.reciprocal %168 {approx = true} : vector<16x1xf32> -> vector<16x1xf32>
      %c0_91 = arith.constant 0 : index
      %c8_92 = arith.constant 8 : index
      %170 = vector.load %arg9[%c0_91, %c8_92] : memref<16x32xf32, #tpu.memory_space<vmem>>, vector<16x8xf32>
      %171 = vector.broadcast %169 : vector<16x1xf32> to vector<16x8xf32>
      %172 = arith.mulf %170, %171 : vector<16x8xf32>
      %173 = arith.truncf %172 : vector<16x8xf32> to vector<16x8xbf16>
      %c0_93 = arith.constant 0 : index
      %c8_94 = arith.constant 8 : index
      %174 = vector.load %arg6[%c0_93, %c8_94] : memref<16x32xbf16, #tpu.memory_space<vmem>>, vector<16x8xbf16>
      tpu.vector_store %arg6[%c0_93, %c8_94], %173 {strides = array<i32>} : memref<16x32xbf16, #tpu.memory_space<vmem>>, vector<16x8xbf16>,
      %c2_95 = arith.constant 2 : index
      %c0_96 = arith.constant 0 : index
      %c0_97 = arith.constant 0 : index
      %175 = vector.load %arg8[%c2_95, %c0_96, %c0_97] : memref<4x16x128xf32, #tpu.memory_space<vmem>>, vector<1x16x128xf32>
      %176 = vector.shape_cast %175 : vector<1x16x128xf32> to vector<16x128xf32>
      %177 = vector.extract_strided_slice %176 {offsets = [0, 0], sizes = [16, 1], strides = [1, 1]} : vector<16x128xf32> to vector<16x1xf32>
      %178 = tpu.reciprocal %177 {approx = true} : vector<16x1xf32> -> vector<16x1xf32>
      %c0_98 = arith.constant 0 : index
      %c16_99 = arith.constant 16 : index
      %179 = vector.load %arg9[%c0_98, %c16_99] : memref<16x32xf32, #tpu.memory_space<vmem>>, vector<16x8xf32>
      %180 = vector.broadcast %178 : vector<16x1xf32> to vector<16x8xf32>
      %181 = arith.mulf %179, %180 : vector<16x8xf32>
      %182 = arith.truncf %181 : vector<16x8xf32> to vector<16x8xbf16>
      %c0_100 = arith.constant 0 : index
      %c16_101 = arith.constant 16 : index
      %183 = vector.load %arg6[%c0_100, %c16_101] : memref<16x32xbf16, #tpu.memory_space<vmem>>, vector<16x8xbf16>
      tpu.vector_store %arg6[%c0_100, %c16_101], %182 {strides = array<i32>} : memref<16x32xbf16, #tpu.memory_space<vmem>>, vector<16x8xbf16>,
      %c3_102 = arith.constant 3 : index
      %c0_103 = arith.constant 0 : index
      %c0_104 = arith.constant 0 : index
      %184 = vector.load %arg8[%c3_102, %c0_103, %c0_104] : memref<4x16x128xf32, #tpu.memory_space<vmem>>, vector<1x16x128xf32>
      %185 = vector.shape_cast %184 : vector<1x16x128xf32> to vector<16x128xf32>
      %186 = vector.extract_strided_slice %185 {offsets = [0, 0], sizes = [16, 1], strides = [1, 1]} : vector<16x128xf32> to vector<16x1xf32>
      %187 = tpu.reciprocal %186 {approx = true} : vector<16x1xf32> -> vector<16x1xf32>
      %c0_105 = arith.constant 0 : index
      %c24_106 = arith.constant 24 : index
      %188 = vector.load %arg9[%c0_105, %c24_106] : memref<16x32xf32, #tpu.memory_space<vmem>>, vector<16x8xf32>
      %189 = vector.broadcast %187 : vector<16x1xf32> to vector<16x8xf32>
      %190 = arith.mulf %188, %189 : vector<16x8xf32>
      %191 = arith.truncf %190 : vector<16x8xf32> to vector<16x8xbf16>
      %c0_107 = arith.constant 0 : index
      %c24_108 = arith.constant 24 : index
      %192 = vector.load %arg6[%c0_107, %c24_108] : memref<16x32xbf16, #tpu.memory_space<vmem>>, vector<16x8xbf16>
      tpu.vector_store %arg6[%c0_107, %c24_108], %191 {strides = array<i32>} : memref<16x32xbf16, #tpu.memory_space<vmem>>, vector<16x8xbf16>,
    } else {
    }
    return
  }
  func.func @transform_0(%arg0: i32, %arg1: i32, %arg2: i32) -> (i32, i32) {
    %c1_i32 = arith.constant 1 : i32
    %0 = arith.muli %arg0, %c1_i32 : i32
    %1 = arith.addi %0, %arg1 : i32
    %c0_i32 = arith.constant 0 : i32
    %c0_i32_0 = arith.constant 0 : i32
    return %1, %c0_i32 : i32, i32
  }
  func.func @transform_1(%arg0: i32, %arg1: i32, %arg2: i32) -> (i32, i32) {
    %c1_i32 = arith.constant 1 : i32
    %0 = arith.muli %arg0, %c1_i32 : i32
    %1 = arith.addi %0, %arg2 : i32
    %c0_i32 = arith.constant 0 : i32
    %c0_i32_0 = arith.constant 0 : i32
    return %1, %c0_i32 : i32, i32
  }
  func.func @transform_2(%arg0: i32, %arg1: i32, %arg2: i32) -> (i32, i32) {
    %c1_i32 = arith.constant 1 : i32
    %0 = arith.muli %arg0, %c1_i32 : i32
    %1 = arith.addi %0, %arg2 : i32
    %c0_i32 = arith.constant 0 : i32
    %c0_i32_0 = arith.constant 0 : i32
    return %1, %c0_i32 : i32, i32
  }
  func.func @transform_3(%arg0: i32, %arg1: i32, %arg2: i32) -> (i32, i32) {
    %c1_i32 = arith.constant 1 : i32
    %0 = arith.muli %arg0, %c1_i32 : i32
    %1 = arith.addi %0, %arg1 : i32
    %c0_i32 = arith.constant 0 : i32
    %c0_i32_0 = arith.constant 0 : i32
    return %1, %c0_i32 : i32, i32
  }
}

module attributes {stable_mosaic.version = 11 : i64} {
  func.func @_kv_proj_kernel(%arg0: i32, %arg1: memref<16x64xf32, #tpu.memory_space<vmem>>, %arg2: memref<64x64xbf16, #tpu.memory_space<vmem>>, %arg3: memref<16x32xbf16, #tpu.memory_space<vmem>>, %arg4: memref<16x32xbf16, #tpu.memory_space<vmem>>) attributes {dimension_semantics = [#tpu.dimension_semantics<parallel>], iteration_bounds = array<i64: 1>, scalar_prefetch = 0 : i64, scratch_operands = 0 : i64, tpu.core_type = #tpu.core_type<tc>, window_params = [{transform_indices = @transform_0, window_bounds = array<i64: 16, 64>}, {pipeline_mode = #tpu.pipeline_mode<synchronous>, transform_indices = @transform_1, window_bounds = array<i64: 64, 64>}, {transform_indices = @transform_2, window_bounds = array<i64: 16, 32>}, {transform_indices = @transform_3, window_bounds = array<i64: 16, 32>}]} {
    %c0 = arith.constant 0 : index
    %c0_0 = arith.constant 0 : index
    %0 = vector.load %arg1[%c0, %c0_0] : memref<16x64xf32, #tpu.memory_space<vmem>>, vector<16x64xf32>
    %1 = arith.truncf %0 : vector<16x64xf32> to vector<16x64xbf16>
    %c0_1 = arith.constant 0 : index
    %c0_2 = arith.constant 0 : index
    %2 = vector.load %arg2[%c0_1, %c0_2] : memref<64x64xbf16, #tpu.memory_space<vmem>>, vector<64x64xbf16>
    %cst = arith.constant dense<0.000000e+00> : vector<16x64xf32>
    %3 = tpu.matmul %1, %2, %cst {dimension_numbers = #tpu.dot_dimension_numbers<[1], [0], [0], [1], [0, 0, 1, 1], [], []>} : vector<16x64xbf16>, vector<64x64xbf16>, vector<16x64xf32> -> vector<16x64xf32>
    %4 = vector.extract_strided_slice %3 {offsets = [0, 0], sizes = [16, 32], strides = [1, 1]} : vector<16x64xf32> to vector<16x32xf32>
    %5 = arith.truncf %4 : vector<16x32xf32> to vector<16x32xbf16>
    %c0_3 = arith.constant 0 : index
    %c0_4 = arith.constant 0 : index
    %6 = vector.load %arg3[%c0_3, %c0_4] : memref<16x32xbf16, #tpu.memory_space<vmem>>, vector<16x32xbf16>
    tpu.vector_store %arg3[%c0_3, %c0_4], %5 {strides = array<i32>} : memref<16x32xbf16, #tpu.memory_space<vmem>>, vector<16x32xbf16>,
    %7 = vector.extract_strided_slice %3 {offsets = [0, 32], sizes = [16, 32], strides = [1, 1]} : vector<16x64xf32> to vector<16x32xf32>
    %8 = arith.truncf %7 : vector<16x32xf32> to vector<16x32xbf16>
    %c0_5 = arith.constant 0 : index
    %c0_6 = arith.constant 0 : index
    %9 = vector.load %arg4[%c0_5, %c0_6] : memref<16x32xbf16, #tpu.memory_space<vmem>>, vector<16x32xbf16>
    tpu.vector_store %arg4[%c0_5, %c0_6], %8 {strides = array<i32>} : memref<16x32xbf16, #tpu.memory_space<vmem>>, vector<16x32xbf16>,
    return
  }
  func.func @transform_0(%arg0: i32) -> (i32, i32) {
    %c0_i32 = arith.constant 0 : i32
    %c0_i32_0 = arith.constant 0 : i32
    return %arg0, %c0_i32 : i32, i32
  }
  func.func @transform_1(%arg0: i32) -> (i32, i32) {
    %c0_i32 = arith.constant 0 : i32
    %c0_i32_0 = arith.constant 0 : i32
    %c0_i32_1 = arith.constant 0 : i32
    return %c0_i32, %c0_i32_0 : i32, i32
  }
  func.func @transform_2(%arg0: i32) -> (i32, i32) {
    %c0_i32 = arith.constant 0 : i32
    %c0_i32_0 = arith.constant 0 : i32
    return %arg0, %c0_i32 : i32, i32
  }
  func.func @transform_3(%arg0: i32) -> (i32, i32) {
    %c0_i32 = arith.constant 0 : i32
    %c0_i32_0 = arith.constant 0 : i32
    return %arg0, %c0_i32 : i32, i32
  }
}

module attributes {stable_mosaic.version = 11 : i64} {
  func.func @_flash_attn_kernel(%arg0: i32, %arg1: i32, %arg2: i32, %arg3: memref<16x32xbf16, #tpu.memory_space<vmem>>, %arg4: memref<8x32xbf16, #tpu.memory_space<vmem>>, %arg5: memref<8x32xbf16, #tpu.memory_space<vmem>>, %arg6: memref<16x32xbf16, #tpu.memory_space<vmem>>, %arg7: memref<4x16x128xf32, #tpu.memory_space<vmem>>, %arg8: memref<4x16x128xf32, #tpu.memory_space<vmem>>, %arg9: memref<16x32xf32, #tpu.memory_space<vmem>>) attributes {dimension_semantics = [#tpu.dimension_semantics<parallel>, #tpu.dimension_semantics<parallel>, #tpu.dimension_semantics<arbitrary>], iteration_bounds = array<i64: 2, 1, 1>, scalar_prefetch = 0 : i64, scratch_operands = 3 : i64, tpu.core_type = #tpu.core_type<tc>, window_params = [{transform_indices = @transform_0, window_bounds = array<i64: 16, 32>}, {transform_indices = @transform_1, window_bounds = array<i64: 8, 32>}, {transform_indices = @transform_2, window_bounds = array<i64: 8, 32>}, {transform_indices = @transform_3, window_bounds = array<i64: 16, 32>}]} {
    %c0_i32 = arith.constant 0 : i32
    %0 = arith.cmpi eq, %arg2, %c0_i32 : i32
    %1 = arith.extui %0 : i1 to i32
    %c0_i32_0 = arith.constant 0 : i32
    %2 = arith.cmpi ne, %1, %c0_i32_0 : i32
    scf.if %2 {
      %cst_81 = arith.constant 0xFF800000 : f32
      %157 = vector.broadcast %cst_81 : f32 to vector<4x16x128xf32>
      %c0_82 = arith.constant 0 : index
      %c0_83 = arith.constant 0 : index
      %c0_84 = arith.constant 0 : index
      %158 = vector.load %arg7[%c0_82, %c0_83, %c0_84] : memref<4x16x128xf32, #tpu.memory_space<vmem>>, vector<4x16x128xf32>
      tpu.vector_store %arg7[%c0_82, %c0_83, %c0_84], %157 {strides = array<i32>} : memref<4x16x128xf32, #tpu.memory_space<vmem>>, vector<4x16x128xf32>,
      %cst_85 = arith.constant 0.000000e+00 : f32
      %159 = vector.broadcast %cst_85 : f32 to vector<4x16x128xf32>
      %c0_86 = arith.constant 0 : index
      %c0_87 = arith.constant 0 : index
      %c0_88 = arith.constant 0 : index
      %160 = vector.load %arg8[%c0_86, %c0_87, %c0_88] : memref<4x16x128xf32, #tpu.memory_space<vmem>>, vector<4x16x128xf32>
      tpu.vector_store %arg8[%c0_86, %c0_87, %c0_88], %159 {strides = array<i32>} : memref<4x16x128xf32, #tpu.memory_space<vmem>>, vector<4x16x128xf32>,
      %cst_89 = arith.constant 0.000000e+00 : f32
      %161 = vector.broadcast %cst_89 : f32 to vector<16x32xf32>
      %c0_90 = arith.constant 0 : index
      %c0_91 = arith.constant 0 : index
      %162 = vector.load %arg9[%c0_90, %c0_91] : memref<16x32xf32, #tpu.memory_space<vmem>>, vector<16x32xf32>
      tpu.vector_store %arg9[%c0_90, %c0_91], %161 {strides = array<i32>} : memref<16x32xf32, #tpu.memory_space<vmem>>, vector<16x32xf32>,
    } else {
    }
    %c0 = arith.constant 0 : index
    %c0_1 = arith.constant 0 : index
    %3 = vector.load %arg3[%c0, %c0_1] : memref<16x32xbf16, #tpu.memory_space<vmem>>, vector<16x32xbf16>
    %c0_2 = arith.constant 0 : index
    %c0_3 = arith.constant 0 : index
    %4 = vector.load %arg4[%c0_2, %c0_3] : memref<8x32xbf16, #tpu.memory_space<vmem>>, vector<8x32xbf16>
    %c0_4 = arith.constant 0 : index
    %c0_5 = arith.constant 0 : index
    %5 = vector.load %arg5[%c0_4, %c0_5] : memref<8x32xbf16, #tpu.memory_space<vmem>>, vector<8x32xbf16>
    %6 = vector.extract_strided_slice %3 {offsets = [0, 0], sizes = [16, 8], strides = [1, 1]} : vector<16x32xbf16> to vector<16x8xbf16>
    %7 = vector.extract_strided_slice %4 {offsets = [0, 0], sizes = [8, 8], strides = [1, 1]} : vector<8x32xbf16> to vector<8x8xbf16>
    %cst = arith.constant dense<0.000000e+00> : vector<16x8xf32>
    %8 = tpu.matmul %6, %7, %cst {dimension_numbers = #tpu.dot_dimension_numbers<[1], [1], [0], [0], [0, 0, 1, 0], [], []>} : vector<16x8xbf16>, vector<8x8xbf16>, vector<16x8xf32> -> vector<16x8xf32>
    %c0_6 = arith.constant 0 : index
    %c0_7 = arith.constant 0 : index
    %c0_8 = arith.constant 0 : index
    %9 = vector.load %arg7[%c0_6, %c0_7, %c0_8] : memref<4x16x128xf32, #tpu.memory_space<vmem>>, vector<1x16x128xf32>
    %10 = vector.shape_cast %9 : vector<1x16x128xf32> to vector<16x128xf32>
    %cst_9 = arith.constant dense<0xFF800000> : vector<16xf32>
    %11 = vector.multi_reduction <maximumf>, %8, %cst_9 [1] : vector<16x8xf32> to vector<16xf32>
    %12 = vector.shape_cast %11 : vector<16xf32> to vector<16x1xf32>
    %13 = vector.broadcast %12 : vector<16x1xf32> to vector<16x128xf32>
    %14 = arith.maximumf %10, %13 : vector<16x128xf32>
    %15 = arith.subf %10, %14 : vector<16x128xf32>
    %16 = math.exp %15 : vector<16x128xf32>
    %17 = vector.extract_strided_slice %14 {offsets = [0, 0], sizes = [16, 1], strides = [1, 1]} : vector<16x128xf32> to vector<16x1xf32>
    %18 = vector.broadcast %17 : vector<16x1xf32> to vector<16x8xf32>
    %19 = arith.subf %8, %18 : vector<16x8xf32>
    %20 = math.exp %19 : vector<16x8xf32>
    %c0_10 = arith.constant 0 : index
    %c0_11 = arith.constant 0 : index
    %c0_12 = arith.constant 0 : index
    %21 = vector.load %arg8[%c0_10, %c0_11, %c0_12] : memref<4x16x128xf32, #tpu.memory_space<vmem>>, vector<1x16x128xf32>
    %22 = vector.shape_cast %21 : vector<1x16x128xf32> to vector<16x128xf32>
    %23 = arith.mulf %16, %22 : vector<16x128xf32>
    %cst_13 = arith.constant dense<0.000000e+00> : vector<16xf32>
    %24 = vector.multi_reduction <add>, %20, %cst_13 [1] : vector<16x8xf32> to vector<16xf32>
    %25 = vector.shape_cast %24 : vector<16xf32> to vector<16x1xf32>
    %26 = vector.broadcast %25 : vector<16x1xf32> to vector<16x128xf32>
    %27 = arith.addf %23, %26 : vector<16x128xf32>
    %c0_14 = arith.constant 0 : index
    %c0_15 = arith.constant 0 : index
    %c0_16 = arith.constant 0 : index
    %28 = vector.load %arg8[%c0_14, %c0_15, %c0_16] : memref<4x16x128xf32, #tpu.memory_space<vmem>>, vector<1x16x128xf32>
    %29 = vector.shape_cast %28 : vector<1x16x128xf32> to vector<16x128xf32>
    %30 = vector.shape_cast %27 : vector<16x128xf32> to vector<1x16x128xf32>
    tpu.vector_store %arg8[%c0_14, %c0_15, %c0_16], %30 {strides = array<i32>} : memref<4x16x128xf32, #tpu.memory_space<vmem>>, vector<1x16x128xf32>,
    %c0_17 = arith.constant 0 : index
    %c0_18 = arith.constant 0 : index
    %c0_19 = arith.constant 0 : index
    %31 = vector.load %arg7[%c0_17, %c0_18, %c0_19] : memref<4x16x128xf32, #tpu.memory_space<vmem>>, vector<1x16x128xf32>
    %32 = vector.shape_cast %31 : vector<1x16x128xf32> to vector<16x128xf32>
    %33 = vector.shape_cast %14 : vector<16x128xf32> to vector<1x16x128xf32>
    tpu.vector_store %arg7[%c0_17, %c0_18, %c0_19], %33 {strides = array<i32>} : memref<4x16x128xf32, #tpu.memory_space<vmem>>, vector<1x16x128xf32>,
    %34 = vector.extract_strided_slice %16 {offsets = [0, 0], sizes = [16, 1], strides = [1, 1]} : vector<16x128xf32> to vector<16x1xf32>
    %c0_20 = arith.constant 0 : index
    %c0_21 = arith.constant 0 : index
    %35 = vector.load %arg9[%c0_20, %c0_21] : memref<16x32xf32, #tpu.memory_space<vmem>>, vector<16x8xf32>
    %36 = vector.broadcast %34 : vector<16x1xf32> to vector<16x8xf32>
    %37 = arith.mulf %36, %35 : vector<16x8xf32>
    %38 = arith.truncf %20 : vector<16x8xf32> to vector<16x8xbf16>
    %39 = vector.extract_strided_slice %5 {offsets = [0, 0], sizes = [8, 8], strides = [1, 1]} : vector<8x32xbf16> to vector<8x8xbf16>
    %cst_22 = arith.constant dense<0.000000e+00> : vector<16x8xf32>
    %40 = tpu.matmul %38, %39, %cst_22 {dimension_numbers = #tpu.dot_dimension_numbers<[1], [0], [0], [1], [0, 0, 1, 1], [], []>} : vector<16x8xbf16>, vector<8x8xbf16>, vector<16x8xf32> -> vector<16x8xf32>
    %41 = arith.addf %37, %40 : vector<16x8xf32>
    %c0_23 = arith.constant 0 : index
    %c0_24 = arith.constant 0 : index
    %42 = vector.load %arg9[%c0_23, %c0_24] : memref<16x32xf32, #tpu.memory_space<vmem>>, vector<16x8xf32>
    tpu.vector_store %arg9[%c0_23, %c0_24], %41 {strides = array<i32>} : memref<16x32xf32, #tpu.memory_space<vmem>>, vector<16x8xf32>,
    %43 = vector.extract_strided_slice %3 {offsets = [0, 8], sizes = [16, 8], strides = [1, 1]} : vector<16x32xbf16> to vector<16x8xbf16>
    %44 = vector.extract_strided_slice %4 {offsets = [0, 8], sizes = [8, 8], strides = [1, 1]} : vector<8x32xbf16> to vector<8x8xbf16>
    %cst_25 = arith.constant dense<0.000000e+00> : vector<16x8xf32>
    %45 = tpu.matmul %43, %44, %cst_25 {dimension_numbers = #tpu.dot_dimension_numbers<[1], [1], [0], [0], [0, 0, 1, 0], [], []>} : vector<16x8xbf16>, vector<8x8xbf16>, vector<16x8xf32> -> vector<16x8xf32>
    %c1 = arith.constant 1 : index
    %c0_26 = arith.constant 0 : index
    %c0_27 = arith.constant 0 : index
    %46 = vector.load %arg7[%c1, %c0_26, %c0_27] : memref<4x16x128xf32, #tpu.memory_space<vmem>>, vector<1x16x128xf32>
    %47 = vector.shape_cast %46 : vector<1x16x128xf32> to vector<16x128xf32>
    %cst_28 = arith.constant dense<0xFF800000> : vector<16xf32>
    %48 = vector.multi_reduction <maximumf>, %45, %cst_28 [1] : vector<16x8xf32> to vector<16xf32>
    %49 = vector.shape_cast %48 : vector<16xf32> to vector<16x1xf32>
    %50 = vector.broadcast %49 : vector<16x1xf32> to vector<16x128xf32>
    %51 = arith.maximumf %47, %50 : vector<16x128xf32>
    %52 = arith.subf %47, %51 : vector<16x128xf32>
    %53 = math.exp %52 : vector<16x128xf32>
    %54 = vector.extract_strided_slice %51 {offsets = [0, 0], sizes = [16, 1], strides = [1, 1]} : vector<16x128xf32> to vector<16x1xf32>
    %55 = vector.broadcast %54 : vector<16x1xf32> to vector<16x8xf32>
    %56 = arith.subf %45, %55 : vector<16x8xf32>
    %57 = math.exp %56 : vector<16x8xf32>
    %c1_29 = arith.constant 1 : index
    %c0_30 = arith.constant 0 : index
    %c0_31 = arith.constant 0 : index
    %58 = vector.load %arg8[%c1_29, %c0_30, %c0_31] : memref<4x16x128xf32, #tpu.memory_space<vmem>>, vector<1x16x128xf32>
    %59 = vector.shape_cast %58 : vector<1x16x128xf32> to vector<16x128xf32>
    %60 = arith.mulf %53, %59 : vector<16x128xf32>
    %cst_32 = arith.constant dense<0.000000e+00> : vector<16xf32>
    %61 = vector.multi_reduction <add>, %57, %cst_32 [1] : vector<16x8xf32> to vector<16xf32>
    %62 = vector.shape_cast %61 : vector<16xf32> to vector<16x1xf32>
    %63 = vector.broadcast %62 : vector<16x1xf32> to vector<16x128xf32>
    %64 = arith.addf %60, %63 : vector<16x128xf32>
    %c1_33 = arith.constant 1 : index
    %c0_34 = arith.constant 0 : index
    %c0_35 = arith.constant 0 : index
    %65 = vector.load %arg8[%c1_33, %c0_34, %c0_35] : memref<4x16x128xf32, #tpu.memory_space<vmem>>, vector<1x16x128xf32>
    %66 = vector.shape_cast %65 : vector<1x16x128xf32> to vector<16x128xf32>
    %67 = vector.shape_cast %64 : vector<16x128xf32> to vector<1x16x128xf32>
    tpu.vector_store %arg8[%c1_33, %c0_34, %c0_35], %67 {strides = array<i32>} : memref<4x16x128xf32, #tpu.memory_space<vmem>>, vector<1x16x128xf32>,
    %c1_36 = arith.constant 1 : index
    %c0_37 = arith.constant 0 : index
    %c0_38 = arith.constant 0 : index
    %68 = vector.load %arg7[%c1_36, %c0_37, %c0_38] : memref<4x16x128xf32, #tpu.memory_space<vmem>>, vector<1x16x128xf32>
    %69 = vector.shape_cast %68 : vector<1x16x128xf32> to vector<16x128xf32>
    %70 = vector.shape_cast %51 : vector<16x128xf32> to vector<1x16x128xf32>
    tpu.vector_store %arg7[%c1_36, %c0_37, %c0_38], %70 {strides = array<i32>} : memref<4x16x128xf32, #tpu.memory_space<vmem>>, vector<1x16x128xf32>,
    %71 = vector.extract_strided_slice %53 {offsets = [0, 0], sizes = [16, 1], strides = [1, 1]} : vector<16x128xf32> to vector<16x1xf32>
    %c0_39 = arith.constant 0 : index
    %c8 = arith.constant 8 : index
    %72 = vector.load %arg9[%c0_39, %c8] : memref<16x32xf32, #tpu.memory_space<vmem>>, vector<16x8xf32>
    %73 = vector.broadcast %71 : vector<16x1xf32> to vector<16x8xf32>
    %74 = arith.mulf %73, %72 : vector<16x8xf32>
    %75 = arith.truncf %57 : vector<16x8xf32> to vector<16x8xbf16>
    %76 = vector.extract_strided_slice %5 {offsets = [0, 8], sizes = [8, 8], strides = [1, 1]} : vector<8x32xbf16> to vector<8x8xbf16>
    %cst_40 = arith.constant dense<0.000000e+00> : vector<16x8xf32>
    %77 = tpu.matmul %75, %76, %cst_40 {dimension_numbers = #tpu.dot_dimension_numbers<[1], [0], [0], [1], [0, 0, 1, 1], [], []>} : vector<16x8xbf16>, vector<8x8xbf16>, vector<16x8xf32> -> vector<16x8xf32>
    %78 = arith.addf %74, %77 : vector<16x8xf32>
    %c0_41 = arith.constant 0 : index
    %c8_42 = arith.constant 8 : index
    %79 = vector.load %arg9[%c0_41, %c8_42] : memref<16x32xf32, #tpu.memory_space<vmem>>, vector<16x8xf32>
    tpu.vector_store %arg9[%c0_41, %c8_42], %78 {strides = array<i32>} : memref<16x32xf32, #tpu.memory_space<vmem>>, vector<16x8xf32>,
    %80 = vector.extract_strided_slice %3 {offsets = [0, 16], sizes = [16, 8], strides = [1, 1]} : vector<16x32xbf16> to vector<16x8xbf16>
    %81 = vector.extract_strided_slice %4 {offsets = [0, 16], sizes = [8, 8], strides = [1, 1]} : vector<8x32xbf16> to vector<8x8xbf16>
    %cst_43 = arith.constant dense<0.000000e+00> : vector<16x8xf32>
    %82 = tpu.matmul %80, %81, %cst_43 {dimension_numbers = #tpu.dot_dimension_numbers<[1], [1], [0], [0], [0, 0, 1, 0], [], []>} : vector<16x8xbf16>, vector<8x8xbf16>, vector<16x8xf32> -> vector<16x8xf32>
    %c2 = arith.constant 2 : index
    %c0_44 = arith.constant 0 : index
    %c0_45 = arith.constant 0 : index
    %83 = vector.load %arg7[%c2, %c0_44, %c0_45] : memref<4x16x128xf32, #tpu.memory_space<vmem>>, vector<1x16x128xf32>
    %84 = vector.shape_cast %83 : vector<1x16x128xf32> to vector<16x128xf32>
    %cst_46 = arith.constant dense<0xFF800000> : vector<16xf32>
    %85 = vector.multi_reduction <maximumf>, %82, %cst_46 [1] : vector<16x8xf32> to vector<16xf32>
    %86 = vector.shape_cast %85 : vector<16xf32> to vector<16x1xf32>
    %87 = vector.broadcast %86 : vector<16x1xf32> to vector<16x128xf32>
    %88 = arith.maximumf %84, %87 : vector<16x128xf32>
    %89 = arith.subf %84, %88 : vector<16x128xf32>
    %90 = math.exp %89 : vector<16x128xf32>
    %91 = vector.extract_strided_slice %88 {offsets = [0, 0], sizes = [16, 1], strides = [1, 1]} : vector<16x128xf32> to vector<16x1xf32>
    %92 = vector.broadcast %91 : vector<16x1xf32> to vector<16x8xf32>
    %93 = arith.subf %82, %92 : vector<16x8xf32>
    %94 = math.exp %93 : vector<16x8xf32>
    %c2_47 = arith.constant 2 : index
    %c0_48 = arith.constant 0 : index
    %c0_49 = arith.constant 0 : index
    %95 = vector.load %arg8[%c2_47, %c0_48, %c0_49] : memref<4x16x128xf32, #tpu.memory_space<vmem>>, vector<1x16x128xf32>
    %96 = vector.shape_cast %95 : vector<1x16x128xf32> to vector<16x128xf32>
    %97 = arith.mulf %90, %96 : vector<16x128xf32>
    %cst_50 = arith.constant dense<0.000000e+00> : vector<16xf32>
    %98 = vector.multi_reduction <add>, %94, %cst_50 [1] : vector<16x8xf32> to vector<16xf32>
    %99 = vector.shape_cast %98 : vector<16xf32> to vector<16x1xf32>
    %100 = vector.broadcast %99 : vector<16x1xf32> to vector<16x128xf32>
    %101 = arith.addf %97, %100 : vector<16x128xf32>
    %c2_51 = arith.constant 2 : index
    %c0_52 = arith.constant 0 : index
    %c0_53 = arith.constant 0 : index
    %102 = vector.load %arg8[%c2_51, %c0_52, %c0_53] : memref<4x16x128xf32, #tpu.memory_space<vmem>>, vector<1x16x128xf32>
    %103 = vector.shape_cast %102 : vector<1x16x128xf32> to vector<16x128xf32>
    %104 = vector.shape_cast %101 : vector<16x128xf32> to vector<1x16x128xf32>
    tpu.vector_store %arg8[%c2_51, %c0_52, %c0_53], %104 {strides = array<i32>} : memref<4x16x128xf32, #tpu.memory_space<vmem>>, vector<1x16x128xf32>,
    %c2_54 = arith.constant 2 : index
    %c0_55 = arith.constant 0 : index
    %c0_56 = arith.constant 0 : index
    %105 = vector.load %arg7[%c2_54, %c0_55, %c0_56] : memref<4x16x128xf32, #tpu.memory_space<vmem>>, vector<1x16x128xf32>
    %106 = vector.shape_cast %105 : vector<1x16x128xf32> to vector<16x128xf32>
    %107 = vector.shape_cast %88 : vector<16x128xf32> to vector<1x16x128xf32>
    tpu.vector_store %arg7[%c2_54, %c0_55, %c0_56], %107 {strides = array<i32>} : memref<4x16x128xf32, #tpu.memory_space<vmem>>, vector<1x16x128xf32>,
    %108 = vector.extract_strided_slice %90 {offsets = [0, 0], sizes = [16, 1], strides = [1, 1]} : vector<16x128xf32> to vector<16x1xf32>
    %c0_57 = arith.constant 0 : index
    %c16 = arith.constant 16 : index
    %109 = vector.load %arg9[%c0_57, %c16] : memref<16x32xf32, #tpu.memory_space<vmem>>, vector<16x8xf32>
    %110 = vector.broadcast %108 : vector<16x1xf32> to vector<16x8xf32>
    %111 = arith.mulf %110, %109 : vector<16x8xf32>
    %112 = arith.truncf %94 : vector<16x8xf32> to vector<16x8xbf16>
    %113 = vector.extract_strided_slice %5 {offsets = [0, 16], sizes = [8, 8], strides = [1, 1]} : vector<8x32xbf16> to vector<8x8xbf16>
    %cst_58 = arith.constant dense<0.000000e+00> : vector<16x8xf32>
    %114 = tpu.matmul %112, %113, %cst_58 {dimension_numbers = #tpu.dot_dimension_numbers<[1], [0], [0], [1], [0, 0, 1, 1], [], []>} : vector<16x8xbf16>, vector<8x8xbf16>, vector<16x8xf32> -> vector<16x8xf32>
    %115 = arith.addf %111, %114 : vector<16x8xf32>
    %c0_59 = arith.constant 0 : index
    %c16_60 = arith.constant 16 : index
    %116 = vector.load %arg9[%c0_59, %c16_60] : memref<16x32xf32, #tpu.memory_space<vmem>>, vector<16x8xf32>
    tpu.vector_store %arg9[%c0_59, %c16_60], %115 {strides = array<i32>} : memref<16x32xf32, #tpu.memory_space<vmem>>, vector<16x8xf32>,
    %117 = vector.extract_strided_slice %3 {offsets = [0, 24], sizes = [16, 8], strides = [1, 1]} : vector<16x32xbf16> to vector<16x8xbf16>
    %118 = vector.extract_strided_slice %4 {offsets = [0, 24], sizes = [8, 8], strides = [1, 1]} : vector<8x32xbf16> to vector<8x8xbf16>
    %cst_61 = arith.constant dense<0.000000e+00> : vector<16x8xf32>
    %119 = tpu.matmul %117, %118, %cst_61 {dimension_numbers = #tpu.dot_dimension_numbers<[1], [1], [0], [0], [0, 0, 1, 0], [], []>} : vector<16x8xbf16>, vector<8x8xbf16>, vector<16x8xf32> -> vector<16x8xf32>
    %c3 = arith.constant 3 : index
    %c0_62 = arith.constant 0 : index
    %c0_63 = arith.constant 0 : index
    %120 = vector.load %arg7[%c3, %c0_62, %c0_63] : memref<4x16x128xf32, #tpu.memory_space<vmem>>, vector<1x16x128xf32>
    %121 = vector.shape_cast %120 : vector<1x16x128xf32> to vector<16x128xf32>
    %cst_64 = arith.constant dense<0xFF800000> : vector<16xf32>
    %122 = vector.multi_reduction <maximumf>, %119, %cst_64 [1] : vector<16x8xf32> to vector<16xf32>
    %123 = vector.shape_cast %122 : vector<16xf32> to vector<16x1xf32>
    %124 = vector.broadcast %123 : vector<16x1xf32> to vector<16x128xf32>
    %125 = arith.maximumf %121, %124 : vector<16x128xf32>
    %126 = arith.subf %121, %125 : vector<16x128xf32>
    %127 = math.exp %126 : vector<16x128xf32>
    %128 = vector.extract_strided_slice %125 {offsets = [0, 0], sizes = [16, 1], strides = [1, 1]} : vector<16x128xf32> to vector<16x1xf32>
    %129 = vector.broadcast %128 : vector<16x1xf32> to vector<16x8xf32>
    %130 = arith.subf %119, %129 : vector<16x8xf32>
    %131 = math.exp %130 : vector<16x8xf32>
    %c3_65 = arith.constant 3 : index
    %c0_66 = arith.constant 0 : index
    %c0_67 = arith.constant 0 : index
    %132 = vector.load %arg8[%c3_65, %c0_66, %c0_67] : memref<4x16x128xf32, #tpu.memory_space<vmem>>, vector<1x16x128xf32>
    %133 = vector.shape_cast %132 : vector<1x16x128xf32> to vector<16x128xf32>
    %134 = arith.mulf %127, %133 : vector<16x128xf32>
    %cst_68 = arith.constant dense<0.000000e+00> : vector<16xf32>
    %135 = vector.multi_reduction <add>, %131, %cst_68 [1] : vector<16x8xf32> to vector<16xf32>
    %136 = vector.shape_cast %135 : vector<16xf32> to vector<16x1xf32>
    %137 = vector.broadcast %136 : vector<16x1xf32> to vector<16x128xf32>
    %138 = arith.addf %134, %137 : vector<16x128xf32>
    %c3_69 = arith.constant 3 : index
    %c0_70 = arith.constant 0 : index
    %c0_71 = arith.constant 0 : index
    %139 = vector.load %arg8[%c3_69, %c0_70, %c0_71] : memref<4x16x128xf32, #tpu.memory_space<vmem>>, vector<1x16x128xf32>
    %140 = vector.shape_cast %139 : vector<1x16x128xf32> to vector<16x128xf32>
    %141 = vector.shape_cast %138 : vector<16x128xf32> to vector<1x16x128xf32>
    tpu.vector_store %arg8[%c3_69, %c0_70, %c0_71], %141 {strides = array<i32>} : memref<4x16x128xf32, #tpu.memory_space<vmem>>, vector<1x16x128xf32>,
    %c3_72 = arith.constant 3 : index
    %c0_73 = arith.constant 0 : index
    %c0_74 = arith.constant 0 : index
    %142 = vector.load %arg7[%c3_72, %c0_73, %c0_74] : memref<4x16x128xf32, #tpu.memory_space<vmem>>, vector<1x16x128xf32>
    %143 = vector.shape_cast %142 : vector<1x16x128xf32> to vector<16x128xf32>
    %144 = vector.shape_cast %125 : vector<16x128xf32> to vector<1x16x128xf32>
    tpu.vector_store %arg7[%c3_72, %c0_73, %c0_74], %144 {strides = array<i32>} : memref<4x16x128xf32, #tpu.memory_space<vmem>>, vector<1x16x128xf32>,
    %145 = vector.extract_strided_slice %127 {offsets = [0, 0], sizes = [16, 1], strides = [1, 1]} : vector<16x128xf32> to vector<16x1xf32>
    %c0_75 = arith.constant 0 : index
    %c24 = arith.constant 24 : index
    %146 = vector.load %arg9[%c0_75, %c24] : memref<16x32xf32, #tpu.memory_space<vmem>>, vector<16x8xf32>
    %147 = vector.broadcast %145 : vector<16x1xf32> to vector<16x8xf32>
    %148 = arith.mulf %147, %146 : vector<16x8xf32>
    %149 = arith.truncf %131 : vector<16x8xf32> to vector<16x8xbf16>
    %150 = vector.extract_strided_slice %5 {offsets = [0, 24], sizes = [8, 8], strides = [1, 1]} : vector<8x32xbf16> to vector<8x8xbf16>
    %cst_76 = arith.constant dense<0.000000e+00> : vector<16x8xf32>
    %151 = tpu.matmul %149, %150, %cst_76 {dimension_numbers = #tpu.dot_dimension_numbers<[1], [0], [0], [1], [0, 0, 1, 1], [], []>} : vector<16x8xbf16>, vector<8x8xbf16>, vector<16x8xf32> -> vector<16x8xf32>
    %152 = arith.addf %148, %151 : vector<16x8xf32>
    %c0_77 = arith.constant 0 : index
    %c24_78 = arith.constant 24 : index
    %153 = vector.load %arg9[%c0_77, %c24_78] : memref<16x32xf32, #tpu.memory_space<vmem>>, vector<16x8xf32>
    tpu.vector_store %arg9[%c0_77, %c24_78], %152 {strides = array<i32>} : memref<16x32xf32, #tpu.memory_space<vmem>>, vector<16x8xf32>,
    %c0_i32_79 = arith.constant 0 : i32
    %154 = arith.cmpi eq, %arg2, %c0_i32_79 : i32
    %155 = arith.extui %154 : i1 to i32
    %c0_i32_80 = arith.constant 0 : i32
    %156 = arith.cmpi ne, %155, %c0_i32_80 : i32
    scf.if %156 {
      %c0_81 = arith.constant 0 : index
      %c0_82 = arith.constant 0 : index
      %c0_83 = arith.constant 0 : index
      %157 = vector.load %arg8[%c0_81, %c0_82, %c0_83] : memref<4x16x128xf32, #tpu.memory_space<vmem>>, vector<1x16x128xf32>
      %158 = vector.shape_cast %157 : vector<1x16x128xf32> to vector<16x128xf32>
      %159 = vector.extract_strided_slice %158 {offsets = [0, 0], sizes = [16, 1], strides = [1, 1]} : vector<16x128xf32> to vector<16x1xf32>
      %160 = tpu.reciprocal %159 {approx = true} : vector<16x1xf32> -> vector<16x1xf32>
      %c0_84 = arith.constant 0 : index
      %c0_85 = arith.constant 0 : index
      %161 = vector.load %arg9[%c0_84, %c0_85] : memref<16x32xf32, #tpu.memory_space<vmem>>, vector<16x8xf32>
      %162 = vector.broadcast %160 : vector<16x1xf32> to vector<16x8xf32>
      %163 = arith.mulf %161, %162 : vector<16x8xf32>
      %164 = arith.truncf %163 : vector<16x8xf32> to vector<16x8xbf16>
      %c0_86 = arith.constant 0 : index
      %c0_87 = arith.constant 0 : index
      %165 = vector.load %arg6[%c0_86, %c0_87] : memref<16x32xbf16, #tpu.memory_space<vmem>>, vector<16x8xbf16>
      tpu.vector_store %arg6[%c0_86, %c0_87], %164 {strides = array<i32>} : memref<16x32xbf16, #tpu.memory_space<vmem>>, vector<16x8xbf16>,
      %c1_88 = arith.constant 1 : index
      %c0_89 = arith.constant 0 : index
      %c0_90 = arith.constant 0 : index
      %166 = vector.load %arg8[%c1_88, %c0_89, %c0_90] : memref<4x16x128xf32, #tpu.memory_space<vmem>>, vector<1x16x128xf32>
      %167 = vector.shape_cast %166 : vector<1x16x128xf32> to vector<16x128xf32>
      %168 = vector.extract_strided_slice %167 {offsets = [0, 0], sizes = [16, 1], strides = [1, 1]} : vector<16x128xf32> to vector<16x1xf32>
      %169 = tpu.reciprocal %168 {approx = true} : vector<16x1xf32> -> vector<16x1xf32>
      %c0_91 = arith.constant 0 : index
      %c8_92 = arith.constant 8 : index
      %170 = vector.load %arg9[%c0_91, %c8_92] : memref<16x32xf32, #tpu.memory_space<vmem>>, vector<16x8xf32>
      %171 = vector.broadcast %169 : vector<16x1xf32> to vector<16x8xf32>
      %172 = arith.mulf %170, %171 : vector<16x8xf32>
      %173 = arith.truncf %172 : vector<16x8xf32> to vector<16x8xbf16>
      %c0_93 = arith.constant 0 : index
      %c8_94 = arith.constant 8 : index
      %174 = vector.load %arg6[%c0_93, %c8_94] : memref<16x32xbf16, #tpu.memory_space<vmem>>, vector<16x8xbf16>
      tpu.vector_store %arg6[%c0_93, %c8_94], %173 {strides = array<i32>} : memref<16x32xbf16, #tpu.memory_space<vmem>>, vector<16x8xbf16>,
      %c2_95 = arith.constant 2 : index
      %c0_96 = arith.constant 0 : index
      %c0_97 = arith.constant 0 : index
      %175 = vector.load %arg8[%c2_95, %c0_96, %c0_97] : memref<4x16x128xf32, #tpu.memory_space<vmem>>, vector<1x16x128xf32>
      %176 = vector.shape_cast %175 : vector<1x16x128xf32> to vector<16x128xf32>
      %177 = vector.extract_strided_slice %176 {offsets = [0, 0], sizes = [16, 1], strides = [1, 1]} : vector<16x128xf32> to vector<16x1xf32>
      %178 = tpu.reciprocal %177 {approx = true} : vector<16x1xf32> -> vector<16x1xf32>
      %c0_98 = arith.constant 0 : index
      %c16_99 = arith.constant 16 : index
      %179 = vector.load %arg9[%c0_98, %c16_99] : memref<16x32xf32, #tpu.memory_space<vmem>>, vector<16x8xf32>
      %180 = vector.broadcast %178 : vector<16x1xf32> to vector<16x8xf32>
      %181 = arith.mulf %179, %180 : vector<16x8xf32>
      %182 = arith.truncf %181 : vector<16x8xf32> to vector<16x8xbf16>
      %c0_100 = arith.constant 0 : index
      %c16_101 = arith.constant 16 : index
      %183 = vector.load %arg6[%c0_100, %c16_101] : memref<16x32xbf16, #tpu.memory_space<vmem>>, vector<16x8xbf16>
      tpu.vector_store %arg6[%c0_100, %c16_101], %182 {strides = array<i32>} : memref<16x32xbf16, #tpu.memory_space<vmem>>, vector<16x8xbf16>,
      %c3_102 = arith.constant 3 : index
      %c0_103 = arith.constant 0 : index
      %c0_104 = arith.constant 0 : index
      %184 = vector.load %arg8[%c3_102, %c0_103, %c0_104] : memref<4x16x128xf32, #tpu.memory_space<vmem>>, vector<1x16x128xf32>
      %185 = vector.shape_cast %184 : vector<1x16x128xf32> to vector<16x128xf32>
      %186 = vector.extract_strided_slice %185 {offsets = [0, 0], sizes = [16, 1], strides = [1, 1]} : vector<16x128xf32> to vector<16x1xf32>
      %187 = tpu.reciprocal %186 {approx = true} : vector<16x1xf32> -> vector<16x1xf32>
      %c0_105 = arith.constant 0 : index
      %c24_106 = arith.constant 24 : index
      %188 = vector.load %arg9[%c0_105, %c24_106] : memref<16x32xf32, #tpu.memory_space<vmem>>, vector<16x8xf32>
      %189 = vector.broadcast %187 : vector<16x1xf32> to vector<16x8xf32>
      %190 = arith.mulf %188, %189 : vector<16x8xf32>
      %191 = arith.truncf %190 : vector<16x8xf32> to vector<16x8xbf16>
      %c0_107 = arith.constant 0 : index
      %c24_108 = arith.constant 24 : index
      %192 = vector.load %arg6[%c0_107, %c24_108] : memref<16x32xbf16, #tpu.memory_space<vmem>>, vector<16x8xbf16>
      tpu.vector_store %arg6[%c0_107, %c24_108], %191 {strides = array<i32>} : memref<16x32xbf16, #tpu.memory_space<vmem>>, vector<16x8xbf16>,
    } else {
    }
    return
  }
  func.func @transform_0(%arg0: i32, %arg1: i32, %arg2: i32) -> (i32, i32) {
    %c1_i32 = arith.constant 1 : i32
    %0 = arith.muli %arg0, %c1_i32 : i32
    %1 = arith.addi %0, %arg1 : i32
    %c0_i32 = arith.constant 0 : i32
    %c0_i32_0 = arith.constant 0 : i32
    return %1, %c0_i32 : i32, i32
  }
  func.func @transform_1(%arg0: i32, %arg1: i32, %arg2: i32) -> (i32, i32) {
    %c1_i32 = arith.constant 1 : i32
    %0 = arith.muli %arg0, %c1_i32 : i32
    %1 = arith.addi %0, %arg2 : i32
    %c0_i32 = arith.constant 0 : i32
    %c0_i32_0 = arith.constant 0 : i32
    return %1, %c0_i32 : i32, i32
  }
  func.func @transform_2(%arg0: i32, %arg1: i32, %arg2: i32) -> (i32, i32) {
    %c1_i32 = arith.constant 1 : i32
    %0 = arith.muli %arg0, %c1_i32 : i32
    %1 = arith.addi %0, %arg2 : i32
    %c0_i32 = arith.constant 0 : i32
    %c0_i32_0 = arith.constant 0 : i32
    return %1, %c0_i32 : i32, i32
  }
  func.func @transform_3(%arg0: i32, %arg1: i32, %arg2: i32) -> (i32, i32) {
    %c1_i32 = arith.constant 1 : i32
    %0 = arith.muli %arg0, %c1_i32 : i32
    %1 = arith.addi %0, %arg1 : i32
    %c0_i32 = arith.constant 0 : i32
    %c0_i32_0 = arith.constant 0 : i32
    return %1, %c0_i32 : i32, i32
  }
}

module attributes {stable_mosaic.version = 11 : i64} {
  func.func @_out_res_ln_ff_kernel(%arg0: i32, %arg1: i32, %arg2: memref<32x32xbf16, #tpu.memory_space<vmem>>, %arg3: memref<32x32xbf16, #tpu.memory_space<vmem>>, %arg4: memref<1x32xf32, #tpu.memory_space<vmem>>, %arg5: memref<32x32xf32, #tpu.memory_space<vmem>>, %arg6: memref<1x32xf32, #tpu.memory_space<vmem>>, %arg7: memref<1x32xf32, #tpu.memory_space<vmem>>, %arg8: memref<32x128xbf16, #tpu.memory_space<vmem>>, %arg9: memref<1x128xf32, #tpu.memory_space<vmem>>, %arg10: memref<32x128xbf16, #tpu.memory_space<vmem>>, %arg11: memref<1x128xf32, #tpu.memory_space<vmem>>, %arg12: memref<128x32xbf16, #tpu.memory_space<vmem>>, %arg13: memref<1x32xf32, #tpu.memory_space<vmem>>, %arg14: memref<32x32xf32, #tpu.memory_space<vmem>>, %arg15: memref<32x32xf32, #tpu.memory_space<vmem>>, %arg16: memref<32x32xbf16, #tpu.memory_space<vmem>>) attributes {dimension_semantics = [#tpu.dimension_semantics<parallel>, #tpu.dimension_semantics<arbitrary>], iteration_bounds = array<i64: 1, 1>, scalar_prefetch = 0 : i64, scratch_operands = 2 : i64, tpu.core_type = #tpu.core_type<tc>, window_params = [{transform_indices = @transform_0, window_bounds = array<i64: 32, 32>}, {pipeline_mode = #tpu.pipeline_mode<synchronous>, transform_indices = @transform_1, window_bounds = array<i64: 32, 32>}, {pipeline_mode = #tpu.pipeline_mode<synchronous>, transform_indices = @transform_2, window_bounds = array<i64: 1, 32>}, {transform_indices = @transform_3, window_bounds = array<i64: 32, 32>}, {pipeline_mode = #tpu.pipeline_mode<synchronous>, transform_indices = @transform_4, window_bounds = array<i64: 1, 32>}, {pipeline_mode = #tpu.pipeline_mode<synchronous>, transform_indices = @transform_5, window_bounds = array<i64: 1, 32>}, {transform_indices = @transform_6, window_bounds = array<i64: 32, 128>}, {transform_indices = @transform_7, window_bounds = array<i64: 1, 128>}, {transform_indices = @transform_8, window_bounds = array<i64: 32, 128>}, {transform_indices = @transform_9, window_bounds = array<i64: 1, 128>}, {transform_indices = @transform_10, window_bounds = array<i64: 128, 32>}, {pipeline_mode = #tpu.pipeline_mode<synchronous>, transform_indices = @transform_11, window_bounds = array<i64: 1, 32>}, {transform_indices = @transform_12, window_bounds = array<i64: 32, 32>}]} {
    %c0_i32 = arith.constant 0 : i32
    %0 = arith.cmpi eq, %arg1, %c0_i32 : i32
    %1 = arith.extui %0 : i1 to i32
    %c0_i32_0 = arith.constant 0 : i32
    %2 = arith.cmpi ne, %1, %c0_i32_0 : i32
    scf.if %2 {
      %c0_24 = arith.constant 0 : index
      %c0_25 = arith.constant 0 : index
      %37 = vector.load %arg2[%c0_24, %c0_25] : memref<32x32xbf16, #tpu.memory_space<vmem>>, vector<32x32xbf16>
      %c0_26 = arith.constant 0 : index
      %c0_27 = arith.constant 0 : index
      %38 = vector.load %arg3[%c0_26, %c0_27] : memref<32x32xbf16, #tpu.memory_space<vmem>>, vector<32x32xbf16>
      %cst_28 = arith.constant dense<0.000000e+00> : vector<32x32xf32>
      %39 = tpu.matmul %37, %38, %cst_28 {dimension_numbers = #tpu.dot_dimension_numbers<[1], [0], [0], [1], [0, 0, 1, 1], [], []>} : vector<32x32xbf16>, vector<32x32xbf16>, vector<32x32xf32> -> vector<32x32xf32>
      %c0_29 = arith.constant 0 : index
      %c0_30 = arith.constant 0 : index
      %40 = vector.load %arg4[%c0_29, %c0_30] : memref<1x32xf32, #tpu.memory_space<vmem>>, vector<1x32xf32>
      %41 = vector.broadcast %40 : vector<1x32xf32> to vector<32x32xf32>
      %42 = arith.addf %39, %41 : vector<32x32xf32>
      %c0_31 = arith.constant 0 : index
      %c0_32 = arith.constant 0 : index
      %43 = vector.load %arg5[%c0_31, %c0_32] : memref<32x32xf32, #tpu.memory_space<vmem>>, vector<32x32xf32>
      %44 = arith.addf %42, %43 : vector<32x32xf32>
      %c0_33 = arith.constant 0 : index
      %c0_34 = arith.constant 0 : index
      %45 = vector.load %arg6[%c0_33, %c0_34] : memref<1x32xf32, #tpu.memory_space<vmem>>, vector<1x32xf32>
      %c0_35 = arith.constant 0 : index
      %c0_36 = arith.constant 0 : index
      %46 = vector.load %arg7[%c0_35, %c0_36] : memref<1x32xf32, #tpu.memory_space<vmem>>, vector<1x32xf32>
      %cst_37 = arith.constant dense<0.000000e+00> : vector<32xf32>
      %47 = vector.multi_reduction <add>, %44, %cst_37 [1] : vector<32x32xf32> to vector<32xf32>
      %48 = vector.shape_cast %47 : vector<32xf32> to vector<32x1xf32>
      %cst_38 = arith.constant 3.200000e+01 : f32
      %49 = vector.broadcast %cst_38 : f32 to vector<32x1xf32>
      %50 = arith.divf %48, %49 : vector<32x1xf32>
      %51 = vector.broadcast %50 : vector<32x1xf32> to vector<32x32xf32>
      %52 = arith.subf %44, %51 : vector<32x32xf32>
      %53 = arith.mulf %52, %52 : vector<32x32xf32>
      %cst_39 = arith.constant dense<0.000000e+00> : vector<32xf32>
      %54 = vector.multi_reduction <add>, %53, %cst_39 [1] : vector<32x32xf32> to vector<32xf32>
      %55 = vector.shape_cast %54 : vector<32xf32> to vector<32x1xf32>
      %cst_40 = arith.constant 3.200000e+01 : f32
      %56 = vector.broadcast %cst_40 : f32 to vector<32x1xf32>
      %57 = arith.divf %55, %56 : vector<32x1xf32>
      %cst_41 = arith.constant 9.99999974E-6 : f32
      %58 = vector.broadcast %cst_41 : f32 to vector<32x1xf32>
      %59 = arith.addf %57, %58 : vector<32x1xf32>
      %60 = math.rsqrt %59 : vector<32x1xf32>
      %61 = vector.broadcast %60 : vector<32x1xf32> to vector<32x32xf32>
      %62 = arith.mulf %52, %61 : vector<32x32xf32>
      %63 = vector.broadcast %45 : vector<1x32xf32> to vector<32x32xf32>
      %64 = arith.mulf %62, %63 : vector<32x32xf32>
      %65 = vector.broadcast %46 : vector<1x32xf32> to vector<32x32xf32>
      %66 = arith.addf %64, %65 : vector<32x32xf32>
      %67 = arith.truncf %66 : vector<32x32xf32> to vector<32x32xbf16>
      %c0_42 = arith.constant 0 : index
      %c0_43 = arith.constant 0 : index
      %68 = vector.load %arg16[%c0_42, %c0_43] : memref<32x32xbf16, #tpu.memory_space<vmem>>, vector<32x32xbf16>
      tpu.vector_store %arg16[%c0_42, %c0_43], %67 {strides = array<i32>} : memref<32x32xbf16, #tpu.memory_space<vmem>>, vector<32x32xbf16>,
      %c0_44 = arith.constant 0 : index
      %c0_45 = arith.constant 0 : index
      %69 = vector.load %arg13[%c0_44, %c0_45] : memref<1x32xf32, #tpu.memory_space<vmem>>, vector<1x32xf32>
      %70 = vector.broadcast %69 : vector<1x32xf32> to vector<32x32xf32>
      %71 = arith.addf %44, %70 : vector<32x32xf32>
      %c0_46 = arith.constant 0 : index
      %c0_47 = arith.constant 0 : index
      %72 = vector.load %arg15[%c0_46, %c0_47] : memref<32x32xf32, #tpu.memory_space<vmem>>, vector<32x32xf32>
      tpu.vector_store %arg15[%c0_46, %c0_47], %71 {strides = array<i32>} : memref<32x32xf32, #tpu.memory_space<vmem>>, vector<32x32xf32>,
    } else {
    }
    %c0 = arith.constant 0 : index
    %c0_1 = arith.constant 0 : index
    %3 = vector.load %arg16[%c0, %c0_1] : memref<32x32xbf16, #tpu.memory_space<vmem>>, vector<32x32xbf16>
    %c0_2 = arith.constant 0 : index
    %c0_3 = arith.constant 0 : index
    %4 = vector.load %arg8[%c0_2, %c0_3] : memref<32x128xbf16, #tpu.memory_space<vmem>>, vector<32x128xbf16>
    %cst = arith.constant dense<0.000000e+00> : vector<32x128xf32>
    %5 = tpu.matmul %3, %4, %cst {dimension_numbers = #tpu.dot_dimension_numbers<[1], [0], [0], [1], [0, 0, 1, 1], [], []>} : vector<32x32xbf16>, vector<32x128xbf16>, vector<32x128xf32> -> vector<32x128xf32>
    %c0_4 = arith.constant 0 : index
    %c0_5 = arith.constant 0 : index
    %6 = vector.load %arg9[%c0_4, %c0_5] : memref<1x128xf32, #tpu.memory_space<vmem>>, vector<1x128xf32>
    %7 = vector.broadcast %6 : vector<1x128xf32> to vector<32x128xf32>
    %8 = arith.addf %5, %7 : vector<32x128xf32>
    %c0_6 = arith.constant 0 : index
    %c0_7 = arith.constant 0 : index
    %9 = vector.load %arg10[%c0_6, %c0_7] : memref<32x128xbf16, #tpu.memory_space<vmem>>, vector<32x128xbf16>
    %cst_8 = arith.constant dense<0.000000e+00> : vector<32x128xf32>
    %10 = tpu.matmul %3, %9, %cst_8 {dimension_numbers = #tpu.dot_dimension_numbers<[1], [0], [0], [1], [0, 0, 1, 1], [], []>} : vector<32x32xbf16>, vector<32x128xbf16>, vector<32x128xf32> -> vector<32x128xf32>
    %c0_9 = arith.constant 0 : index
    %c0_10 = arith.constant 0 : index
    %11 = vector.load %arg11[%c0_9, %c0_10] : memref<1x128xf32, #tpu.memory_space<vmem>>, vector<1x128xf32>
    %12 = vector.broadcast %11 : vector<1x128xf32> to vector<32x128xf32>
    %13 = arith.addf %10, %12 : vector<32x128xf32>
    %cst_11 = arith.constant 5.000000e-01 : f32
    %14 = vector.broadcast %cst_11 : f32 to vector<32x128xf32>
    %15 = arith.mulf %14, %13 : vector<32x128xf32>
    %cst_12 = arith.constant 4.471500e-02 : f32
    %16 = vector.broadcast %cst_12 : f32 to vector<32x128xf32>
    %17 = arith.mulf %16, %13 : vector<32x128xf32>
    %18 = arith.mulf %17, %13 : vector<32x128xf32>
    %19 = arith.mulf %18, %13 : vector<32x128xf32>
    %20 = arith.addf %13, %19 : vector<32x128xf32>
    %cst_13 = arith.constant 0.797884583 : f32
    %21 = vector.broadcast %cst_13 : f32 to vector<32x128xf32>
    %22 = arith.mulf %21, %20 : vector<32x128xf32>
    %23 = math.tanh %22 : vector<32x128xf32>
    %cst_14 = arith.constant 1.000000e+00 : f32
    %24 = vector.broadcast %cst_14 : f32 to vector<32x128xf32>
    %25 = arith.addf %24, %23 : vector<32x128xf32>
    %26 = arith.mulf %15, %25 : vector<32x128xf32>
    %27 = arith.mulf %8, %26 : vector<32x128xf32>
    %28 = arith.truncf %27 : vector<32x128xf32> to vector<32x128xbf16>
    %c0_15 = arith.constant 0 : index
    %c0_16 = arith.constant 0 : index
    %29 = vector.load %arg15[%c0_15, %c0_16] : memref<32x32xf32, #tpu.memory_space<vmem>>, vector<32x32xf32>
    %c0_17 = arith.constant 0 : index
    %c0_18 = arith.constant 0 : index
    %30 = vector.load %arg12[%c0_17, %c0_18] : memref<128x32xbf16, #tpu.memory_space<vmem>>, vector<128x32xbf16>
    %cst_19 = arith.constant dense<0.000000e+00> : vector<32x32xf32>
    %31 = tpu.matmul %28, %30, %cst_19 {dimension_numbers = #tpu.dot_dimension_numbers<[1], [0], [0], [1], [0, 0, 1, 1], [], []>} : vector<32x128xbf16>, vector<128x32xbf16>, vector<32x32xf32> -> vector<32x32xf32>
    %32 = arith.addf %29, %31 : vector<32x32xf32>
    %c0_20 = arith.constant 0 : index
    %c0_21 = arith.constant 0 : index
    %33 = vector.load %arg15[%c0_20, %c0_21] : memref<32x32xf32, #tpu.memory_space<vmem>>, vector<32x32xf32>
    tpu.vector_store %arg15[%c0_20, %c0_21], %32 {strides = array<i32>} : memref<32x32xf32, #tpu.memory_space<vmem>>, vector<32x32xf32>,
    %c0_i32_22 = arith.constant 0 : i32
    %34 = arith.cmpi eq, %arg1, %c0_i32_22 : i32
    %35 = arith.extui %34 : i1 to i32
    %c0_i32_23 = arith.constant 0 : i32
    %36 = arith.cmpi ne, %35, %c0_i32_23 : i32
    scf.if %36 {
      %c0_24 = arith.constant 0 : index
      %c0_25 = arith.constant 0 : index
      %37 = vector.load %arg15[%c0_24, %c0_25] : memref<32x32xf32, #tpu.memory_space<vmem>>, vector<32x32xf32>
      %c0_26 = arith.constant 0 : index
      %c0_27 = arith.constant 0 : index
      %38 = vector.load %arg14[%c0_26, %c0_27] : memref<32x32xf32, #tpu.memory_space<vmem>>, vector<32x32xf32>
      tpu.vector_store %arg14[%c0_26, %c0_27], %37 {strides = array<i32>} : memref<32x32xf32, #tpu.memory_space<vmem>>, vector<32x32xf32>,
    } else {
    }
    return
  }
  func.func @transform_0(%arg0: i32, %arg1: i32) -> (i32, i32) {
    %c0_i32 = arith.constant 0 : i32
    %c0_i32_0 = arith.constant 0 : i32
    return %arg0, %c0_i32 : i32, i32
  }
  func.func @transform_1(%arg0: i32, %arg1: i32) -> (i32, i32) {
    %c0_i32 = arith.constant 0 : i32
    %c0_i32_0 = arith.constant 0 : i32
    %c0_i32_1 = arith.constant 0 : i32
    return %c0_i32, %c0_i32_0 : i32, i32
  }
  func.func @transform_2(%arg0: i32, %arg1: i32) -> (i32, i32) {
    %c0_i32 = arith.constant 0 : i32
    %c0_i32_0 = arith.constant 0 : i32
    %c0_i32_1 = arith.constant 0 : i32
    return %c0_i32, %c0_i32_0 : i32, i32
  }
  func.func @transform_3(%arg0: i32, %arg1: i32) -> (i32, i32) {
    %c0_i32 = arith.constant 0 : i32
    %c0_i32_0 = arith.constant 0 : i32
    return %arg0, %c0_i32 : i32, i32
  }
  func.func @transform_4(%arg0: i32, %arg1: i32) -> (i32, i32) {
    %c0_i32 = arith.constant 0 : i32
    %c0_i32_0 = arith.constant 0 : i32
    %c0_i32_1 = arith.constant 0 : i32
    return %c0_i32, %c0_i32_0 : i32, i32
  }
  func.func @transform_5(%arg0: i32, %arg1: i32) -> (i32, i32) {
    %c0_i32 = arith.constant 0 : i32
    %c0_i32_0 = arith.constant 0 : i32
    %c0_i32_1 = arith.constant 0 : i32
    return %c0_i32, %c0_i32_0 : i32, i32
  }
  func.func @transform_6(%arg0: i32, %arg1: i32) -> (i32, i32) {
    %c0_i32 = arith.constant 0 : i32
    %c0_i32_0 = arith.constant 0 : i32
    return %c0_i32, %arg1 : i32, i32
  }
  func.func @transform_7(%arg0: i32, %arg1: i32) -> (i32, i32) {
    %c0_i32 = arith.constant 0 : i32
    %c0_i32_0 = arith.constant 0 : i32
    return %c0_i32, %arg1 : i32, i32
  }
  func.func @transform_8(%arg0: i32, %arg1: i32) -> (i32, i32) {
    %c0_i32 = arith.constant 0 : i32
    %c0_i32_0 = arith.constant 0 : i32
    return %c0_i32, %arg1 : i32, i32
  }
  func.func @transform_9(%arg0: i32, %arg1: i32) -> (i32, i32) {
    %c0_i32 = arith.constant 0 : i32
    %c0_i32_0 = arith.constant 0 : i32
    return %c0_i32, %arg1 : i32, i32
  }
  func.func @transform_10(%arg0: i32, %arg1: i32) -> (i32, i32) {
    %c0_i32 = arith.constant 0 : i32
    %c0_i32_0 = arith.constant 0 : i32
    return %arg1, %c0_i32 : i32, i32
  }
  func.func @transform_11(%arg0: i32, %arg1: i32) -> (i32, i32) {
    %c0_i32 = arith.constant 0 : i32
    %c0_i32_0 = arith.constant 0 : i32
    %c0_i32_1 = arith.constant 0 : i32
    return %c0_i32, %c0_i32_0 : i32, i32
  }
  func.func @transform_12(%arg0: i32, %arg1: i32) -> (i32, i32) {
    %c0_i32 = arith.constant 0 : i32
    %c0_i32_0 = arith.constant 0 : i32
    return %arg0, %c0_i32 : i32, i32
  }
}

</mosaic_0001>

<bundles_post_ra>
// kernel: _basic_transformer_block.6
= control target key start
LH: loop header
LB: loop body
LE: loop exit
PB: predicated region body
PF: predicated region fallthrough
CT: control target
= control target key end

     0   :  { %vm27_vm0 = vcmask 261120   ;;  %vm190_vm1 = vcmask 257024   ;;  %s277_s11 = smov 96   ;;  %s278_s18 = smov 64   ;;  %s396_s0 = inlined_call_operand.vmem [shape: f32[32,32], index: 0, kind: input, shape index: {}]   ;;  %s397_s3 = inlined_call_operand.vmem [shape: bf16[32,96], index: 3, kind: input, shape index: {}]   ;;  %s398_s1 = inlined_call_operand.vmem [shape: f32[1,32], index: 1, kind: input, shape index: {}]   ;;  %s399_s2 = inlined_call_operand.vmem [shape: f32[1,32], index: 2, kind: input, shape index: {}]   ;;  %s400_s4 = inlined_call_operand.vmem [shape: bf16[32,32], index: 4, kind: output, shape index: {0}]   ;;  %s401_s5 = inlined_call_operand.vmem [shape: bf16[32,32], index: 5, kind: output, shape index: {1}]   ;;  %s402_s6 = inlined_call_operand.vmem [shape: bf16[32,32], index: 6, kind: output, shape index: {2}]  }
   0x1   :  { %v21_v0 = vld [vmem:[%s396_s0] sm:$0xff]  ;;  %v23_v1 = vld [vmem:[%s396_s0 + $0x10] sm:$0xff]  ;;  %v22_v2 = vld [vmem:[%s396_s0 + $0x8] sm:$0xff] }
   0x2   :  { %v28_v3 = vsel %vm27_vm0, %v21_v0, 0.0  ;;  %v34_v4 = vsel %vm27_vm0, %v23_v1, 0.0  ;;  %v24_v5 = vld [vmem:[%s396_s0 + $0x18] sm:$0xff]  ;;  %v31_v6 = vsel %vm27_vm0, %v22_v2, 0.0  ;;  %v267_v28 = vld [vmem:[%s397_s3] sm:$0xff]   ;;  %v268_v29 = vld [vmem:[%s397_s3 + $0x8] sm:$0xff]  }
   0x3   :  { %29 = vadd.xlane.f32.xlu0 %v28_v3  ;;  %35 = vadd.xlane.f32.xlu1 %v34_v4  ;;  %v37_v7 = vsel %vm27_vm0, %v24_v5, 0.0  ;;  %v239_v44 = vld [vmem:[%s398_s1] ss:$0 sm:$0xff] }
   0x4   :  { %257 = vmatprep.subr.bf16.mxu0 %v267_v28  ;;  %v240_v50 = vld [vmem:[%s399_s2] ss:$0 sm:$0xff] }
   0x5   :  { %258 = vmatpush3.bf16.msra.mxu0 %v267_v28 }
   0x6   :  { %259 = vmatprep.subr.bf16.mxu0 %v268_v29 }
   0x7   :  { %32 = vadd.xlane.f32.xlu0 %v31_v6  ;;  %38 = vadd.xlane.f32.xlu1 %v37_v7 }
   0x9   :  { %260 = vmatpush3.bf16.msra.mxu0 %v268_v29 }
  0x90   :  { %v30_v8 = vpop.xlane.xlu0 %29  ;;  %v36_v9 = vpop.xlane.xlu1 %35 }
  0x91   :  { %v41_v10 = vmul.f32 0.03125, %v30_v8  ;;  %v43_v11 = vmul.f32 0.03125, %v36_v9 }
  0x93   :  { %v45_v12 = vsub.f32 %v21_v0, %v41_v10  ;;  %v47_v13 = vsub.f32 %v23_v1, %v43_v11 }
  0x94   :  { %v33_v14 = vpop.xlane.xlu0 %32  ;;  %v39_v15 = vpop.xlane.xlu1 %38 }
  0x95   :  { %v42_v16 = vmul.f32 0.03125, %v33_v14  ;;  %v44_v17 = vmul.f32 0.03125, %v39_v15  ;;  %v49_v18 = vmul.f32 %v45_v12, %v45_v12  ;;  %v51_v19 = vmul.f32 %v47_v13, %v47_v13 }
  0x97   :  { %v46_v20 = vsub.f32 %v22_v2, %v42_v16  ;;  %v48_v21 = vsub.f32 %v24_v5, %v44_v17  ;;  %v53_v22 = vsel %vm27_vm0, %v49_v18, 0.0  ;;  %v59_v23 = vsel %vm27_vm0, %v51_v19, 0.0 }
  0x98   :  { %54 = vadd.xlane.f32.xlu0 %v53_v22 }
  0x99   :  { %v50_v24 = vmul.f32 %v46_v20, %v46_v20  ;;  %v52_v25 = vmul.f32 %v48_v21, %v48_v21 }
  0x9b   :  { %v56_v26 = vsel %vm27_vm0, %v50_v24, 0.0  ;;  %v62_v27 = vsel %vm27_vm0, %v52_v25, 0.0 }
  0x9c   :  { %60 = vadd.xlane.f32.xlu0 %v59_v23  ;;  %57 = vadd.xlane.f32.xlu1 %v56_v26 }
  0xa0   :  { %63 = vadd.xlane.f32.xlu1 %v62_v27 }
 0x125   :  { %v55_v30 = vpop.xlane.xlu0 %54 }
 0x126   :  { %v65_v31 = vmul.f32 0.03125, %v55_v30 }
 0x128   :  { %v69_v32 = vadd.f32 1e-05, %v65_v31 }
 0x129   :  { %v58_v33 = vpop.xlane.xlu1 %57  ;;  %v61_v34 = vpop.xlane.xlu0 %60 }
 0x12a   :  { %269 = vrsqrt.f32 %v69_v32  ;;  %v66_v35 = vmul.f32 0.03125, %v58_v33  ;;  %v67_v36 = vmul.f32 0.03125, %v61_v34 }
 0x12c   :  { %v70_v37 = vadd.f32 1e-05, %v66_v35  ;;  %v71_v38 = vadd.f32 1e-05, %v67_v36 }
 0x12d   :  { %v64_v39 = vpop.xlane.xlu1 %63 }
 0x12e   :  { %271 = vrsqrt.f32 %v70_v37  ;;  %v68_v40 = vmul.f32 0.03125, %v64_v39 }
 0x12f   :  { %273 = vrsqrt.f32 %v71_v38 }
 0x130   :  { %v72_v41 = vadd.f32 1e-05, %v68_v40 }
 0x132   :  { %275 = vrsqrt.f32 %v72_v41 }
 0x134   :  { %v270_v42 = vpop.eup %269 }
 0x135   :  { %v77_v43 = vmul.f32 %v270_v42, %v45_v12 }
 0x137   :  { %v87_v48 = vmul.f32 %v239_v44, %v77_v43 }
 0x138   :  { %v272_v45 = vpop.eup %271 }
 0x139   :  { %v274_v46 = vpop.eup %273  ;;  %v78_v47 = vmul.f32 %v272_v45, %v46_v20  ;;  %v97_v54 = vadd.f32 %v240_v50, %v87_v48 }
 0x13a   :  { %v79_v49 = vmul.f32 %v274_v46, %v47_v13 }
 0x13b   :  { %v88_v51 = vmul.f32 %v239_v44, %v78_v47 }
 0x13c   :  { %v276_v52 = vpop.eup %275  ;;  %v89_v56 = vmul.f32 %v239_v44, %v79_v49 }
 0x13d   :  { %v80_v53 = vmul.f32 %v276_v52, %v48_v21  ;;  %v98_v55 = vadd.f32 %v240_v50, %v88_v51 }
 0x13e   :  { %v99_v59 = vadd.f32 %v240_v50, %v89_v56 }
 0x13f   :  { %v101_v57 = vpack.c.bf16 %v98_v55, %v97_v54  ;;  %v90_v58 = vmul.f32 %v239_v44, %v80_v53 }
 0x141   :  { %261 = vmatprep.mubr.msk.bf16.mxu0 %vm27_vm0, %v101_v57  ;;  %v100_v60 = vadd.f32 %v240_v50, %v90_v58 }
 0x143   :  { %v102_v61 = vpack.c.bf16 %v100_v60, %v99_v59 }
 0x145   :  { %262 = vmatmul.mubr.msk.bf16.vlgmr.msra.gmra.mrb[0].mxu0 %vm27_vm0, %v102_v61 }
 0x218   :  { %v263_v62 = vpop.f32.mrb[0].mxu0 }
 0x219   :  { %v251_v63 = vpack.c.bf16 %v263_v62, %v263_v62  ;;  %v159_v0 = vpop.f32.mrb[1].mxu0 }
 0x21a   :  { %v249_v1 = vpack.c.bf16 %v159_v0, %v159_v0  ;;  %v264_v2 = vpop.f32.mrb[2].mxu0 }
 0x21b   :  { %193 = vst.msk [vmem:[%s400_s4 + $0x8] sm:$0xf] %vm190_vm1, %v251_v63  ;;  %v252_v3 = vpack.c.bf16 %v264_v2, %v264_v2  ;;  %199 = vrot.lane.b32.xlu1 %v251_v63, %s277_s11  ;;  %v162_v4 = vpop.f32.mrb[3].mxu0 }
 0x21c   :  { %191 = vst.msk [vmem:[%s400_s4] sm:$0xf] %vm190_vm1, %v249_v1  ;;  %v250_v5 = vpack.c.bf16 %v162_v4, %v162_v4  ;;  %195 = vrot.lane.b32.xlu0 %v249_v1, %s277_s11 }
 0x21d   :  { %194 = vst.msk [vmem:[%s400_s4 + $0xc] sm:$0xf] %vm190_vm1, %v252_v3 }
 0x21e   :  { %192 = vst.msk [vmem:[%s400_s4 + $0x4] sm:$0xf] %vm190_vm1, %v250_v5 }
 0x21f   :  { %201 = vrot.lane.b32.xlu1 %v252_v3, %s277_s11 }
 0x220   :  { %211 = vrot.lane.b32.xlu0 %v249_v1, %s278_s18 }
 0x223   :  { %197 = vrot.lane.b32.xlu1 %v250_v5, %s277_s11 }
 0x224   :  { %215 = vrot.lane.b32.xlu0 %v251_v63, %s278_s18 }
 0x227   :  { %213 = vrot.lane.b32.xlu1 %v250_v5, %s278_s18 }
 0x22b   :  { %217 = vrot.lane.b32.xlu1 %v252_v3, %s278_s18 }
 0x28d   :  { %v200_v6 = vpop.permute.xlu1 %199 }
 0x28e   :  { %209 = vst.msk [vmem:[%s401_s5 + $0x8] sm:$0xf] %vm190_vm1, %v200_v6  ;;  %v196_v7 = vpop.permute.xlu0 %195 }
 0x28f   :  { %207 = vst.msk [vmem:[%s401_s5] sm:$0xf] %vm190_vm1, %v196_v7 }
 0x291   :  { %v202_v8 = vpop.permute.xlu1 %201 }
 0x292   :  { %210 = vst.msk [vmem:[%s401_s5 + $0xc] sm:$0xf] %vm190_vm1, %v202_v8  ;;  %v212_v9 = vpop.permute.xlu0 %211 }
 0x293   :  { %223 = vst.msk [vmem:[%s402_s6] sm:$0xf] %vm190_vm1, %v212_v9 }
 0x295   :  { %v198_v10 = vpop.permute.xlu1 %197 }
 0x296   :  { %208 = vst.msk [vmem:[%s401_s5 + $0x4] sm:$0xf] %vm190_vm1, %v198_v10  ;;  %v216_v11 = vpop.permute.xlu0 %215 }
 0x297   :  { %225 = vst.msk [vmem:[%s402_s6 + $0x8] sm:$0xf] %vm190_vm1, %v216_v11 }
 0x299   :  { %v214_v12 = vpop.permute.xlu1 %213 }
 0x29a   :  { %224 = vst.msk [vmem:[%s402_s6 + $0x4] sm:$0xf] %vm190_vm1, %v214_v12 }
 0x29d   :  { %v218_v13 = vpop.permute.xlu1 %217 }
 0x29e   :  { %226 = vst.msk [vmem:[%s402_s6 + $0xc] sm:$0xf] %vm190_vm1, %v218_v13 }

// kernel: _basic_transformer_block.8
= control target key start
LH: loop header
LB: loop body
LE: loop exit
PB: predicated region body
PF: predicated region fallthrough
CT: control target
= control target key end

     0   :  { %vm66_vm0 = vcmask 261120   ;;  %vm298_vm1 = vcmask 257024   ;;  %s494_s1 = inlined_call_operand.vmem [shape: bf16[32,32], index: 1, kind: input, shape index: {}]   ;;  %s495_s0 = inlined_call_operand.vmem [shape: bf16[32,32], index: 0, kind: input, shape index: {}]   ;;  %s496_s2 = inlined_call_operand.vmem [shape: f32[1,32], index: 2, kind: input, shape index: {}]   ;;  %s497_s3 = inlined_call_operand.vmem [shape: f32[32,32], index: 3, kind: input, shape index: {}]   ;;  %s498_s7 = inlined_call_operand.vmem [shape: f32[32,32], index: 7, kind: output, shape index: {0}]   ;;  %s499_s6 = inlined_call_operand.vmem [shape: bf16[32,32], index: 6, kind: input, shape index: {}]   ;;  %s500_s4 = inlined_call_operand.vmem [shape: f32[1,32], index: 4, kind: input, shape index: {}]   ;;  %s501_s5 = inlined_call_operand.vmem [shape: f32[1,32], index: 5, kind: input, shape index: {}]   ;;  %s502_s8 = inlined_call_operand.vmem [shape: bf16[32,32], index: 8, kind: output, shape index: {1}]  }
   0x1   :  { %v356_v0 = vld [vmem:[%s494_s1] sm:$0xff]   ;;  %v357_v1 = vld [vmem:[%s494_s1 + $0x8] sm:$0xff]   ;;  %v124_v6 = vld [vmem:[%s497_s3 + $0x10] sm:$0xff] }
   0x2   :  { %340 = vmatprep.subr.bf16.mxu0 %v356_v0  ;;  %v358_v2 = vld [vmem:[%s495_s0] sm:$0xff]   ;;  %v359_v3 = vld [vmem:[%s495_s0 + $0x8] sm:$0xff]   ;;  %v125_v12 = vld [vmem:[%s497_s3 + $0x18] sm:$0xff] }
   0x3   :  { %341 = vmatpush3.bf16.msra.mxu0 %v356_v0  ;;  %344 = vmatprep.mubr.msk.bf16.mxu0 %vm66_vm0, %v358_v2  ;;  %v311_v4 = vld [vmem:[%s496_s2] ss:$0 sm:$0xff]  ;;  %v123_v16 = vld [vmem:[%s497_s3 + $0x8] sm:$0xff] }
   0x4   :  { %342 = vmatprep.subr.bf16.mxu0 %v357_v1  ;;  %v122_v9 = vld [vmem:[%s497_s3] sm:$0xff]  ;;  %v361_v46 = vld [vmem:[%s499_s6 + $0x8] sm:$0xff]  }
   0x5   :  { %v360_v45 = vld [vmem:[%s499_s6] sm:$0xff]  }
   0x6   :  { %348 = vmatprep.subr.bf16.mxu1 %v360_v45  ;;  %v318_v61 = vld [vmem:[%s500_s4] ss:$0 sm:$0xff] }
   0x7   :  { %343 = vmatpush3.bf16.msra.mxu0 %v357_v1  ;;  %349 = vmatpush3.bf16.msra.mxu1 %v360_v45 }
   0x8   :  { %350 = vmatprep.subr.bf16.mxu1 %v361_v46 }
   0xa   :  { %345 = vmatmul.mubr.msk.bf16.vlgmr.msra.gmra.mrb[0].mxu0 %vm66_vm0, %v359_v3  ;;  %v319_v3 = vld [vmem:[%s501_s5] ss:$0 sm:$0xff] }
   0xb   :  { %351 = vmatpush3.bf16.msra.mxu1 %v361_v46 }
  0xdd   :  { %v346_v5 = vpop.f32.mrb[0].mxu0 }
  0xde   :  { %v116_v7 = vadd.f32 %v346_v5, %v311_v4  ;;  %v107_v8 = vpop.f32.mrb[1].mxu0 }
  0xdf   :  { %v108_v10 = vadd.f32 %v311_v4, %v107_v8  ;;  %v347_v11 = vpop.f32.mrb[2].mxu0 }
  0xe0   :  { %v128_v13 = vadd.f32 %v124_v6, %v116_v7  ;;  %v119_v14 = vadd.f32 %v347_v11, %v311_v4  ;;  %v110_v15 = vpop.f32.mrb[3].mxu0 }
  0xe1   :  { %v126_v17 = vadd.f32 %v122_v9, %v108_v10  ;;  %v111_v18 = vadd.f32 %v311_v4, %v110_v15 }
  0xe2   :  { %132 = vst.msk [vmem:[%s498_s7 + $0x10] sm:$0xff] %vm66_vm0, %v128_v13  ;;  %v129_v19 = vadd.f32 %v125_v12, %v119_v14  ;;  %v142_v20 = vsel %vm66_vm0, %v128_v13, 0.0 }
  0xe3   :  { %130 = vst.msk [vmem:[%s498_s7] sm:$0xff] %vm66_vm0, %v126_v17  ;;  %v127_v21 = vadd.f32 %v123_v16, %v111_v18  ;;  %143 = vadd.xlane.f32.xlu1 %v142_v20  ;;  %v136_v22 = vsel %vm66_vm0, %v126_v17, 0.0 }
  0xe4   :  { %133 = vst.msk [vmem:[%s498_s7 + $0x18] sm:$0xff] %vm66_vm0, %v129_v19  ;;  %137 = vadd.xlane.f32.xlu0 %v136_v22  ;;  %v145_v23 = vsel %vm66_vm0, %v129_v19, 0.0 }
  0xe5   :  { %131 = vst.msk [vmem:[%s498_s7 + $0x8] sm:$0xff] %vm66_vm0, %v127_v21  ;;  %v139_v24 = vsel %vm66_vm0, %v127_v21, 0.0 }
  0xe7   :  { %146 = vadd.xlane.f32.xlu1 %v145_v23 }
  0xe8   :  { %140 = vadd.xlane.f32.xlu0 %v139_v24 }
 0x170   :  { %v144_v25 = vpop.xlane.xlu1 %143 }
 0x171   :  { %v151_v26 = vmul.f32 0.03125, %v144_v25  ;;  %v138_v27 = vpop.xlane.xlu0 %137 }
 0x172   :  { %v149_v28 = vmul.f32 0.03125, %v138_v27 }
 0x173   :  { %v155_v29 = vsub.f32 %v128_v13, %v151_v26 }
 0x174   :  { %v153_v30 = vsub.f32 %v126_v17, %v149_v28  ;;  %v147_v31 = vpop.xlane.xlu1 %146 }
 0x175   :  { %v152_v32 = vmul.f32 0.03125, %v147_v31  ;;  %v141_v33 = vpop.xlane.xlu0 %140  ;;  %v159_v39 = vmul.f32 %v155_v29, %v155_v29 }
 0x176   :  { %v150_v34 = vmul.f32 0.03125, %v141_v33  ;;  %v157_v35 = vmul.f32 %v153_v30, %v153_v30 }
 0x177   :  { %v156_v36 = vsub.f32 %v129_v19, %v152_v32  ;;  %v167_v41 = vsel %vm66_vm0, %v159_v39, 0.0 }
 0x178   :  { %v154_v37 = vsub.f32 %v127_v21, %v150_v34  ;;  %v161_v38 = vsel %vm66_vm0, %v157_v35, 0.0 }
 0x179   :  { %162 = vadd.xlane.f32.xlu0 %v161_v38  ;;  %v160_v43 = vmul.f32 %v156_v36, %v156_v36 }
 0x17a   :  { %v158_v40 = vmul.f32 %v154_v37, %v154_v37 }
 0x17b   :  { %v170_v44 = vsel %vm66_vm0, %v160_v43, 0.0 }
 0x17c   :  { %v164_v42 = vsel %vm66_vm0, %v158_v40, 0.0 }
 0x17d   :  { %168 = vadd.xlane.f32.xlu0 %v167_v41  ;;  %165 = vadd.xlane.f32.xlu1 %v164_v42 }
 0x181   :  { %171 = vadd.xlane.f32.xlu1 %v170_v44 }
 0x206   :  { %v163_v47 = vpop.xlane.xlu0 %162 }
 0x207   :  { %v173_v48 = vmul.f32 0.03125, %v163_v47 }
 0x209   :  { %v177_v49 = vadd.f32 1e-05, %v173_v48 }
 0x20a   :  { %v166_v50 = vpop.xlane.xlu1 %165  ;;  %v169_v51 = vpop.xlane.xlu0 %168 }
 0x20b   :  { %362 = vrsqrt.f32 %v177_v49  ;;  %v174_v52 = vmul.f32 0.03125, %v166_v50  ;;  %v175_v53 = vmul.f32 0.03125, %v169_v51 }
 0x20d   :  { %v178_v54 = vadd.f32 1e-05, %v174_v52  ;;  %v179_v55 = vadd.f32 1e-05, %v175_v53 }
 0x20e   :  { %v172_v56 = vpop.xlane.xlu1 %171 }
 0x20f   :  { %364 = vrsqrt.f32 %v178_v54  ;;  %v176_v57 = vmul.f32 0.03125, %v172_v56 }
 0x210   :  { %366 = vrsqrt.f32 %v179_v55 }
 0x211   :  { %v180_v58 = vadd.f32 1e-05, %v176_v57 }
 0x213   :  { %368 = vrsqrt.f32 %v180_v58 }
 0x215   :  { %v363_v59 = vpop.eup %362 }
 0x216   :  { %v185_v60 = vmul.f32 %v363_v59, %v153_v30 }
 0x218   :  { %v195_v1 = vmul.f32 %v318_v61, %v185_v60 }
 0x219   :  { %v365_v62 = vpop.eup %364 }
 0x21a   :  { %v367_v63 = vpop.eup %366  ;;  %v186_v0 = vmul.f32 %v365_v62, %v154_v37  ;;  %v205_v7 = vadd.f32 %v319_v3, %v195_v1 }
 0x21b   :  { %v187_v2 = vmul.f32 %v367_v63, %v155_v29 }
 0x21c   :  { %v196_v4 = vmul.f32 %v318_v61, %v186_v0 }
 0x21d   :  { %v369_v5 = vpop.eup %368  ;;  %v197_v9 = vmul.f32 %v318_v61, %v187_v2 }
 0x21e   :  { %v188_v6 = vmul.f32 %v369_v5, %v156_v36  ;;  %v206_v8 = vadd.f32 %v319_v3, %v196_v4 }
 0x21f   :  { %v207_v12 = vadd.f32 %v319_v3, %v197_v9 }
 0x220   :  { %v209_v10 = vpack.c.bf16 %v206_v8, %v205_v7  ;;  %v198_v11 = vmul.f32 %v318_v61, %v188_v6 }
 0x222   :  { %352 = vmatprep.mubr.msk.bf16.mxu1 %vm66_vm0, %v209_v10  ;;  %v208_v13 = vadd.f32 %v319_v3, %v198_v11 }
 0x224   :  { %v210_v14 = vpack.c.bf16 %v208_v13, %v207_v12 }
 0x226   :  { %353 = vmatmul.mubr.msk.bf16.vlgmr.msra.gmra.mrb[0].mxu1 %vm66_vm0, %v210_v14 }
 0x2f9   :  { %v354_v15 = vpop.f32.mrb[0].mxu1 }
 0x2fa   :  { %v330_v16 = vpack.c.bf16 %v354_v15, %v354_v15  ;;  %v267_v17 = vpop.f32.mrb[1].mxu1 }
 0x2fb   :  { %v328_v18 = vpack.c.bf16 %v267_v17, %v267_v17  ;;  %v355_v19 = vpop.f32.mrb[2].mxu1 }
 0x2fc   :  { %301 = vst.msk [vmem:[%s502_s8 + $0x8] sm:$0xf] %vm298_vm1, %v330_v16  ;;  %v331_v20 = vpack.c.bf16 %v355_v19, %v355_v19  ;;  %v270_v21 = vpop.f32.mrb[3].mxu1 }
 0x2fd   :  { %299 = vst.msk [vmem:[%s502_s8] sm:$0xf] %vm298_vm1, %v328_v18  ;;  %v329_v22 = vpack.c.bf16 %v270_v21, %v270_v21 }
 0x2fe   :  { %302 = vst.msk [vmem:[%s502_s8 + $0xc] sm:$0xf] %vm298_vm1, %v331_v20 }
 0x2ff   :  { %300 = vst.msk [vmem:[%s502_s8 + $0x4] sm:$0xf] %vm298_vm1, %v329_v22 }

// kernel: _basic_transformer_block.9
= control target key start
LH: loop header
LB: loop body
LE: loop exit
PB: predicated region body
PF: predicated region fallthrough
CT: control target
= control target key end

     0   :  { %9 = vsyncpa [#allocation3], 0  ;;  %s196_s12 = smov [#allocation2]   ;;  %s258_s0 = inlined_call_operand.hbm [shape: f32[16,64], index: 0, kind: input, shape index: {}]   ;;  %s259_s1 = inlined_call_operand.vmem [shape: bf16[64,64], index: 1, kind: input, shape index: {}]   ;;  %s260_s2 = inlined_call_operand.vmem [shape: bf16[16,32], index: 2, kind: output, shape index: {0}]   ;;  %s261_s3 = inlined_call_operand.vmem [shape: bf16[16,32], index: 3, kind: output, shape index: {1}]  }
   0x1   :  { %s15_s13 = sshll.u32 %s196_s12, 4  ;;  %s172_s16 = scalar_lea.hbm %s258_s0, 256  ;;  %s16_s13 = int_to_ptr.vmem [resolvable:$true] %s15_s13 }
   0x2   :  { %p173_p0 = scmp.ne.s32.totalorder %s258_s0, %s172_s16  ;;  %p176_p1 = scmp.lt.u32.totalorder %s172_s16, %s258_s0 }
   0x4   :  { %p178_p2 = pnand %p176_p1, %p173_p0 }
   0x6   :  { %181 = shalt.err (!%p178_p2)
}
   0x7   :  { %s182_s21 = scalar_lea.vmem %s16_s13, 256  ;;  %p187_p4 = scmp.lt.s32.totalorder %s16_s13, %s16_s13 }
   0x8   :  { %p183_p3 = scmp.ne.s32.totalorder %s16_s13, %s182_s21  ;;  %p188_p5 = scmp.lt.s32.totalorder %s182_s21, %s182_s21 }
   0xa   :  { %p189_p6 = por %p188_p5, %p187_p4 }
   0xc   :  { %p190_p7 = pnand %p189_p6, %p183_p3 }
   0xe   :  { %193 = shalt.err (!%p190_p7)
}
   0xf   :  { %s197_s22 = smov 128   ;;  %s198_s23 = smov 8  }
  0x10   :  { %21 = dma.hbm_to_vmem [thread:$0]  %s258_s0, 256, %s16_s13, [#allocation3], %s197_s22, %s197_s22, %s198_s23  }
  0x11   :  { %194 = dma.done.wait [#allocation3], 256  }
  0x12   :  { %195 = vsyncadd [#allocation3], 4294967040  ;;  %v199_v0 = vmov 0.0   ;;  %vm200_vm0 = vmmov 0   ;;  %v168_v1 = vld [vmem:[%s259_s1] sm:$0xff]   ;;  %v169_v2 = vld [vmem:[%s259_s1 + $0x8] sm:$0xff]  }
  0x13   :  { %150 = vmatprep.subr.bf16.mxu0 %v199_v0  ;;  %158 = vmatprep.mubr.msk.bf16.mxu0 %vm200_vm0, %v199_v0  ;;  %v170_v3 = vld [vmem:[%s259_s1 + $0x10] sm:$0xff]   ;;  %v171_v4 = vld [vmem:[%s259_s1 + $0x18] sm:$0xff]   ;;  %v28_v5 = vld [vmem:[#allocation2] sm:$0xff]  ;;  %vm63_vm1 = vcmask 523264   ;;  %vm116_vm2 = vcmask 257024   ;;  %s201_s8 = smov 96  }
  0x14   :  { %151 = vmatpush3.bf16.msra.mxu0 %v168_v1  ;;  %v29_v6 = vld [vmem:[#allocation2 + $0x8] sm:$0xff] }
  0x15   :  { %152 = vmatprep.subr.bf16.mxu0 %v199_v0  ;;  %v30_v7 = vpack.c.bf16 %v29_v6, %v28_v5 }
  0x18   :  { %153 = vmatpush3.bf16.msra.mxu0 %v169_v2 }
  0x19   :  { %154 = vmatprep.subr.bf16.mxu0 %v199_v0 }
  0x1c   :  { %155 = vmatpush3.bf16.msra.mxu0 %v170_v3 }
  0x1d   :  { %156 = vmatprep.subr.bf16.mxu0 %v199_v0 }
  0x20   :  { %157 = vmatpush3.bf16.msra.mxu0 %v171_v4 }
  0x23   :  { %159 = vmatmul.mubr.msk.bf16.vlgmr.msra.gmra.mrb[0].mxu0 %vm63_vm1, %v30_v7 }
  0xf6   :  { %v101_v8 = vpop.f32.mrb[0].mxu0 }
  0xf7   :  { %v143_v9 = vpack.c.bf16 %v101_v8, %v101_v8  ;;  %v160_v10 = vpop.f32.mrb[1].mxu0 }
  0xf8   :  { %v104_v11 = vpop.f32.mrb[2].mxu0 }
  0xf9   :  { %117 = vst.msk [vmem:[%s260_s2] sm:$0xf] %vm116_vm2, %v143_v9  ;;  %v144_v12 = vpack.c.bf16 %v104_v11, %v104_v11  ;;  %119 = vrot.lane.b32.xlu0 %v143_v9, %s201_s8  ;;  %v161_v13 = vpop.f32.mrb[3].mxu0 }
  0xfb   :  { %118 = vst.msk [vmem:[%s260_s2 + $0x4] sm:$0xf] %vm116_vm2, %v144_v12 }
  0xfd   :  { %121 = vrot.lane.b32.xlu0 %v144_v12, %s201_s8 }
 0x16b   :  { %v120_v14 = vpop.permute.xlu0 %119 }
 0x16c   :  { %125 = vst.msk [vmem:[%s261_s3] sm:$0xf] %vm116_vm2, %v120_v14 }
 0x16f   :  { %v122_v15 = vpop.permute.xlu0 %121 }
 0x170   :  { %126 = vst.msk [vmem:[%s261_s3 + $0x4] sm:$0xf] %vm116_vm2, %v122_v15 }
 0x171   :  { %135 = vsyncpa [#allocation3], 1 }

// kernel: _basic_transformer_block.7
= control target key start
LH: loop header
LB: loop body
LE: loop exit
PB: predicated region body
PF: predicated region fallthrough
CT: control target
= control target key end

     0   :  { %s1456_s12 = smov 0   ;;  %s1458_s13 = smov 0   ;;  %s1680_s0 = inlined_call_operand.vmem [shape: bf16[32,32], index: 0, kind: input, shape index: {}]   ;;  %s1681_s1 = inlined_call_operand.vmem [shape: bf16[32,32], index: 1, kind: input, shape index: {}]   ;;  %s1682_s2 = inlined_call_operand.vmem [shape: bf16[32,32], index: 2, kind: input, shape index: {}]   ;;  %s1683_s3 = inlined_call_operand.vmem [shape: bf16[32,32], index: 3, kind: output, shape index: {}]  }
   0x1   :  { %s1460_s14 = smov 0  }
   0x2 LB: > { %s32_s15 = sadd.s32 1, %s1421_s13  ;;  %p1215_p0 = scmp.ge.s32.totalorder %s1425_s14, 1  ;;  %s1425_s14 = sphi %s1460_s14, %s13_s14   ;;  %s1421_s13 = sphi %s1458_s13, %s1685_s13   ;;  %s1417_s12 = sphi %s1456_s12, %s1684_s12  }
   0x3   : > { %p34_p1 = scmp.ge.s32.totalorder %s32_s15, 2  ;;  %p193_p2 = scmp.lt.s32.totalorder %s1425_s14, 3 }
   0x5   : > { %s1687_s15 = smov (%p34_p1, %s32_s15), 0  ;;  %p194_p3 = pnand %p1215_p0, %p193_p2 }
   0x6   : > { %s1216_s16 = sshll.u32 (!%p194_p3), %s1417_s12, 1  ;;  %v1427_v0 = vmov (!%p194_p3), 0.0   ;;  %vm1428_vm0 = vmmov (!%p194_p3), 0   ;;  %vm303_vm1 = vcmask (!%p194_p3), 64512   ;;  %v1429_v4 = vmov (!%p194_p3), 0   ;;  %s1430_s24 = smov (!%p194_p3), 120  }
   0x7   : > { %197 = sbr.rel (%p194_p3) target bundleno = 1580 (0x62c), region = 32  ;;  %1269 = vmatprep.subr.bf16.mxu0 (!%p194_p3), %v1427_v0  ;;  %p233_p4 = scmp.lt.s32.totalorder (!%p194_p3), %s1216_s16, 3  ;;  %1271 = vmatprep.mubr.msk.bf16.mxu0 (!%p194_p3), %vm1428_vm0, %v1427_v0  ;;  %vm353_vm2 = vcmask (!%p194_p3), 130048   ;;  %vm284_vm3 = vcmask (!%p194_p3), 261120   ;;  %vm642_vm4 = vcmask (!%p194_p3), 130112   ;;  %vm818_vm5 = vcmask (!%p194_p3), 195712  }
   0x8   : > { %1275 = vmatprep.subr.bf16.mxu1 (!%p194_p3), %v1427_v0  ;;  %1277 = vmatprep.mubr.msk.bf16.mxu1 (!%p194_p3), %vm1428_vm0, %v1427_v0  ;;  %s1431_s28 = smov (!%p194_p3), 112   ;;  %s1432_s29 = smov (!%p194_p3), 104   ;;  %285 = vst.msk [vmem:[#allocation4] sm:$0xff] (!%p194_p3), %vm284_vm3, %v1427_v0  ;;  %286 = vst.msk [vmem:[#allocation4 + $0x8] sm:$0xff] (!%p194_p3), %vm284_vm3, %v1427_v0  ;;  %vm994_vm6 = vcmask (!%p194_p3), 261312   ;;  %vm1026_vm7 = vcmask (!%p194_p3), 60416  }
   0x9   : > { %1350 = vset.pattern.permute.xlu1 (!%p194_p3), %v1429_v4  ;;  %1351 = vset.pattern.permute.xlu0 (!%p194_p3), %v1429_v4  ;;  %s1433_s30 = smov (!%p194_p3), 8   ;;  %s1434_s4 = smov (!%p194_p3), 16   ;;  %vm1055_vm8 = vcmask (!%p194_p3), 126016   ;;  %vm1084_vm9 = vcmask (!%p194_p3), 191616   ;;  %vm1113_vm10 = vcmask (!%p194_p3), 257216  }
   0xa   : > { %s1435_s5 = smov (!%p194_p3), 24  }
   0xe   : > { %s1689_s16 = smov (!%p233_p4, %s1216_s16), 3 }
   0xf   : > { %s1480_s17 = sshll.u32 %s1689_s16, 2 }
  0x10   : > { %s244_s20 = scalar_lea.vmem %s1681_s1, %s1480_s17  ;;  %s236_s23 = scalar_lea.vmem %s1680_s0, %s1480_s17 }
  0x11   : > { %v1352_v1 = vld [vmem:[%s244_s20] sm:$0xff]   ;;  %s252_s27 = scalar_lea.vmem %s1682_s2, %s1480_s17  ;;  %s1661_s8 = scalar_lea.vmem %s1683_s3, %s1480_s17 }
  0x12   : > { %v308_v2 = vsel %vm303_vm1, %v1352_v1, 0  ;;  %v1353_v3 = vld [vmem:[%s236_s23] sm:$0xff]  }
  0x13   : > { %1270 = vmatpush3.bf16.xpose.msra.mxu0 %v308_v2  ;;  %v1509_v13 = vld [vmem:[%s252_s27] sm:$0xff]  }
  0x14   : > { %1287 = vmatprep.subr.bf16.mxu0 %v1427_v0  ;;  %1276 = vmatpush3.bf16.msra.mxu1 %v1509_v13 }
  0x15   : > { %1281 = vmatprep.subr.bf16.mxu1 %v1427_v0 }
  0x1a   : > { %1272 = vmatmul.mubr.msk.bf16.vlgmr.msra.gmra.mrb[0].mxu0 %vm303_vm1, %v1353_v3 }
  0x1b   : > { %1289 = vmatprep.mubr.msk.bf16.mxu0 %vm1428_vm0, %v1427_v0 }
  0xed   : > { %v344_v5 = vpop.f32.mrb[0].mxu0 }
  0xee   : > { %v1273_v6 = vpop.f32.mrb[1].mxu0  ;;  %v354_v7 = vsel %vm353_vm2, %v344_v5, -inf }
  0xef   : > { %355 = vmax.xlane.f32.xlu0 %v354_v7  ;;  %v347_v8 = vpop.f32.mrb[2].mxu0 }
  0xf0   : > { %v1274_v9 = vpop.f32.mrb[3].mxu0  ;;  %v357_v10 = vsel %vm353_vm2, %v347_v8, -inf }
  0xf3   : > { %358 = vmax.xlane.f32.xlu0 %v357_v10 }
 0x109   : > { %471 = vrot.lane.b32.xlu0 %v1352_v1, %s1430_s24 }
 0x17c   : > { %v1498_v11 = vpop.xlane.xlu0 %355 }
 0x17d   : > { %370 = vperm.xlu1 %1350, %v1498_v11   ;;  %v362_v61 = vsub.f32 -inf, %v1498_v11 }
 0x17f   : > { %v364_v62 = vmul.f32 1.442695, %v362_v61 }
 0x180   : > { %v1501_v12 = vpop.xlane.xlu0 %358 }
 0x181   : > { %375 = vperm.xlu1 %1350, %v1501_v12   ;;  %v363_v4 = vsub.f32 -inf, %v1501_v12 }
 0x183   : > { %v366_v6 = vmul.f32 1.442695, %v363_v4 }
 0x184   : > { %v472_v20 = vpop.permute.xlu0 %471 }
 0x185   : > { %469 = vrot.lane.b32.xlu1 %v1353_v3, %s1430_s24  ;;  %v477_v24 = vsel %vm303_vm1, %v472_v20, 0 }
 0x189   : > { %647 = vrot.lane.b32.xlu1 %v1352_v1, %s1431_s28 }
 0x18d   : > { %645 = vrot.lane.b32.xlu1 %v1353_v3, %s1431_s28 }
 0x191   : > { %823 = vrot.lane.b32.xlu1 %v1352_v1, %s1432_s29 }
 0x195   : > { %821 = vrot.lane.b32.xlu1 %v1353_v3, %s1432_s29 }
 0x1fc   : > { %v371_v14 = vpop.permute.xlu1 %370 }
 0x1fd   : > { %v378_v15 = vsub.f32 %v344_v5, %v371_v14 }
 0x1ff   : > { %v380_v16 = vmul.f32 1.442695, %v378_v15 }
 0x200   : > { %v376_v17 = vpop.permute.xlu1 %375 }
 0x201   : > { %v379_v18 = vsub.f32 %v347_v8, %v376_v17  ;;  %1355 = vpow2.f32 %v380_v16 }
 0x203   : > { %v382_v19 = vmul.f32 1.442695, %v379_v18 }
 0x204   : > { %v470_v21 = vpop.permute.xlu1 %469 }
 0x205   : > { %1357 = vpow2.f32 %v382_v19 }
 0x206   : > { %1359 = vpow2.f32 %v364_v62 }
 0x208   : > { %v648_v26 = vpop.permute.xlu1 %647 }
 0x209   : > { %v653_v28 = vsel %vm303_vm1, %v648_v26, 0 }
 0x20b   : > { %v1517_v22 = vpop.eup %1355 }
 0x20c   : > { %v646_v27 = vpop.permute.xlu1 %645  ;;  %v388_v5 = vsel %vm353_vm2, %v1517_v22, 0.0 }
 0x20f   : > { %v1519_v23 = vpop.eup %1357 }
 0x210   : > { %v414_v25 = vpack.c.bf16 %v1519_v23, %v1517_v22  ;;  %v824_v29 = vpop.permute.xlu1 %823  ;;  %v391_v60 = vsel %vm353_vm2, %v1519_v23, 0.0  ;;  %v1589_v2 = vpop.eup %1359 }
 0x211   : > { %v829_v30 = vsel %vm303_vm1, %v824_v29, 0 }
 0x212   : > { %1278 = vmatmul.mubr.msk.bf16.vlgmr.msra.gmra.mrb[0].mxu1 %vm353_vm2, %v414_v25 }
 0x213   : > { %1282 = vmatpush3.bf16.xpose.msra.mxu1 %v477_v24  ;;  %1283 = vmatprep.mubr.msk.bf16.mxu1 %vm1428_vm0, %v1427_v0 }
 0x214   : > { %1293 = vmatprep.subr.bf16.mxu1 %v1427_v0  ;;  %v822_v31 = vpop.permute.xlu1 %821 }
 0x21a   : > { %1284 = vmatmul.mubr.msk.bf16.vlgmr.msra.gmra.mrb[4].mxu1 %vm303_vm1, %v470_v21 }
 0x21b   : > { %1294 = vmatpush3.bf16.xpose.msra.mxu1 %v653_v28  ;;  %1295 = vmatprep.mubr.msk.bf16.mxu1 %vm1428_vm0, %v1427_v0 }
 0x21c   : > { %1305 = vmatprep.subr.bf16.mxu1 %v1427_v0 }
 0x222   : > { %1296 = vmatmul.mubr.msk.bf16.vlgmr.msra.gmra.mrb[8].mxu1 %vm303_vm1, %v646_v27 }
 0x223   : > { %1306 = vmatpush3.bf16.xpose.msra.mxu1 %v829_v30  ;;  %1307 = vmatprep.mubr.msk.bf16.mxu1 %vm1428_vm0, %v1427_v0 }
 0x22a   : > { %1308 = vmatmul.mubr.msk.bf16.vlgmr.msra.gmra.mrb[12].mxu1 %vm303_vm1, %v822_v31 }
 0x2e5   : > { %v1538_v32 = vpop.f32.mrb[0].mxu1 }
 0x2e6   : > { %v1279_v33 = vpop.f32.mrb[1].mxu1 }
 0x2e7   : > { %v1540_v34 = vpop.f32.mrb[2].mxu1 }
 0x2e8   : > { %v1280_v35 = vpop.f32.mrb[3].mxu1 }
 0x2ed   : > { %v1542_v36 = vpop.f32.mrb[4].mxu1 }
 0x2ee   : > { %v1285_v37 = vpop.f32.mrb[5].mxu1  ;;  %v523_v38 = vsel %vm353_vm2, %v1542_v36, -inf }
 0x2ef   : > { %524 = vmax.xlane.f32.xlu1 %v523_v38  ;;  %v1546_v39 = vpop.f32.mrb[6].mxu1 }
 0x2f0   : > { %v1286_v40 = vpop.f32.mrb[7].mxu1  ;;  %v526_v41 = vsel %vm353_vm2, %v1546_v39, -inf }
 0x2f1   : > { %527 = vmax.xlane.f32.xlu0 %v526_v41 }
 0x2f5   : > { %v1550_v42 = vpop.f32.mrb[8].mxu1 }
 0x2f6   : > { %v1297_v43 = vpop.f32.mrb[9].mxu1  ;;  %v699_v44 = vsel %vm353_vm2, %v1550_v42, -inf }
 0x2f7   : > { %700 = vmax.xlane.f32.xlu0 %v699_v44  ;;  %v1554_v45 = vpop.f32.mrb[10].mxu1 }
 0x2f8   : > { %v1298_v46 = vpop.f32.mrb[11].mxu1  ;;  %v702_v47 = vsel %vm353_vm2, %v1554_v45, -inf }
 0x2f9   : > { %703 = vmax.xlane.f32.xlu1 %v702_v47 }
 0x2fd   : > { %v1558_v48 = vpop.f32.mrb[12].mxu1 }
 0x2fe   : > { %v875_v49 = vsel %vm353_vm2, %v1558_v48, -inf  ;;  %v1309_v50 = vpop.f32.mrb[13].mxu1 }
 0x2ff   : > { %876 = vmax.xlane.f32.xlu0 %v875_v49  ;;  %v1562_v51 = vpop.f32.mrb[14].mxu1 }
 0x300   : > { %v878_v52 = vsel %vm353_vm2, %v1562_v51, -inf  ;;  %v1310_v53 = vpop.f32.mrb[15].mxu1 }
 0x301   : > { %879 = vmax.xlane.f32.xlu1 %v878_v52 }
 0x37c   : > { %v525_v54 = vpop.xlane.xlu1 %524 }
 0x37d   : > { %539 = vperm.xlu0 %1351, %v525_v54   ;;  %v531_v63 = vsub.f32 -inf, %v525_v54 }
 0x37e   : > { %v528_v55 = vpop.xlane.xlu0 %527 }
 0x37f   : > { %544 = vperm.xlu1 %1350, %v528_v55   ;;  %v533_v1 = vmul.f32 1.442695, %v531_v63  ;;  %v532_v7 = vsub.f32 -inf, %v528_v55 }
 0x381   : > { %937 = vrot.lane.b32.xlu0 %v1509_v13, %s1432_s29  ;;  %1361 = vpow2.f32 %v533_v1  ;;  %v535_v8 = vmul.f32 1.442695, %v532_v7 }
 0x382   : > { %1363 = vpow2.f32 %v366_v6 }
 0x383   : > { %1365 = vpow2.f32 %v535_v8 }
 0x384   : > { %v1568_v56 = vpop.xlane.xlu0 %700 }
 0x385   : > { %715 = vperm.xlu1 %1350, %v1568_v56  }
 0x386   : > { %v1571_v57 = vpop.xlane.xlu1 %703 }
 0x387   : > { %v708_v62 = vsub.f32 -inf, %v1571_v57 }
 0x389   : > { %720 = vperm.xlu1 %1350, %v1571_v57  }
 0x38b   : > { %v1592_v3 = vpop.eup %1361 }
 0x38c   : > { %v1576_v58 = vpop.xlane.xlu0 %876  ;;  %v1598_v9 = vpop.eup %1363 }
 0x38d   : > { %585 = vrot.lane.b32.xlu1 %v1509_v13, %s1430_s24  ;;  %v1601_v10 = vpop.eup %1365 }
 0x38e   : > { %v1579_v59 = vpop.xlane.xlu1 %879 }
 0x38f   : > { %v884_v1 = vsub.f32 -inf, %v1579_v59 }
 0x391   : > { %891 = vperm.xlu1 %1350, %v1576_v58  }
 0x395   : > { %896 = vperm.xlu1 %1350, %v1579_v59  }
 0x399   : > { %761 = vrot.lane.b32.xlu1 %v1509_v13, %s1431_s28 }
 0x3a0   : > { %392 = vadd.xlane.f32.xlu0 %v391_v60  ;;  %v707_v60 = vsub.f32 -inf, %v1568_v56  ;;  %v387_v56 = vmul.f32 0.0, %v1598_v9 }
 0x3a2   : > { %v709_v61 = vmul.f32 1.442695, %v707_v60 }
 0x3b6   : > { %404 = vperm.xlu0 %1351, %v1589_v2  }
 0x3ba   : > { %574 = vperm.xlu0 %1351, %v1592_v3  }
 0x3bd   : > { %389 = vadd.xlane.f32.xlu1 %v388_v5  ;;  %v711_v5 = vmul.f32 1.442695, %v708_v62 }
 0x3ce   : > { %409 = vperm.xlu1 %1350, %v1598_v9  }
 0x3d2   : > { %579 = vperm.xlu1 %1350, %v1601_v10  }
 0x3fc   : > { %v540_v11 = vpop.permute.xlu0 %539 }
 0x3fd   : > { %v547_v12 = vsub.f32 %v1542_v36, %v540_v11 }
 0x3fe   : > { %v545_v13 = vpop.permute.xlu1 %544 }
 0x3ff   : > { %v549_v14 = vmul.f32 1.442695, %v547_v12  ;;  %v548_v15 = vsub.f32 %v1546_v39, %v545_v13 }
 0x400   : > { %v938_v43 = vpop.permute.xlu0 %937 }
 0x401   : > { %1367 = vpow2.f32 %v549_v14  ;;  %v551_v16 = vmul.f32 1.442695, %v548_v15  ;;  %v557_v15 = vmul.f32 0.0, %v1601_v10 }
 0x403   : > { %1369 = vpow2.f32 %v551_v16 }
 0x404   : > { %v716_v17 = vpop.permute.xlu1 %715 }
 0x405   : > { %v723_v18 = vsub.f32 %v1550_v42, %v716_v17 }
 0x407   : > { %v725_v19 = vmul.f32 1.442695, %v723_v18 }
 0x408   : > { %v721_v20 = vpop.permute.xlu1 %720 }
 0x409   : > { %1371 = vpow2.f32 %v725_v19  ;;  %v724_v21 = vsub.f32 %v1554_v45, %v721_v20 }
 0x40b   : > { %v1368_v22 = vpop.eup %1367  ;;  %v727_v23 = vmul.f32 1.442695, %v724_v21 }
 0x40c   : > { %v586_v24 = vpop.permute.xlu1 %585  ;;  %v558_v25 = vsel %vm353_vm2, %v1368_v22, 0.0 }
 0x40d   : > { %v1370_v26 = vpop.eup %1369  ;;  %1373 = vpow2.f32 %v727_v23  ;;  %559 = vadd.xlane.f32.xlu1 %v558_v25  ;;  %1288 = vmatpush3.bf16.msra.mxu0 %v586_v24 }
 0x40e   : > { %v561_v27 = vsel %vm353_vm2, %v1370_v26, 0.0  ;;  %v584_v28 = vpack.c.bf16 %v1370_v26, %v1368_v22  ;;  %1299 = vmatprep.subr.bf16.mxu0 %v1427_v0 }
 0x40f   : > { %562 = vadd.xlane.f32.xlu0 %v561_v27 }
 0x410   : > { %1290 = vmatmul.mubr.msk.bf16.vlgmr.msra.gmra.mrb[4].mxu0 %vm353_vm2, %v584_v28  ;;  %v892_v29 = vpop.permute.xlu1 %891 }
 0x411   : > { %v899_v30 = vsub.f32 %v1558_v48, %v892_v29  ;;  %1301 = vmatprep.mubr.msk.bf16.mxu0 %vm1428_vm0, %v1427_v0  ;;  %v400_v48 = vld [vmem:[#allocation4] sm:$0xff]  ;;  %v883_v29 = vsub.f32 -inf, %v1576_v58 }
 0x413   : > { %v1372_v31 = vpop.eup %1371  ;;  %v901_v33 = vmul.f32 1.442695, %v899_v30  ;;  %v885_v30 = vmul.f32 1.442695, %v883_v29 }
 0x414   : > { %v897_v35 = vpop.permute.xlu1 %896  ;;  %v734_v36 = vsel %vm353_vm2, %v1372_v31, 0.0 }
 0x415   : > { %v900_v37 = vsub.f32 %v1562_v51, %v897_v35  ;;  %735 = vadd.xlane.f32.xlu1 %v734_v36  ;;  %1375 = vpow2.f32 %v901_v33 }
 0x417   : > { %v1374_v38 = vpop.eup %1373  ;;  %v903_v39 = vmul.f32 1.442695, %v900_v37  ;;  %v556_v37 = vmul.f32 0.0, %v1592_v3 }
 0x418   : > { %v762_v40 = vpop.permute.xlu1 %761  ;;  %v737_v41 = vsel %vm353_vm2, %v1374_v38, 0.0  ;;  %v760_v42 = vpack.c.bf16 %v1374_v38, %v1372_v31  ;;  %v386_v31 = vmul.f32 0.0, %v1589_v2 }
 0x419   : > { %1377 = vpow2.f32 %v903_v39  ;;  %738 = vadd.xlane.f32.xlu0 %v737_v41  ;;  %1300 = vmatpush3.bf16.msra.mxu0 %v762_v40 }
 0x41a   : > { %1311 = vmatprep.subr.bf16.mxu0 %v1427_v0  ;;  %1379 = vpow2.f32 %v709_v61 }
 0x41b   : > { %1381 = vpow2.f32 %v711_v5 }
 0x41c   : > { %1302 = vmatmul.mubr.msk.bf16.vlgmr.msra.gmra.mrb[8].mxu0 %vm353_vm2, %v760_v42 }
 0x41d   : > { %1312 = vmatpush3.bf16.msra.mxu0 %v938_v43  ;;  %1313 = vmatprep.mubr.msk.bf16.mxu0 %vm1428_vm0, %v1427_v0  ;;  %v401_v0 = vld [vmem:[#allocation4 + $0x8] sm:$0xff] }
 0x41f   : > { %v1622_v44 = vpop.eup %1375 }
 0x420   : > { %v910_v27 = vsel %vm353_vm2, %v1622_v44, 0.0 }
 0x423   : > { %v1624_v45 = vpop.eup %1377 }
 0x424   : > { %v936_v46 = vpack.c.bf16 %v1624_v45, %v1622_v44  ;;  %v1380_v7 = vpop.eup %1379  ;;  %v913_v28 = vsel %vm353_vm2, %v1624_v45, 0.0 }
 0x425   : > { %v1382_v16 = vpop.eup %1381  ;;  %v732_v41 = vmul.f32 0.0, %v1380_v7 }
 0x426   : > { %1314 = vmatmul.mubr.msk.bf16.vlgmr.msra.gmra.mrb[12].mxu0 %vm353_vm2, %v936_v46  ;;  %v733_v9 = vmul.f32 0.0, %v1382_v16 }
 0x42d   : > { %v393_v47 = vpop.xlane.xlu0 %392 }
 0x42e   : > { %v395_v8 = vadd.f32 %v393_v47, %v387_v56 }
 0x435   : > { %v405_v49 = vpop.permute.xlu0 %404 }
 0x436   : > { %v412_v50 = vmul.f32 %v405_v49, %v400_v48 }
 0x438   : > { %v465_v51 = vadd.f32 %v1538_v32, %v412_v50 }
 0x439   : > { %v1639_v11 = vpop.permute.xlu0 %574 }
 0x43a   : > { %467 = vst.msk [vmem:[#allocation4] sm:$0xff] %vm303_vm1, %v465_v51 }
 0x441   : > { %v570_v44 = vld [vmem:[#allocation4] sm:$0xff] }
 0x442   : > { %v582_v3 = vmul.f32 %v1639_v11, %v570_v44 }
 0x44a   : > { %v1631_v52 = vpop.xlane.xlu1 %389 }
 0x44b   : > { %v394_v33 = vadd.f32 %v1631_v52, %v386_v31 }
 0x44e   : > { %v410_v53 = vpop.permute.xlu1 %409 }
 0x44f   : > { %v413_v54 = vmul.f32 %v410_v53, %v401_v0 }
 0x451   : > { %v466_v55 = vadd.f32 %v1540_v34, %v413_v54  ;;  %v887_v34 = vmul.f32 1.442695, %v884_v1 }
 0x452   : > { %v580_v35 = vpop.permute.xlu1 %579 }
 0x453   : > { %468 = vst.msk [vmem:[#allocation4 + $0x8] sm:$0xff] %vm303_vm1, %v466_v55  ;;  %1383 = vpow2.f32 %v887_v34 }
 0x454   : > { %1385 = vrcp.f32 %v395_v8 }
 0x45a   : > { %v571_v45 = vld [vmem:[#allocation4 + $0x8] sm:$0xff] }
 0x45b   : > { %v583_v47 = vmul.f32 %v580_v35, %v571_v45 }
 0x45d   : > { %v1642_v19 = vpop.eup %1383 }
 0x45e   : > { %v1386_v23 = vpop.eup %1385  ;;  %v909_v62 = vmul.f32 0.0, %v1642_v19 }
 0x49a   : > { %v560_v36 = vpop.xlane.xlu1 %559 }
 0x49b   : > { %v564_v38 = vadd.f32 %v560_v36, %v556_v37 }
 0x49c   : > { %v563_v13 = vpop.xlane.xlu0 %562 }
 0x49d   : > { %v565_v17 = vadd.f32 %v563_v13, %v557_v15 }
 0x49f   : > { %1387 = vrcp.f32 %v565_v17 }
 0x4a2   : > { %v736_v39 = vpop.xlane.xlu1 %735 }
 0x4a3   : > { %v740_v42 = vadd.f32 %v736_v39, %v732_v41 }
 0x4a6   : > { %v739_v18 = vpop.xlane.xlu0 %738 }
 0x4a7   : > { %v741_v20 = vadd.f32 %v739_v18, %v733_v9 }
 0x4a9   : > { %1389 = vrcp.f32 %v741_v20  ;;  %v1388_v10 = vpop.eup %1387 }
 0x4aa   : > { %1391 = vpow2.f32 %v885_v30 }
 0x4ab   : > { %1393 = vrcp.f32 %v394_v33 }
 0x4ac   : > { %1395 = vrcp.f32 %v564_v38 }
 0x4ad   : > { %1397 = vrcp.f32 %v740_v42 }
 0x4b3   : > { %v1390_v26 = vpop.eup %1389 }
 0x4b4   : > { %v1392_v40 = vpop.eup %1391 }
 0x4b5   : > { %v1394_v58 = vpop.eup %1393  ;;  %v908_v55 = vmul.f32 0.0, %v1392_v40 }
 0x4b6   : > { %v1396_v2 = vpop.eup %1395 }
 0x4b7   : > { %v1398_v43 = vpop.eup %1397 }
 0x4e3   : > { %v625_v63 = vpop.f32.mrb[4].mxu0 }
 0x4e4   : > { %634 = vrot.lane.b32.xlu1 %v625_v63, %s1433_s30  ;;  %v1291_v32 = vpop.f32.mrb[5].mxu0 }
 0x4e5   : > { %v628_v4 = vpop.f32.mrb[6].mxu0 }
 0x4e6   : > { %636 = vrot.lane.b32.xlu0 %v628_v4, %s1433_s30  ;;  %v1292_v6 = vpop.f32.mrb[7].mxu0 }
 0x4ea   : > { %750 = vperm.xlu0 %1351, %v1380_v7  }
 0x4ef   : > { %v801_v57 = vpop.f32.mrb[8].mxu0 }
 0x4f0   : > { %810 = vrot.lane.b32.xlu0 %v801_v57, %s1434_s4  ;;  %v1303_v12 = vpop.f32.mrb[9].mxu0 }
 0x4f1   : > { %v804_v59 = vpop.f32.mrb[10].mxu0 }
 0x4f2   : > { %v1304_v14 = vpop.f32.mrb[11].mxu0 }
 0x4f4   : > { %812 = vrot.lane.b32.xlu0 %v804_v59, %s1434_s4 }
 0x4f8   : > { %931 = vperm.xlu0 %1351, %v1642_v19  }
 0x4f9   : > { %v977_v21 = vpop.f32.mrb[12].mxu0 }
 0x4fa   : > { %v1315_v22 = vpop.f32.mrb[13].mxu0 }
 0x4fb   : > { %v980_v24 = vpop.f32.mrb[14].mxu0 }
 0x4fc   : > { %1013 = vperm.xlu0 %1351, %v1386_v23   ;;  %v1316_v25 = vpop.f32.mrb[15].mxu0 }
 0x500   : > { %988 = vrot.lane.b32.xlu0 %v980_v24, %s1435_s5 }
 0x504   : > { %1042 = vperm.xlu0 %1351, %v1388_v10  }
 0x508   : > { %911 = vadd.xlane.f32.xlu1 %v910_v27  ;;  %1071 = vperm.xlu0 %1351, %v1390_v26  }
 0x50c   : > { %914 = vadd.xlane.f32.xlu1 %v913_v28 }
 0x51d   : > { %755 = vperm.xlu1 %1350, %v1382_v16  }
 0x521   : > { %926 = vperm.xlu1 %1350, %v1392_v40  }
 0x525   : > { %1008 = vperm.xlu1 %1350, %v1394_v58  }
 0x529   : > { %986 = vrot.lane.b32.xlu1 %v977_v21, %s1435_s5 }
 0x52d   : > { %1037 = vperm.xlu1 %1350, %v1396_v2  }
 0x531   : > { %1066 = vperm.xlu1 %1350, %v1398_v43  }
 0x556   : > { %v635_v46 = vpop.permute.xlu1 %634 }
 0x557   : > { %v640_v48 = vadd.f32 %v635_v46, %v582_v3 }
 0x558   : > { %v637_v49 = vpop.permute.xlu0 %636 }
 0x559   : > { %643 = vst.msk [vmem:[#allocation4] sm:$0xff] %vm642_vm4, %v640_v48  ;;  %v641_v50 = vadd.f32 %v637_v49, %v583_v47 }
 0x55b   : > { %644 = vst.msk [vmem:[#allocation4 + $0x8] sm:$0xff] %vm642_vm4, %v641_v50 }
 0x560   : > { %v746_v52 = vld [vmem:[#allocation4] sm:$0xff] }
 0x562   : > { %v747_v5 = vld [vmem:[#allocation4 + $0x8] sm:$0xff] }
 0x569   : > { %v751_v51 = vpop.permute.xlu0 %750 }
 0x56a   : > { %v758_v0 = vmul.f32 %v751_v51, %v746_v52 }
 0x56d   : > { %v811_v53 = vpop.permute.xlu0 %810 }
 0x56e   : > { %v816_v54 = vadd.f32 %v811_v53, %v758_v0 }
 0x570   : > { %819 = vst.msk [vmem:[#allocation4] sm:$0xff] %vm818_vm5, %v816_v54 }
 0x571   : > { %v813_v1 = vpop.permute.xlu0 %812 }
 0x577   : > { %v932_v7 = vpop.permute.xlu0 %931  ;;  %v922_v59 = vld [vmem:[#allocation4] sm:$0xff] }
 0x57b   : > { %v1014_v11 = vpop.permute.xlu0 %1013 }
 0x57f   : > { %v989_v18 = vpop.permute.xlu0 %988 }
 0x583   : > { %v1043_v20 = vpop.permute.xlu0 %1042 }
 0x587   : > { %v1072_v28 = vpop.permute.xlu0 %1071 }
 0x595   : > { %v912_v60 = vpop.xlane.xlu1 %911 }
 0x596   : > { %v916_v61 = vadd.f32 %v912_v60, %v908_v55 }
 0x598   : > { %1399 = vrcp.f32 %v916_v61 }
 0x599   : > { %v915_v63 = vpop.xlane.xlu1 %914 }
 0x59a   : > { %v917_v32 = vadd.f32 %v915_v63, %v909_v62 }
 0x59c   : > { %1401 = vrcp.f32 %v917_v32 }
 0x59d   : > { %v756_v4 = vpop.permute.xlu1 %755 }
 0x59e   : > { %v759_v6 = vmul.f32 %v756_v4, %v747_v5 }
 0x5a0   : > { %v817_v34 = vadd.f32 %v813_v1, %v759_v6 }
 0x5a1   : > { %v927_v56 = vpop.permute.xlu1 %926 }
 0x5a2   : > { %v1400_v8 = vpop.eup %1399  ;;  %820 = vst.msk [vmem:[#allocation4 + $0x8] sm:$0xff] %vm818_vm5, %v817_v34  ;;  %v934_v13 = vmul.f32 %v927_v56, %v922_v59 }
 0x5a3   : > { %1095 = vperm.xlu1 %1350, %v1400_v8  }
 0x5a5   : > { %v1009_v57 = vpop.permute.xlu1 %1008 }
 0x5a6   : > { %v1402_v12 = vpop.eup %1401 }
 0x5a7   : > { %1100 = vperm.xlu0 %1351, %v1402_v12  }
 0x5a9   : > { %v923_v14 = vld [vmem:[#allocation4 + $0x8] sm:$0xff]  ;;  %v987_v15 = vpop.permute.xlu1 %986 }
 0x5aa   : > { %v935_v16 = vmul.f32 %v932_v7, %v923_v14  ;;  %v992_v17 = vadd.f32 %v987_v15, %v934_v13 }
 0x5ac   : > { %v993_v19 = vadd.f32 %v989_v18, %v935_v16  ;;  %995 = vst.msk [vmem:[#allocation4] sm:$0xff] %vm994_vm6, %v992_v17 }
 0x5ad   : > { %v1038_v9 = vpop.permute.xlu1 %1037 }
 0x5ae   : > { %996 = vst.msk [vmem:[#allocation4 + $0x8] sm:$0xff] %vm994_vm6, %v993_v19 }
 0x5b1   : > { %v1067_v26 = vpop.permute.xlu1 %1066 }
 0x5b3   : > { %v1004_v21 = vld [vmem:[#allocation4] sm:$0xff] }
 0x5b4   : > { %v1016_v22 = vmul.f32 %v1009_v57, %v1004_v21  ;;  %v1045_v24 = vmul.f32 %v1038_v9, %v1004_v21  ;;  %v1074_v29 = vmul.f32 %v1067_v26, %v1004_v21 }
 0x5b5   : > { %v1005_v23 = vld [vmem:[#allocation4 + $0x8] sm:$0xff] }
 0x5b6   : > { %v1245_v25 = vpack.c.bf16 %v1016_v22, %v1016_v22  ;;  %v1017_v10 = vmul.f32 %v1014_v11, %v1005_v23  ;;  %v1046_v27 = vmul.f32 %v1043_v20, %v1005_v23  ;;  %v1075_v31 = vmul.f32 %v1072_v28, %v1005_v23 }
 0x5b7   : > { %v1247_v33 = vpack.c.bf16 %v1045_v24, %v1045_v24  ;;  %v1249_v36 = vpack.c.bf16 %v1074_v29, %v1074_v29 }
 0x5b8   : > { %1027 = vst.msk [vmem:[%s1661_s8] sm:$0xf] %vm1026_vm7, %v1245_v25  ;;  %v1246_v30 = vpack.c.bf16 %v1017_v10, %v1017_v10  ;;  %v1248_v35 = vpack.c.bf16 %v1046_v27, %v1046_v27  ;;  %v1250_v37 = vpack.c.bf16 %v1075_v31, %v1075_v31 }
 0x5b9   : > { %1056 = vst.msk [vmem:[%s1661_s8] sm:$0xf] %vm1055_vm8, %v1247_v33 }
 0x5ba   : > { %1028 = vst.msk [vmem:[%s1661_s8 + $0x4] sm:$0xf] %vm1026_vm7, %v1246_v30 }
 0x5bb   : > { %1057 = vst.msk [vmem:[%s1661_s8 + $0x4] sm:$0xf] %vm1055_vm8, %v1248_v35 }
 0x5bc   : > { %1085 = vst.msk [vmem:[%s1661_s8] sm:$0xf] %vm1084_vm9, %v1249_v36  ;;  %1086 = vst.msk [vmem:[%s1661_s8 + $0x4] sm:$0xf] %vm1084_vm9, %v1250_v37 }
 0x622   : > { %v1096_v38 = vpop.permute.xlu1 %1095 }
 0x623   : > { %v1103_v39 = vmul.f32 %v1096_v38, %v1004_v21 }
 0x625   : > { %v1251_v40 = vpack.c.bf16 %v1103_v39, %v1103_v39 }
 0x626   : > { %v1101_v41 = vpop.permute.xlu0 %1100 }
 0x627   : > { %1114 = vst.msk [vmem:[%s1661_s8] sm:$0xf] %vm1113_vm10, %v1251_v40  ;;  %v1104_v42 = vmul.f32 %v1101_v41, %v1005_v23 }
 0x629   : > { %v1252_v58 = vpack.c.bf16 %v1104_v42, %v1104_v42 }
 0x62b   : > { %1115 = vst.msk [vmem:[%s1661_s8 + $0x4] sm:$0xf] %vm1113_vm10, %v1252_v58 }
 0x62c PF: > { %s13_s14 = sadd.s32 1, %s1425_s14   ;;  %s1684_s12 = smov %s1421_s13 }
 0x62d   : > { %p10_p5 = scmp.ge.s32.totalorder %s13_s14, 4   ;;  %s1685_s13 = smov %s1687_s15 }
 0x62f   :  { %12 = sbr.rel (!%p10_p5) target bundleno = 2 (0x2), region = 82 }

// kernel: _basic_transformer_block.11
= control target key start
LH: loop header
LB: loop body
LE: loop exit
PB: predicated region body
PF: predicated region fallthrough
CT: control target
= control target key end

     0   :  { %vm83_vm0 = vcmask 261120   ;;  %s885_s1 = inlined_call_operand.vmem [shape: bf16[32,32], index: 1, kind: input, shape index: {}]   ;;  %s886_s0 = inlined_call_operand.vmem [shape: bf16[32,32], index: 0, kind: input, shape index: {}]   ;;  %s887_s2 = inlined_call_operand.vmem [shape: f32[1,32], index: 2, kind: input, shape index: {}]   ;;  %s888_s3 = inlined_call_operand.vmem [shape: f32[32,32], index: 3, kind: input, shape index: {}, may-alias: {3,12}]   ;;  %s889_s11 = inlined_call_operand.vmem [shape: f32[1,32], index: 11, kind: input, shape index: {}]   ;;  %s890_s6 = inlined_call_operand.vmem [shape: bf16[32,128], index: 6, kind: input, shape index: {}]   ;;  %s891_s8 = inlined_call_operand.vmem [shape: bf16[32,128], index: 8, kind: input, shape index: {}]   ;;  %s892_s4 = inlined_call_operand.vmem [shape: f32[1,32], index: 4, kind: input, shape index: {}]   ;;  %s893_s5 = inlined_call_operand.vmem [shape: f32[1,32], index: 5, kind: input, shape index: {}]   ;;  %s894_s10 = inlined_call_operand.vmem [shape: bf16[128,32], index: 10, kind: input, shape index: {}]   ;;  %s895_s9 = inlined_call_operand.vmem [shape: f32[1,128], index: 9, kind: input, shape index: {}]   ;;  %s896_s7 = inlined_call_operand.vmem [shape: f32[1,128], index: 7, kind: input, shape index: {}]   ;;  %s897_s12 = inlined_call_operand.vmem [shape: f32[32,32], index: 12, kind: output, shape index: {}, may-alias: {3,12}]  }
   0x1   :  { %v670_v0 = vld [vmem:[%s885_s1] sm:$0xff]   ;;  %v671_v1 = vld [vmem:[%s885_s1 + $0x8] sm:$0xff]   ;;  %v141_v6 = vld [vmem:[%s888_s3 + $0x10] sm:$0xff] }
   0x2   :  { %626 = vmatprep.subr.bf16.mxu0 %v670_v0  ;;  %v672_v2 = vld [vmem:[%s886_s0] sm:$0xff]   ;;  %v673_v3 = vld [vmem:[%s886_s0 + $0x8] sm:$0xff]   ;;  %v142_v13 = vld [vmem:[%s888_s3 + $0x18] sm:$0xff] }
   0x3   :  { %627 = vmatpush3.bf16.msra.mxu0 %v670_v0  ;;  %630 = vmatprep.mubr.msk.bf16.mxu0 %vm83_vm0, %v672_v2  ;;  %v576_v4 = vld [vmem:[%s887_s2] ss:$0 sm:$0xff]  ;;  %v140_v17 = vld [vmem:[%s888_s3 + $0x8] sm:$0xff] }
   0x4   :  { %628 = vmatprep.subr.bf16.mxu0 %v671_v1  ;;  %v139_v9 = vld [vmem:[%s888_s3] sm:$0xff]  ;;  %v675_v51 = vld [vmem:[%s890_s6 + $0x8] sm:$0xff]  }
   0x5   :  { %v585_v10 = vld [vmem:[%s889_s11] ss:$0 sm:$0xff] }
   0x6   :  { %v674_v50 = vld [vmem:[%s890_s6] sm:$0xff]  }
   0x7   :  { %629 = vmatpush3.bf16.msra.mxu0 %v671_v1  ;;  %v676_v52 = vld [vmem:[%s891_s8] sm:$0xff]  }
   0x8   :  { %634 = vmatprep.subr.bf16.mxu0 %v674_v50 }
   0xa   :  { %631 = vmatmul.mubr.msk.bf16.vlgmr.msra.gmra.mrb[0].mxu0 %vm83_vm0, %v673_v3  ;;  %v583_v3 = vld [vmem:[%s892_s4] ss:$0 sm:$0xff] }
   0xb   :  { %635 = vmatpush3.bf16.msra.mxu0 %v674_v50 }
   0xc   :  { %636 = vmatprep.subr.bf16.mxu0 %v675_v51 }
   0xf   :  { %637 = vmatpush3.bf16.msra.mxu0 %v675_v51 }
  0x10   :  { %642 = vmatprep.subr.bf16.mxu0 %v676_v52 }
  0xdd   :  { %v632_v5 = vpop.f32.mrb[0].mxu0 }
  0xde   :  { %v133_v7 = vadd.f32 %v632_v5, %v576_v4  ;;  %v124_v8 = vpop.f32.mrb[1].mxu0 }
  0xdf   :  { %v125_v11 = vadd.f32 %v576_v4, %v124_v8  ;;  %v633_v12 = vpop.f32.mrb[2].mxu0  ;;  %v584_v8 = vld [vmem:[%s893_s5] ss:$0 sm:$0xff] }
  0xe0   :  { %v145_v14 = vadd.f32 %v141_v6, %v133_v7  ;;  %v136_v15 = vadd.f32 %v633_v12, %v576_v4  ;;  %v127_v16 = vpop.f32.mrb[3].mxu0 }
  0xe1   :  { %v143_v18 = vadd.f32 %v139_v9, %v125_v11  ;;  %v128_v19 = vadd.f32 %v576_v4, %v127_v16 }
  0xe2   :  { %v235_v20 = vadd.f32 %v585_v10, %v145_v14  ;;  %v146_v21 = vadd.f32 %v142_v13, %v136_v15  ;;  %v155_v22 = vsel %vm83_vm0, %v145_v14, 0.0 }
  0xe3   :  { %v233_v23 = vadd.f32 %v585_v10, %v143_v18  ;;  %v144_v24 = vadd.f32 %v140_v17, %v128_v19  ;;  %156 = vadd.xlane.f32.xlu1 %v155_v22  ;;  %v149_v25 = vsel %vm83_vm0, %v143_v18, 0.0  ;;  %v677_v22 = vld [vmem:[%s891_s8 + $0x8] sm:$0xff]  }
  0xe4   :  { %239 = vst.msk [vmem:[#allocation2 + $0x10] sm:$0xff] %vm83_vm0, %v235_v20  ;;  %v236_v26 = vadd.f32 %v585_v10, %v146_v21  ;;  %150 = vadd.xlane.f32.xlu0 %v149_v25  ;;  %v158_v28 = vsel %vm83_vm0, %v146_v21, 0.0  ;;  %v679_v25 = vld [vmem:[%s894_s10 + $0x8] sm:$0xff]  }
  0xe5   :  { %237 = vst.msk [vmem:[#allocation2] sm:$0xff] %vm83_vm0, %v233_v23  ;;  %v234_v27 = vadd.f32 %v585_v10, %v144_v24  ;;  %v152_v29 = vsel %vm83_vm0, %v144_v24, 0.0 }
  0xe6   :  { %240 = vst.msk [vmem:[#allocation2 + $0x18] sm:$0xff] %vm83_vm0, %v236_v26  ;;  %v680_v26 = vld [vmem:[%s894_s10 + $0x10] sm:$0xff]  }
  0xe7   :  { %238 = vst.msk [vmem:[#allocation2 + $0x8] sm:$0xff] %vm83_vm0, %v234_v27  ;;  %159 = vadd.xlane.f32.xlu1 %v158_v28  ;;  %v681_v27 = vld [vmem:[%s894_s10 + $0x18] sm:$0xff]   ;;  %v682_v28 = vld [vmem:[%s894_s10 + $0x20] sm:$0xff]  }
  0xe8   :  { %153 = vadd.xlane.f32.xlu0 %v152_v29  ;;  %v683_v29 = vld [vmem:[%s894_s10 + $0x28] sm:$0xff]  }
 0x170   :  { %v157_v30 = vpop.xlane.xlu1 %156 }
 0x171   :  { %v164_v31 = vmul.f32 0.03125, %v157_v30  ;;  %v151_v32 = vpop.xlane.xlu0 %150  ;;  %v684_v30 = vld [vmem:[%s894_s10 + $0x30] sm:$0xff]  }
 0x172   :  { %v162_v33 = vmul.f32 0.03125, %v151_v32 }
 0x173   :  { %v168_v34 = vsub.f32 %v145_v14, %v164_v31  ;;  %v685_v31 = vld [vmem:[%s894_s10 + $0x38] sm:$0xff]  }
 0x174   :  { %v166_v35 = vsub.f32 %v143_v18, %v162_v33  ;;  %v160_v36 = vpop.xlane.xlu1 %159 }
 0x175   :  { %v165_v37 = vmul.f32 0.03125, %v160_v36  ;;  %v154_v38 = vpop.xlane.xlu0 %153  ;;  %v172_v44 = vmul.f32 %v168_v34, %v168_v34  ;;  %v591_v36 = vld [vmem:[%s895_s9] ss:$0 sm:$0xff] }
 0x176   :  { %v163_v39 = vmul.f32 0.03125, %v154_v38  ;;  %v170_v40 = vmul.f32 %v166_v35, %v166_v35 }
 0x177   :  { %v169_v41 = vsub.f32 %v146_v21, %v165_v37  ;;  %v180_v46 = vsel %vm83_vm0, %v172_v44, 0.0 }
 0x178   :  { %v167_v42 = vsub.f32 %v144_v24, %v163_v39  ;;  %v174_v43 = vsel %vm83_vm0, %v170_v40, 0.0  ;;  %v678_v24 = vld [vmem:[%s894_s10] sm:$0xff]  }
 0x179   :  { %175 = vadd.xlane.f32.xlu0 %v174_v43  ;;  %v173_v48 = vmul.f32 %v169_v41, %v169_v41  ;;  %650 = vmatprep.subr.bf16.mxu1 %v678_v24 }
 0x17a   :  { %v171_v45 = vmul.f32 %v167_v42, %v167_v42  ;;  %651 = vmatpush3.bf16.msra.mxu1 %v678_v24 }
 0x17b   :  { %v183_v49 = vsel %vm83_vm0, %v173_v48, 0.0  ;;  %652 = vmatprep.subr.bf16.mxu1 %v679_v25 }
 0x17c   :  { %v177_v47 = vsel %vm83_vm0, %v171_v45, 0.0 }
 0x17d   :  { %181 = vadd.xlane.f32.xlu0 %v180_v46  ;;  %178 = vadd.xlane.f32.xlu1 %v177_v47 }
 0x17e   :  { %653 = vmatpush3.bf16.msra.mxu1 %v679_v25 }
 0x17f   :  { %654 = vmatprep.subr.bf16.mxu1 %v680_v26 }
 0x181   :  { %184 = vadd.xlane.f32.xlu1 %v183_v49 }
 0x182   :  { %655 = vmatpush3.bf16.msra.mxu1 %v680_v26 }
 0x183   :  { %656 = vmatprep.subr.bf16.mxu1 %v681_v27 }
 0x186   :  { %657 = vmatpush3.bf16.msra.mxu1 %v681_v27 }
 0x187   :  { %658 = vmatprep.subr.bf16.mxu1 %v682_v28 }
 0x18a   :  { %659 = vmatpush3.bf16.msra.mxu1 %v682_v28  ;;  %v438_v28 = vld [vmem:[#allocation2 + $0x10] sm:$0xff] }
 0x18b   :  { %660 = vmatprep.subr.bf16.mxu1 %v683_v29 }
 0x18e   :  { %661 = vmatpush3.bf16.msra.mxu1 %v683_v29 }
 0x18f   :  { %662 = vmatprep.subr.bf16.mxu1 %v684_v30 }
 0x192   :  { %663 = vmatpush3.bf16.msra.mxu1 %v684_v30 }
 0x193   :  { %664 = vmatprep.subr.bf16.mxu1 %v685_v31 }
 0x196   :  { %665 = vmatpush3.bf16.msra.mxu1 %v685_v31  ;;  %v436_v31 = vld [vmem:[#allocation2] sm:$0xff] }
 0x206   :  { %v176_v53 = vpop.xlane.xlu0 %175 }
 0x207   :  { %v186_v54 = vmul.f32 0.03125, %v176_v53 }
 0x209   :  { %v190_v55 = vadd.f32 1e-05, %v186_v54 }
 0x20a   :  { %v179_v56 = vpop.xlane.xlu1 %178  ;;  %v182_v57 = vpop.xlane.xlu0 %181 }
 0x20b   :  { %686 = vrsqrt.f32 %v190_v55  ;;  %v187_v58 = vmul.f32 0.03125, %v179_v56  ;;  %v188_v59 = vmul.f32 0.03125, %v182_v57 }
 0x20d   :  { %v191_v60 = vadd.f32 1e-05, %v187_v58  ;;  %v192_v61 = vadd.f32 1e-05, %v188_v59 }
 0x20e   :  { %v185_v62 = vpop.xlane.xlu1 %184 }
 0x20f   :  { %688 = vrsqrt.f32 %v191_v60  ;;  %v189_v63 = vmul.f32 0.03125, %v185_v62 }
 0x210   :  { %690 = vrsqrt.f32 %v192_v61 }
 0x211   :  { %v193_v0 = vadd.f32 1e-05, %v189_v63 }
 0x213   :  { %692 = vrsqrt.f32 %v193_v0 }
 0x215   :  { %v687_v1 = vpop.eup %686 }
 0x216   :  { %v198_v2 = vmul.f32 %v687_v1, %v166_v35 }
 0x218   :  { %v208_v6 = vmul.f32 %v583_v3, %v198_v2  ;;  %v586_v2 = vld [vmem:[%s896_s7] ss:$0 sm:$0xff] }
 0x219   :  { %v689_v4 = vpop.eup %688 }
 0x21a   :  { %v691_v5 = vpop.eup %690  ;;  %v199_v7 = vmul.f32 %v689_v4, %v167_v42  ;;  %v218_v12 = vadd.f32 %v584_v8, %v208_v6 }
 0x21b   :  { %v200_v9 = vmul.f32 %v691_v5, %v168_v34 }
 0x21c   :  { %v209_v10 = vmul.f32 %v583_v3, %v199_v7 }
 0x21d   :  { %v693_v11 = vpop.eup %692  ;;  %v210_v14 = vmul.f32 %v583_v3, %v200_v9 }
 0x21e   :  { %v219_v13 = vadd.f32 %v584_v8, %v209_v10  ;;  %v201_v15 = vmul.f32 %v693_v11, %v169_v41 }
 0x21f   :  { %v220_v18 = vadd.f32 %v584_v8, %v210_v14 }
 0x220   :  { %v222_v16 = vpack.c.bf16 %v219_v13, %v218_v12  ;;  %v211_v17 = vmul.f32 %v583_v3, %v201_v15 }
 0x222   :  { %224 = vst.msk [vmem:[#allocation3] sm:$0xff] %vm83_vm0, %v222_v16  ;;  %v221_v19 = vadd.f32 %v584_v8, %v211_v17 }
 0x224   :  { %v223_v20 = vpack.c.bf16 %v221_v19, %v220_v18 }
 0x226   :  { %225 = vst.msk [vmem:[#allocation3 + $0x8] sm:$0xff] %vm83_vm0, %v223_v20 }
 0x229   :  { %v241_v21 = vld [vmem:[#allocation3] sm:$0xff] }
 0x22a   :  { %638 = vmatprep.mubr.msk.bf16.mxu0 %vm83_vm0, %v241_v21 }
 0x22d   :  { %v242_v23 = vld [vmem:[#allocation3 + $0x8] sm:$0xff] }
 0x22e   :  { %639 = vmatmul.mubr.msk.bf16.vlgmr.msra.gmra.mrb[4].mxu0 %vm83_vm0, %v242_v23 }
 0x22f   :  { %643 = vmatpush3.bf16.msra.mxu0 %v676_v52  ;;  %646 = vmatprep.mubr.msk.bf16.mxu0 %vm83_vm0, %v241_v21 }
 0x230   :  { %644 = vmatprep.subr.bf16.mxu0 %v677_v22 }
 0x233   :  { %645 = vmatpush3.bf16.msra.mxu0 %v677_v22 }
 0x236   :  { %647 = vmatmul.mubr.msk.bf16.vlgmr.msra.gmra.mrb[8].mxu0 %vm83_vm0, %v242_v23 }
 0x301   :  { %v640_v32 = vpop.f32.mrb[4].mxu0 }
 0x302   :  { %v307_v33 = vpop.f32.mrb[5].mxu0  ;;  %v316_v10 = vadd.f32 %v640_v32, %v586_v2 }
 0x303   :  { %v641_v34 = vpop.f32.mrb[6].mxu0  ;;  %v308_v14 = vadd.f32 %v586_v2, %v307_v33 }
 0x304   :  { %v310_v35 = vpop.f32.mrb[7].mxu0  ;;  %v319_v18 = vadd.f32 %v641_v34, %v586_v2 }
 0x305   :  { %v311_v21 = vadd.f32 %v586_v2, %v310_v35  ;;  %v437_v35 = vld [vmem:[#allocation2 + $0x8] sm:$0xff] }
 0x309   :  { %v648_v37 = vpop.f32.mrb[8].mxu0 }
 0x30a   :  { %v388_v38 = vadd.f32 %v648_v37, %v591_v36  ;;  %v379_v39 = vpop.f32.mrb[9].mxu0 }
 0x30b   :  { %v380_v40 = vadd.f32 %v591_v36, %v379_v39  ;;  %v649_v41 = vpop.f32.mrb[10].mxu0 }
 0x30c   :  { %v400_v42 = vmul.f32 0.044715, %v388_v38  ;;  %v391_v43 = vadd.f32 %v649_v41, %v591_v36  ;;  %v382_v44 = vpop.f32.mrb[11].mxu0  ;;  %v396_v4 = vmul.f32 0.5, %v388_v38 }
 0x30d   :  { %v398_v45 = vmul.f32 0.044715, %v380_v40  ;;  %v383_v46 = vadd.f32 %v591_v36, %v382_v44  ;;  %v394_v7 = vmul.f32 0.5, %v380_v40  ;;  %v439_v36 = vld [vmem:[#allocation2 + $0x18] sm:$0xff] }
 0x30e   :  { %v404_v47 = vmul.f32 %v400_v42, %v388_v38  ;;  %v401_v48 = vmul.f32 0.044715, %v391_v43  ;;  %v397_v11 = vmul.f32 0.5, %v391_v43 }
 0x30f   :  { %v402_v49 = vmul.f32 %v398_v45, %v380_v40  ;;  %v399_v50 = vmul.f32 0.044715, %v383_v46  ;;  %v395_v15 = vmul.f32 0.5, %v383_v46 }
 0x310   :  { %v408_v51 = vmul.f32 %v404_v47, %v388_v38  ;;  %v405_v52 = vmul.f32 %v401_v48, %v391_v43 }
 0x311   :  { %v403_v53 = vmul.f32 %v399_v50, %v383_v46  ;;  %v406_v54 = vmul.f32 %v402_v49, %v380_v40 }
 0x312   :  { %v412_v55 = vadd.f32 %v408_v51, %v388_v38  ;;  %v409_v56 = vmul.f32 %v405_v52, %v391_v43 }
 0x313   :  { %v407_v57 = vmul.f32 %v403_v53, %v383_v46  ;;  %v410_v58 = vadd.f32 %v406_v54, %v380_v40 }
 0x314   :  { %v413_v59 = vadd.f32 %v409_v56, %v391_v43  ;;  %v416_v60 = vmul.f32 0.7978846, %v412_v55 }
 0x315   :  { %v411_v61 = vadd.f32 %v407_v57, %v383_v46  ;;  %v414_v62 = vmul.f32 0.7978846, %v410_v58 }
 0x316   :  { %v417_v63 = vmul.f32 0.7978846, %v413_v59  ;;  %694 = vtanh.f32 %v416_v60 }
 0x317   :  { %v415_v0 = vmul.f32 0.7978846, %v411_v61  ;;  %696 = vtanh.f32 %v414_v62 }
 0x318   :  { %698 = vtanh.f32 %v417_v63 }
 0x319   :  { %700 = vtanh.f32 %v415_v0 }
 0x320   :  { %v695_v1 = vpop.eup %694 }
 0x321   :  { %v697_v3 = vpop.eup %696  ;;  %v424_v5 = vadd.f32 1.0, %v695_v1 }
 0x322   :  { %v699_v6 = vpop.eup %698  ;;  %v422_v8 = vadd.f32 1.0, %v697_v3 }
 0x323   :  { %v701_v9 = vpop.eup %700  ;;  %v425_v12 = vadd.f32 1.0, %v699_v6  ;;  %v428_v13 = vmul.f32 %v424_v5, %v396_v4 }
 0x324   :  { %v423_v16 = vadd.f32 1.0, %v701_v9  ;;  %v426_v17 = vmul.f32 %v422_v8, %v394_v7 }
 0x325   :  { %v429_v19 = vmul.f32 %v425_v12, %v397_v11  ;;  %v432_v20 = vmul.f32 %v428_v13, %v316_v10 }
 0x326   :  { %v427_v22 = vmul.f32 %v423_v16, %v395_v15  ;;  %v430_v23 = vmul.f32 %v426_v17, %v308_v14 }
 0x327   :  { %v433_v24 = vmul.f32 %v429_v19, %v319_v18 }
 0x328   :  { %v431_v25 = vmul.f32 %v427_v22, %v311_v21 }
 0x329   :  { %v435_v26 = vpack.c.bf16 %v433_v24, %v432_v20 }
 0x32a   :  { %v434_v27 = vpack.c.bf16 %v431_v25, %v430_v23 }
 0x32c   :  { %666 = vmatprep.mubr.bf16.mxu1 %v434_v27 }
 0x32d   :  { %667 = vmatmul.mubr.bf16.vlgmr.msra.gmra.mrb[0].mxu1 %v435_v26 }
 0x400   :  { %v668_v29 = vpop.f32.mrb[0].mxu1 }
 0x401   :  { %v555_v30 = vadd.f32 %v668_v29, %v438_v28  ;;  %v538_v32 = vpop.f32.mrb[1].mxu1 }
 0x402   :  { %v553_v33 = vadd.f32 %v538_v32, %v436_v31  ;;  %v669_v37 = vpop.f32.mrb[2].mxu1 }
 0x403   :  { %559 = vst.msk [vmem:[#allocation2 + $0x10] sm:$0xff] %vm83_vm0, %v555_v30  ;;  %v556_v34 = vadd.f32 %v669_v37, %v439_v36  ;;  %v541_v38 = vpop.f32.mrb[3].mxu1 }
 0x404   :  { %557 = vst.msk [vmem:[#allocation2] sm:$0xff] %vm83_vm0, %v553_v33  ;;  %v554_v39 = vadd.f32 %v541_v38, %v437_v35 }
 0x405   :  { %560 = vst.msk [vmem:[#allocation2 + $0x18] sm:$0xff] %vm83_vm0, %v556_v34 }
 0x406   :  { %558 = vst.msk [vmem:[#allocation2 + $0x8] sm:$0xff] %vm83_vm0, %v554_v39 }
 0x40a   :  { %v566_v40 = vld [vmem:[#allocation2 + $0x10] sm:$0xff] }
 0x40b   :  { %570 = vst.msk [vmem:[%s897_s12 + $0x10] sm:$0xff] %vm83_vm0, %v566_v40  ;;  %v564_v41 = vld [vmem:[#allocation2] sm:$0xff] }
 0x40c   :  { %568 = vst.msk [vmem:[%s897_s12] sm:$0xff] %vm83_vm0, %v564_v41  ;;  %v567_v42 = vld [vmem:[#allocation2 + $0x18] sm:$0xff] }
 0x40d   :  { %571 = vst.msk [vmem:[%s897_s12 + $0x18] sm:$0xff] %vm83_vm0, %v567_v42  ;;  %v565_v43 = vld [vmem:[#allocation2 + $0x8] sm:$0xff] }
 0x40e   :  { %569 = vst.msk [vmem:[%s897_s12 + $0x8] sm:$0xff] %vm83_vm0, %v565_v43 }

// kernel: _basic_transformer_block.10
= control target key start
LH: loop header
LB: loop body
LE: loop exit
PB: predicated region body
PF: predicated region fallthrough
CT: control target
= control target key end

     0   :  { %s1446_s12 = smov 0   ;;  %s1448_s13 = smov 0   ;;  %s1681_s0 = inlined_call_operand.vmem [shape: bf16[32,32], index: 0, kind: input, shape index: {}]   ;;  %s1682_s1 = inlined_call_operand.vmem [shape: bf16[16,32], index: 1, kind: input, shape index: {}]   ;;  %s1683_s2 = inlined_call_operand.vmem [shape: bf16[16,32], index: 2, kind: input, shape index: {}]   ;;  %s1684_s3 = inlined_call_operand.vmem [shape: bf16[32,32], index: 3, kind: output, shape index: {}]  }
   0x1   :  { %s1450_s14 = smov 0  }
   0x2 LB: > { %s32_s15 = sadd.s32 1, %s1411_s13  ;;  %p1207_p0 = scmp.ge.s32.totalorder %s1415_s14, 1  ;;  %s1415_s14 = sphi %s1450_s14, %s13_s14   ;;  %s1411_s13 = sphi %s1448_s13, %s1686_s13   ;;  %s1407_s12 = sphi %s1446_s12, %s1685_s12  }
   0x3   : > { %p34_p1 = scmp.ge.s32.totalorder %s32_s15, 2  ;;  %p189_p2 = scmp.lt.s32.totalorder %s1415_s14, 3 }
   0x5   : > { %s1688_s15 = smov (%p34_p1, %s32_s15), 0  ;;  %p190_p3 = pnand %p1207_p0, %p189_p2 }
   0x6   : > { %p234_p4 = scmp.lt.s32.totalorder (!%p190_p3), %s1407_s12, 1  ;;  %s1208_s16 = sshll.u32 (!%p190_p3), %s1407_s12, 1  ;;  %v1417_v0 = vmov (!%p190_p3), 0.0   ;;  %vm1418_vm0 = vmmov (!%p190_p3), 0   ;;  %vm286_vm1 = vcmask (!%p190_p3), 64512   ;;  %v1419_v4 = vmov (!%p190_p3), 0  }
   0x7   : > { %193 = sbr.rel (%p190_p3) target bundleno = 1581 (0x62d), region = 32  ;;  %1259 = vmatprep.subr.bf16.mxu0 (!%p190_p3), %v1417_v0  ;;  %1261 = vmatprep.mubr.msk.bf16.mxu0 (!%p190_p3), %vm1418_vm0, %v1417_v0  ;;  %p227_p5 = scmp.lt.s32.totalorder (!%p190_p3), %s1208_s16, 3  ;;  %vm400_vm2 = vcmask (!%p190_p3), 1043456   ;;  %vm274_vm3 = vcmask (!%p190_p3), 261120   ;;  %vm630_vm4 = vcmask (!%p190_p3), 130112   ;;  %vm808_vm5 = vcmask (!%p190_p3), 195712  }
   0x8   : > { %1265 = vmatprep.subr.bf16.mxu1 (!%p190_p3), %v1417_v0  ;;  %1267 = vmatprep.mubr.msk.bf16.mxu1 (!%p190_p3), %vm1418_vm0, %v1417_v0  ;;  %s1420_s25 = smov (!%p190_p3), 120   ;;  %s1421_s29 = smov (!%p190_p3), 112   ;;  %275 = vst.msk [vmem:[#allocation4] sm:$0xff] (!%p190_p3), %vm274_vm3, %v1417_v0  ;;  %276 = vst.msk [vmem:[#allocation4 + $0x8] sm:$0xff] (!%p190_p3), %vm274_vm3, %v1417_v0  ;;  %vm986_vm6 = vcmask (!%p190_p3), 261312   ;;  %vm1018_vm7 = vcmask (!%p190_p3), 60416  }
   0x9   : > { %1340 = vset.pattern.permute.xlu1 (!%p190_p3), %v1419_v4  ;;  %1341 = vset.pattern.permute.xlu0 (!%p190_p3), %v1419_v4  ;;  %s1422_s30 = smov (!%p190_p3), 104   ;;  %s1423_s4 = smov (!%p190_p3), 8   ;;  %vm1047_vm8 = vcmask (!%p190_p3), 126016   ;;  %vm1076_vm9 = vcmask (!%p190_p3), 191616   ;;  %vm1105_vm10 = vcmask (!%p190_p3), 257216  }
   0xa   : > { %s1424_s5 = smov (!%p190_p3), 16   ;;  %s1425_s6 = smov (!%p190_p3), 24  }
   0xe   : > { %s1690_s12 = smov (!%p234_p4, %s1407_s12), 1  ;;  %s1692_s16 = smov (!%p227_p5, %s1208_s16), 3 }
   0xf   : > { %s1210_s17 = sshll.u32 %s1690_s12, 2  ;;  %s1209_s21 = sshll.u32 %s1692_s16, 2 }
  0x10   : > { %s237_s20 = scalar_lea.vmem %s1682_s1, %s1210_s17  ;;  %s230_s24 = scalar_lea.vmem %s1681_s0, %s1209_s21 }
  0x11   : > { %v279_v1 = vld [vmem:[%s237_s20] sm:$0xf]  ;;  %s243_s28 = scalar_lea.vmem %s1683_s2, %s1210_s17  ;;  %s1662_s9 = scalar_lea.vmem %s1684_s3, %s1209_s21 }
  0x12   : > { %v291_v2 = vsel %vm286_vm1, %v279_v1, 0  ;;  %v1343_v3 = vld [vmem:[%s230_s24] sm:$0xff]   ;;  %v1217_v11 = vcombine.low %v279_v1, %v279_v1 }
  0x13   : > { %1260 = vmatpush3.bf16.xpose.msra.mxu0 %v291_v2  ;;  %v1506_v14 = vld [vmem:[%s243_s28] sm:$0xf] }
  0x14   : > { %1277 = vmatprep.subr.bf16.mxu0 %v1417_v0  ;;  %v402_v15 = vsel %vm400_vm2, %v1506_v14, 0  ;;  %v1219_v57 = vcombine.low %v1506_v14, %v1506_v14 }
  0x15   : > { %1266 = vmatpush3.bf16.msra.mxu1 %v402_v15 }
  0x16   : > { %1271 = vmatprep.subr.bf16.mxu1 %v1417_v0 }
  0x1a   : > { %1262 = vmatmul.mubr.msk.bf16.vlgmr.msra.gmra.mrb[0].mxu0 %vm286_vm1, %v1343_v3 }
  0x1b   : > { %1279 = vmatprep.mubr.msk.bf16.mxu0 %vm1418_vm0, %v1417_v0 }
  0xed   : > { %v327_v5 = vpop.f32.mrb[0].mxu0 }
  0xee   : > { %v1263_v6 = vpop.f32.mrb[1].mxu0  ;;  %v336_v7 = vsel %vm286_vm1, %v327_v5, -inf }
  0xef   : > { %337 = vmax.xlane.f32.xlu0 %v336_v7  ;;  %v330_v8 = vpop.f32.mrb[2].mxu0 }
  0xf0   : > { %v1264_v9 = vpop.f32.mrb[3].mxu0  ;;  %v339_v10 = vsel %vm286_vm1, %v330_v8, -inf }
  0xf3   : > { %340 = vmax.xlane.f32.xlu0 %v339_v10 }
 0x109   : > { %454 = vrot.lane.b32.xlu0 %v1217_v11, %s1420_s25 }
 0x17c   : > { %v1494_v12 = vpop.xlane.xlu0 %337 }
 0x17d   : > { %352 = vperm.xlu1 %1340, %v1494_v12   ;;  %v344_v1 = vsub.f32 -inf, %v1494_v12 }
 0x17f   : > { %v346_v2 = vmul.f32 1.442695, %v344_v1 }
 0x180   : > { %v1497_v13 = vpop.xlane.xlu0 %340 }
 0x181   : > { %357 = vperm.xlu1 %1340, %v1497_v13   ;;  %v345_v7 = vsub.f32 -inf, %v1497_v13 }
 0x183   : > { %v348_v9 = vmul.f32 1.442695, %v345_v7 }
 0x184   : > { %v455_v22 = vpop.permute.xlu0 %454 }
 0x185   : > { %449 = vrot.lane.b32.xlu1 %v1343_v3, %s1420_s25  ;;  %v460_v26 = vsel %vm286_vm1, %v455_v22, 0 }
 0x189   : > { %635 = vrot.lane.b32.xlu1 %v1217_v11, %s1421_s29 }
 0x18d   : > { %633 = vrot.lane.b32.xlu1 %v1343_v3, %s1421_s29 }
 0x191   : > { %813 = vrot.lane.b32.xlu1 %v1217_v11, %s1422_s30 }
 0x195   : > { %811 = vrot.lane.b32.xlu1 %v1343_v3, %s1422_s30 }
 0x1fc   : > { %v353_v16 = vpop.permute.xlu1 %352 }
 0x1fd   : > { %v360_v17 = vsub.f32 %v327_v5, %v353_v16 }
 0x1ff   : > { %v362_v18 = vmul.f32 1.442695, %v360_v17 }
 0x200   : > { %v358_v19 = vpop.permute.xlu1 %357 }
 0x201   : > { %v361_v20 = vsub.f32 %v330_v8, %v358_v19  ;;  %1345 = vpow2.f32 %v362_v18 }
 0x203   : > { %v364_v21 = vmul.f32 1.442695, %v361_v20 }
 0x204   : > { %v450_v23 = vpop.permute.xlu1 %449 }
 0x205   : > { %1347 = vpow2.f32 %v364_v21 }
 0x206   : > { %1349 = vpow2.f32 %v346_v2 }
 0x208   : > { %v636_v28 = vpop.permute.xlu1 %635 }
 0x209   : > { %v641_v30 = vsel %vm286_vm1, %v636_v28, 0 }
 0x20b   : > { %v1515_v24 = vpop.eup %1345 }
 0x20c   : > { %v634_v29 = vpop.permute.xlu1 %633  ;;  %v370_v8 = vsel %vm286_vm1, %v1515_v24, 0.0 }
 0x20f   : > { %v1517_v25 = vpop.eup %1347 }
 0x210   : > { %v396_v27 = vpack.c.bf16 %v1517_v25, %v1515_v24  ;;  %v814_v31 = vpop.permute.xlu1 %813  ;;  %v373_v63 = vsel %vm286_vm1, %v1517_v25, 0.0  ;;  %v1586_v5 = vpop.eup %1349 }
 0x211   : > { %v819_v32 = vsel %vm286_vm1, %v814_v31, 0 }
 0x212   : > { %1268 = vmatmul.mubr.msk.bf16.vlgmr.msra.gmra.mrb[0].mxu1 %vm286_vm1, %v396_v27 }
 0x213   : > { %1272 = vmatpush3.bf16.xpose.msra.mxu1 %v460_v26  ;;  %1273 = vmatprep.mubr.msk.bf16.mxu1 %vm1418_vm0, %v1417_v0 }
 0x214   : > { %1283 = vmatprep.subr.bf16.mxu1 %v1417_v0  ;;  %v812_v33 = vpop.permute.xlu1 %811 }
 0x21a   : > { %1274 = vmatmul.mubr.msk.bf16.vlgmr.msra.gmra.mrb[4].mxu1 %vm286_vm1, %v450_v23 }
 0x21b   : > { %1284 = vmatpush3.bf16.xpose.msra.mxu1 %v641_v30  ;;  %1285 = vmatprep.mubr.msk.bf16.mxu1 %vm1418_vm0, %v1417_v0 }
 0x21c   : > { %1295 = vmatprep.subr.bf16.mxu1 %v1417_v0 }
 0x222   : > { %1286 = vmatmul.mubr.msk.bf16.vlgmr.msra.gmra.mrb[8].mxu1 %vm286_vm1, %v634_v29 }
 0x223   : > { %1296 = vmatpush3.bf16.xpose.msra.mxu1 %v819_v32  ;;  %1297 = vmatprep.mubr.msk.bf16.mxu1 %vm1418_vm0, %v1417_v0 }
 0x22a   : > { %1298 = vmatmul.mubr.msk.bf16.vlgmr.msra.gmra.mrb[12].mxu1 %vm286_vm1, %v812_v33 }
 0x2e5   : > { %v1536_v34 = vpop.f32.mrb[0].mxu1 }
 0x2e6   : > { %v1269_v35 = vpop.f32.mrb[1].mxu1 }
 0x2e7   : > { %v1538_v36 = vpop.f32.mrb[2].mxu1 }
 0x2e8   : > { %v1270_v37 = vpop.f32.mrb[3].mxu1 }
 0x2ed   : > { %v1540_v38 = vpop.f32.mrb[4].mxu1 }
 0x2ee   : > { %v1275_v39 = vpop.f32.mrb[5].mxu1  ;;  %v506_v40 = vsel %vm286_vm1, %v1540_v38, -inf }
 0x2ef   : > { %507 = vmax.xlane.f32.xlu1 %v506_v40  ;;  %v1544_v41 = vpop.f32.mrb[6].mxu1 }
 0x2f0   : > { %v1276_v42 = vpop.f32.mrb[7].mxu1  ;;  %v509_v43 = vsel %vm286_vm1, %v1544_v41, -inf }
 0x2f1   : > { %510 = vmax.xlane.f32.xlu0 %v509_v43 }
 0x2f5   : > { %v1548_v44 = vpop.f32.mrb[8].mxu1 }
 0x2f6   : > { %v1287_v45 = vpop.f32.mrb[9].mxu1  ;;  %v687_v46 = vsel %vm286_vm1, %v1548_v44, -inf }
 0x2f7   : > { %688 = vmax.xlane.f32.xlu0 %v687_v46  ;;  %v1552_v47 = vpop.f32.mrb[10].mxu1 }
 0x2f8   : > { %v1288_v48 = vpop.f32.mrb[11].mxu1  ;;  %v690_v49 = vsel %vm286_vm1, %v1552_v47, -inf }
 0x2f9   : > { %691 = vmax.xlane.f32.xlu1 %v690_v49 }
 0x2fd   : > { %v1556_v50 = vpop.f32.mrb[12].mxu1 }
 0x2fe   : > { %v865_v51 = vsel %vm286_vm1, %v1556_v50, -inf  ;;  %v1299_v52 = vpop.f32.mrb[13].mxu1 }
 0x2ff   : > { %866 = vmax.xlane.f32.xlu0 %v865_v51  ;;  %v1560_v53 = vpop.f32.mrb[14].mxu1 }
 0x300   : > { %v868_v54 = vsel %vm286_vm1, %v1560_v53, -inf  ;;  %v1300_v55 = vpop.f32.mrb[15].mxu1 }
 0x301   : > { %869 = vmax.xlane.f32.xlu1 %v868_v54  ;;  %v382_v54 = vld [vmem:[#allocation4] sm:$0xff] }
 0x37c   : > { %v508_v56 = vpop.xlane.xlu1 %507 }
 0x37d   : > { %522 = vperm.xlu0 %1341, %v508_v56   ;;  %v514_v3 = vsub.f32 -inf, %v508_v56 }
 0x37e   : > { %v511_v58 = vpop.xlane.xlu0 %510 }
 0x37f   : > { %527 = vperm.xlu1 %1340, %v511_v58   ;;  %v516_v4 = vmul.f32 1.442695, %v514_v3  ;;  %v515_v10 = vsub.f32 -inf, %v511_v58 }
 0x381   : > { %927 = vrot.lane.b32.xlu0 %v1219_v57, %s1422_s30  ;;  %1351 = vpow2.f32 %v516_v4  ;;  %v518_v11 = vmul.f32 1.442695, %v515_v10 }
 0x382   : > { %1353 = vpow2.f32 %v348_v9 }
 0x383   : > { %1355 = vpow2.f32 %v518_v11 }
 0x384   : > { %v1567_v59 = vpop.xlane.xlu0 %688 }
 0x385   : > { %703 = vperm.xlu1 %1340, %v1567_v59   ;;  %v695_v3 = vsub.f32 -inf, %v1567_v59 }
 0x386   : > { %v1570_v60 = vpop.xlane.xlu1 %691 }
 0x387   : > { %v697_v4 = vmul.f32 1.442695, %v695_v3  ;;  %v696_v7 = vsub.f32 -inf, %v1570_v60 }
 0x389   : > { %708 = vperm.xlu1 %1340, %v1570_v60   ;;  %v699_v11 = vmul.f32 1.442695, %v696_v7 }
 0x38b   : > { %v1589_v6 = vpop.eup %1351 }
 0x38c   : > { %v1574_v61 = vpop.xlane.xlu0 %866  ;;  %v1595_v12 = vpop.eup %1353 }
 0x38d   : > { %571 = vrot.lane.b32.xlu1 %v1219_v57, %s1420_s25  ;;  %v1598_v14 = vpop.eup %1355  ;;  %v369_v59 = vmul.f32 0.0, %v1595_v12 }
 0x38e   : > { %v1577_v62 = vpop.xlane.xlu1 %869 }
 0x38f   : > { %v874_v9 = vsub.f32 -inf, %v1577_v62 }
 0x391   : > { %881 = vperm.xlu1 %1340, %v1574_v61  }
 0x395   : > { %886 = vperm.xlu1 %1340, %v1577_v62  }
 0x399   : > { %749 = vrot.lane.b32.xlu1 %v1219_v57, %s1421_s29 }
 0x3a0   : > { %374 = vadd.xlane.f32.xlu0 %v373_v63 }
 0x3b6   : > { %386 = vperm.xlu0 %1341, %v1586_v5  }
 0x3ba   : > { %557 = vperm.xlu0 %1341, %v1589_v6  }
 0x3bd   : > { %371 = vadd.xlane.f32.xlu1 %v370_v8 }
 0x3ce   : > { %391 = vperm.xlu1 %1340, %v1595_v12  }
 0x3d2   : > { %562 = vperm.xlu1 %1340, %v1598_v14  }
 0x3fc   : > { %v523_v15 = vpop.permute.xlu0 %522 }
 0x3fd   : > { %v530_v13 = vsub.f32 %v1540_v38, %v523_v15 }
 0x3fe   : > { %v528_v16 = vpop.permute.xlu1 %527 }
 0x3ff   : > { %v532_v17 = vmul.f32 1.442695, %v530_v13  ;;  %v531_v18 = vsub.f32 %v1544_v41, %v528_v16 }
 0x401   : > { %1357 = vpow2.f32 %v532_v17  ;;  %v534_v19 = vmul.f32 1.442695, %v531_v18 }
 0x403   : > { %1359 = vpow2.f32 %v534_v19 }
 0x404   : > { %v704_v20 = vpop.permute.xlu1 %703 }
 0x405   : > { %v711_v21 = vsub.f32 %v1548_v44, %v704_v20 }
 0x407   : > { %v713_v22 = vmul.f32 1.442695, %v711_v21  ;;  %v540_v21 = vmul.f32 0.0, %v1598_v14 }
 0x408   : > { %v709_v23 = vpop.permute.xlu1 %708 }
 0x409   : > { %1361 = vpow2.f32 %v713_v22  ;;  %v712_v24 = vsub.f32 %v1552_v47, %v709_v23  ;;  %v928_v47 = vpop.permute.xlu0 %927 }
 0x40a   : > { %v933_v49 = vsel %vm400_vm2, %v928_v47, 0 }
 0x40b   : > { %v1358_v25 = vpop.eup %1357  ;;  %v715_v26 = vmul.f32 1.442695, %v712_v24 }
 0x40c   : > { %v572_v27 = vpop.permute.xlu1 %571  ;;  %v541_v28 = vsel %vm286_vm1, %v1358_v25, 0.0 }
 0x40d   : > { %v1360_v29 = vpop.eup %1359  ;;  %1363 = vpow2.f32 %v715_v26  ;;  %v577_v30 = vsel %vm400_vm2, %v572_v27, 0  ;;  %542 = vadd.xlane.f32.xlu1 %v541_v28 }
 0x40e   : > { %1278 = vmatpush3.bf16.msra.mxu0 %v577_v30  ;;  %v544_v31 = vsel %vm286_vm1, %v1360_v29, 0.0  ;;  %v567_v32 = vpack.c.bf16 %v1360_v29, %v1358_v25 }
 0x40f   : > { %545 = vadd.xlane.f32.xlu0 %v544_v31  ;;  %1289 = vmatprep.subr.bf16.mxu0 %v1417_v0 }
 0x410   : > { %v882_v33 = vpop.permute.xlu1 %881 }
 0x411   : > { %v889_v35 = vsub.f32 %v1556_v50, %v882_v33  ;;  %1280 = vmatmul.mubr.msk.bf16.vlgmr.msra.gmra.mrb[4].mxu0 %vm286_vm1, %v567_v32 }
 0x412   : > { %1291 = vmatprep.mubr.msk.bf16.mxu0 %vm1418_vm0, %v1417_v0 }
 0x413   : > { %v1362_v37 = vpop.eup %1361  ;;  %v891_v38 = vmul.f32 1.442695, %v889_v35 }
 0x414   : > { %v887_v39 = vpop.permute.xlu1 %886  ;;  %v722_v40 = vsel %vm286_vm1, %v1362_v37, 0.0 }
 0x415   : > { %v890_v41 = vsub.f32 %v1560_v53, %v887_v39  ;;  %723 = vadd.xlane.f32.xlu1 %v722_v40  ;;  %1365 = vpow2.f32 %v891_v38  ;;  %v368_v39 = vmul.f32 0.0, %v1586_v5 }
 0x417   : > { %v1364_v42 = vpop.eup %1363  ;;  %v893_v43 = vmul.f32 1.442695, %v890_v41 }
 0x418   : > { %v750_v44 = vpop.permute.xlu1 %749  ;;  %v725_v45 = vsel %vm286_vm1, %v1364_v42, 0.0  ;;  %v748_v46 = vpack.c.bf16 %v1364_v42, %v1362_v37  ;;  %v873_v37 = vsub.f32 -inf, %v1574_v61 }
 0x419   : > { %1367 = vpow2.f32 %v893_v43  ;;  %v755_v48 = vsel %vm400_vm2, %v750_v44, 0  ;;  %726 = vadd.xlane.f32.xlu0 %v725_v45  ;;  %v539_v43 = vmul.f32 0.0, %v1589_v6 }
 0x41a   : > { %1290 = vmatpush3.bf16.msra.mxu0 %v755_v48  ;;  %1369 = vpow2.f32 %v697_v4  ;;  %v875_v38 = vmul.f32 1.442695, %v873_v37 }
 0x41b   : > { %1301 = vmatprep.subr.bf16.mxu0 %v1417_v0  ;;  %1371 = vpow2.f32 %v699_v11 }
 0x41d   : > { %1292 = vmatmul.mubr.msk.bf16.vlgmr.msra.gmra.mrb[8].mxu0 %vm286_vm1, %v748_v46 }
 0x41e   : > { %1302 = vmatpush3.bf16.msra.mxu0 %v933_v49  ;;  %1303 = vmatprep.mubr.msk.bf16.mxu0 %vm1418_vm0, %v1417_v0  ;;  %v383_v0 = vld [vmem:[#allocation4 + $0x8] sm:$0xff] }
 0x41f   : > { %v1622_v50 = vpop.eup %1365 }
 0x420   : > { %v900_v33 = vsel %vm286_vm1, %v1622_v50, 0.0 }
 0x423   : > { %v1624_v51 = vpop.eup %1367 }
 0x424   : > { %v926_v52 = vpack.c.bf16 %v1624_v51, %v1622_v50  ;;  %v1370_v13 = vpop.eup %1369  ;;  %v903_v35 = vsel %vm286_vm1, %v1624_v51, 0.0 }
 0x425   : > { %v1372_v22 = vpop.eup %1371  ;;  %v720_v47 = vmul.f32 0.0, %v1370_v13 }
 0x426   : > { %1304 = vmatmul.mubr.msk.bf16.vlgmr.msra.gmra.mrb[12].mxu0 %vm286_vm1, %v926_v52  ;;  %v721_v12 = vmul.f32 0.0, %v1372_v22 }
 0x42d   : > { %v375_v53 = vpop.xlane.xlu0 %374 }
 0x42e   : > { %v377_v16 = vadd.f32 %v375_v53, %v369_v59 }
 0x435   : > { %v387_v55 = vpop.permute.xlu0 %386 }
 0x436   : > { %v394_v56 = vmul.f32 %v387_v55, %v382_v54 }
 0x438   : > { %v445_v57 = vadd.f32 %v1536_v34, %v394_v56 }
 0x439   : > { %v1639_v17 = vpop.permute.xlu0 %557 }
 0x43a   : > { %447 = vst.msk [vmem:[#allocation4] sm:$0xff] %vm286_vm1, %v445_v57 }
 0x441   : > { %v553_v50 = vld [vmem:[#allocation4] sm:$0xff] }
 0x442   : > { %v565_v6 = vmul.f32 %v1639_v17, %v553_v50 }
 0x44a   : > { %v1631_v58 = vpop.xlane.xlu1 %371 }
 0x44b   : > { %v376_v40 = vadd.f32 %v1631_v58, %v368_v39 }
 0x44e   : > { %v392_v63 = vpop.permute.xlu1 %391 }
 0x44f   : > { %v395_v1 = vmul.f32 %v392_v63, %v383_v0 }
 0x451   : > { %v446_v2 = vadd.f32 %v1538_v36, %v395_v1  ;;  %v877_v36 = vmul.f32 1.442695, %v874_v9 }
 0x452   : > { %v563_v41 = vpop.permute.xlu1 %562 }
 0x453   : > { %448 = vst.msk [vmem:[#allocation4 + $0x8] sm:$0xff] %vm286_vm1, %v446_v2  ;;  %1373 = vpow2.f32 %v877_v36 }
 0x454   : > { %1375 = vrcp.f32 %v377_v16 }
 0x45a   : > { %v554_v51 = vld [vmem:[#allocation4 + $0x8] sm:$0xff] }
 0x45b   : > { %v566_v53 = vmul.f32 %v563_v41, %v554_v51 }
 0x45d   : > { %v1642_v25 = vpop.eup %1373 }
 0x45e   : > { %v1376_v30 = vpop.eup %1375  ;;  %v899_v7 = vmul.f32 0.0, %v1642_v25 }
 0x49a   : > { %v543_v42 = vpop.xlane.xlu1 %542 }
 0x49b   : > { %v547_v44 = vadd.f32 %v543_v42, %v539_v43 }
 0x49c   : > { %v546_v19 = vpop.xlane.xlu0 %545 }
 0x49d   : > { %v548_v23 = vadd.f32 %v546_v19, %v540_v21 }
 0x49f   : > { %1377 = vrcp.f32 %v548_v23 }
 0x4a2   : > { %v724_v45 = vpop.xlane.xlu1 %723 }
 0x4a3   : > { %v728_v48 = vadd.f32 %v724_v45, %v720_v47 }
 0x4a6   : > { %v727_v24 = vpop.xlane.xlu0 %726 }
 0x4a7   : > { %v729_v27 = vadd.f32 %v727_v24, %v721_v12 }
 0x4a9   : > { %1379 = vrcp.f32 %v729_v27  ;;  %v1378_v14 = vpop.eup %1377 }
 0x4aa   : > { %1381 = vpow2.f32 %v875_v38 }
 0x4ab   : > { %1383 = vrcp.f32 %v376_v40 }
 0x4ac   : > { %1385 = vrcp.f32 %v547_v44 }
 0x4ad   : > { %1387 = vrcp.f32 %v728_v48 }
 0x4b3   : > { %v1380_v32 = vpop.eup %1379 }
 0x4b4   : > { %v1382_v46 = vpop.eup %1381 }
 0x4b5   : > { %v1384_v61 = vpop.eup %1383  ;;  %v898_v2 = vmul.f32 0.0, %v1382_v46 }
 0x4b6   : > { %v1386_v5 = vpop.eup %1385 }
 0x4b7   : > { %v1388_v49 = vpop.eup %1387 }
 0x4e4   : > { %v613_v8 = vpop.f32.mrb[4].mxu0 }
 0x4e5   : > { %622 = vrot.lane.b32.xlu1 %v613_v8, %s1423_s4  ;;  %v1281_v34 = vpop.f32.mrb[5].mxu0 }
 0x4e6   : > { %v616_v10 = vpop.f32.mrb[6].mxu0 }
 0x4e7   : > { %624 = vrot.lane.b32.xlu0 %v616_v10, %s1423_s4  ;;  %v1282_v15 = vpop.f32.mrb[7].mxu0 }
 0x4eb   : > { %738 = vperm.xlu0 %1341, %v1370_v13  }
 0x4f0   : > { %v791_v60 = vpop.f32.mrb[8].mxu0 }
 0x4f1   : > { %800 = vrot.lane.b32.xlu0 %v791_v60, %s1424_s5  ;;  %v1293_v18 = vpop.f32.mrb[9].mxu0 }
 0x4f2   : > { %v794_v62 = vpop.f32.mrb[10].mxu0 }
 0x4f3   : > { %v1294_v20 = vpop.f32.mrb[11].mxu0 }
 0x4f5   : > { %802 = vrot.lane.b32.xlu0 %v794_v62, %s1424_s5 }
 0x4f9   : > { %921 = vperm.xlu0 %1341, %v1642_v25   ;;  %v969_v26 = vpop.f32.mrb[12].mxu0 }
 0x4fa   : > { %v1305_v28 = vpop.f32.mrb[13].mxu0 }
 0x4fb   : > { %v972_v29 = vpop.f32.mrb[14].mxu0 }
 0x4fc   : > { %v1306_v31 = vpop.f32.mrb[15].mxu0 }
 0x4fd   : > { %1005 = vperm.xlu0 %1341, %v1376_v30  }
 0x501   : > { %980 = vrot.lane.b32.xlu0 %v972_v29, %s1425_s6 }
 0x505   : > { %1034 = vperm.xlu0 %1341, %v1378_v14  }
 0x509   : > { %901 = vadd.xlane.f32.xlu1 %v900_v33  ;;  %1063 = vperm.xlu0 %1341, %v1380_v32  }
 0x50d   : > { %904 = vadd.xlane.f32.xlu1 %v903_v35 }
 0x51e   : > { %743 = vperm.xlu1 %1340, %v1372_v22  }
 0x522   : > { %916 = vperm.xlu1 %1340, %v1382_v46  }
 0x526   : > { %1000 = vperm.xlu1 %1340, %v1384_v61  }
 0x52a   : > { %978 = vrot.lane.b32.xlu1 %v969_v26, %s1425_s6 }
 0x52e   : > { %1029 = vperm.xlu1 %1340, %v1386_v5  }
 0x532   : > { %1058 = vperm.xlu1 %1340, %v1388_v49  }
 0x557   : > { %v623_v52 = vpop.permute.xlu1 %622 }
 0x558   : > { %v628_v54 = vadd.f32 %v623_v52, %v565_v6 }
 0x559   : > { %v625_v55 = vpop.permute.xlu0 %624 }
 0x55a   : > { %631 = vst.msk [vmem:[#allocation4] sm:$0xff] %vm630_vm4, %v628_v54  ;;  %v629_v56 = vadd.f32 %v625_v55, %v566_v53 }
 0x55c   : > { %632 = vst.msk [vmem:[#allocation4 + $0x8] sm:$0xff] %vm630_vm4, %v629_v56 }
 0x561   : > { %v734_v58 = vld [vmem:[#allocation4] sm:$0xff] }
 0x563   : > { %v735_v11 = vld [vmem:[#allocation4 + $0x8] sm:$0xff] }
 0x56a   : > { %v739_v57 = vpop.permute.xlu0 %738 }
 0x56b   : > { %v746_v0 = vmul.f32 %v739_v57, %v734_v58 }
 0x56e   : > { %v801_v63 = vpop.permute.xlu0 %800 }
 0x56f   : > { %v806_v1 = vadd.f32 %v801_v63, %v746_v0 }
 0x571   : > { %809 = vst.msk [vmem:[#allocation4] sm:$0xff] %vm808_vm5, %v806_v1 }
 0x572   : > { %v803_v9 = vpop.permute.xlu0 %802 }
 0x578   : > { %v922_v13 = vpop.permute.xlu0 %921  ;;  %v912_v62 = vld [vmem:[#allocation4] sm:$0xff] }
 0x57c   : > { %v1006_v17 = vpop.permute.xlu0 %1005 }
 0x580   : > { %v981_v24 = vpop.permute.xlu0 %980 }
 0x584   : > { %v1035_v26 = vpop.permute.xlu0 %1034 }
 0x588   : > { %v1064_v35 = vpop.permute.xlu0 %1063 }
 0x596   : > { %v902_v3 = vpop.xlane.xlu1 %901 }
 0x597   : > { %v906_v4 = vadd.f32 %v902_v3, %v898_v2 }
 0x599   : > { %1389 = vrcp.f32 %v906_v4 }
 0x59a   : > { %v905_v8 = vpop.xlane.xlu1 %904 }
 0x59b   : > { %v907_v34 = vadd.f32 %v905_v8, %v899_v7 }
 0x59d   : > { %1391 = vrcp.f32 %v907_v34 }
 0x59e   : > { %v744_v10 = vpop.permute.xlu1 %743 }
 0x59f   : > { %v747_v15 = vmul.f32 %v744_v10, %v735_v11 }
 0x5a1   : > { %v807_v36 = vadd.f32 %v803_v9, %v747_v15 }
 0x5a2   : > { %v917_v59 = vpop.permute.xlu1 %916 }
 0x5a3   : > { %v1390_v16 = vpop.eup %1389  ;;  %810 = vst.msk [vmem:[#allocation4 + $0x8] sm:$0xff] %vm808_vm5, %v807_v36  ;;  %v924_v19 = vmul.f32 %v917_v59, %v912_v62 }
 0x5a4   : > { %1087 = vperm.xlu1 %1340, %v1390_v16  }
 0x5a6   : > { %v1001_v60 = vpop.permute.xlu1 %1000 }
 0x5a7   : > { %v1392_v18 = vpop.eup %1391 }
 0x5a8   : > { %1092 = vperm.xlu0 %1341, %v1392_v18  }
 0x5aa   : > { %v913_v20 = vld [vmem:[#allocation4 + $0x8] sm:$0xff]  ;;  %v979_v21 = vpop.permute.xlu1 %978 }
 0x5ab   : > { %v925_v22 = vmul.f32 %v922_v13, %v913_v20  ;;  %v984_v23 = vadd.f32 %v979_v21, %v924_v19 }
 0x5ad   : > { %v985_v25 = vadd.f32 %v981_v24, %v925_v22  ;;  %987 = vst.msk [vmem:[#allocation4] sm:$0xff] %vm986_vm6, %v984_v23 }
 0x5ae   : > { %v1030_v12 = vpop.permute.xlu1 %1029 }
 0x5af   : > { %988 = vst.msk [vmem:[#allocation4 + $0x8] sm:$0xff] %vm986_vm6, %v985_v25 }
 0x5b2   : > { %v1059_v32 = vpop.permute.xlu1 %1058 }
 0x5b4   : > { %v996_v27 = vld [vmem:[#allocation4] sm:$0xff] }
 0x5b5   : > { %v1008_v28 = vmul.f32 %v1001_v60, %v996_v27  ;;  %v1037_v30 = vmul.f32 %v1030_v12, %v996_v27  ;;  %v1066_v37 = vmul.f32 %v1059_v32, %v996_v27 }
 0x5b6   : > { %v997_v29 = vld [vmem:[#allocation4 + $0x8] sm:$0xff] }
 0x5b7   : > { %v1235_v31 = vpack.c.bf16 %v1008_v28, %v1008_v28  ;;  %v1009_v14 = vmul.f32 %v1006_v17, %v997_v29  ;;  %v1038_v33 = vmul.f32 %v1035_v26, %v997_v29  ;;  %v1067_v39 = vmul.f32 %v1064_v35, %v997_v29 }
 0x5b8   : > { %v1237_v40 = vpack.c.bf16 %v1037_v30, %v1037_v30  ;;  %v1239_v42 = vpack.c.bf16 %v1066_v37, %v1066_v37 }
 0x5b9   : > { %1019 = vst.msk [vmem:[%s1662_s9] sm:$0xf] %vm1018_vm7, %v1235_v31  ;;  %v1236_v38 = vpack.c.bf16 %v1009_v14, %v1009_v14  ;;  %v1238_v41 = vpack.c.bf16 %v1038_v33, %v1038_v33  ;;  %v1240_v43 = vpack.c.bf16 %v1067_v39, %v1067_v39 }
 0x5ba   : > { %1048 = vst.msk [vmem:[%s1662_s9] sm:$0xf] %vm1047_vm8, %v1237_v40 }
 0x5bb   : > { %1020 = vst.msk [vmem:[%s1662_s9 + $0x4] sm:$0xf] %vm1018_vm7, %v1236_v38 }
 0x5bc   : > { %1049 = vst.msk [vmem:[%s1662_s9 + $0x4] sm:$0xf] %vm1047_vm8, %v1238_v41 }
 0x5bd   : > { %1077 = vst.msk [vmem:[%s1662_s9] sm:$0xf] %vm1076_vm9, %v1239_v42  ;;  %1078 = vst.msk [vmem:[%s1662_s9 + $0x4] sm:$0xf] %vm1076_vm9, %v1240_v43 }
 0x623   : > { %v1088_v44 = vpop.permute.xlu1 %1087 }
 0x624   : > { %v1095_v45 = vmul.f32 %v1088_v44, %v996_v27 }
 0x626   : > { %v1241_v46 = vpack.c.bf16 %v1095_v45, %v1095_v45 }
 0x627   : > { %v1093_v47 = vpop.permute.xlu0 %1092 }
 0x628   : > { %1106 = vst.msk [vmem:[%s1662_s9] sm:$0xf] %vm1105_vm10, %v1241_v46  ;;  %v1096_v48 = vmul.f32 %v1093_v47, %v997_v29 }
 0x62a   : > { %v1242_v61 = vpack.c.bf16 %v1096_v48, %v1096_v48 }
 0x62c   : > { %1107 = vst.msk [vmem:[%s1662_s9 + $0x4] sm:$0xf] %vm1105_vm10, %v1242_v61 }
 0x62d PF: > { %s13_s14 = sadd.s32 1, %s1415_s14   ;;  %s1685_s12 = smov %s1411_s13 }
 0x62e   : > { %p10_p6 = scmp.ge.s32.totalorder %s13_s14, 4   ;;  %s1686_s13 = smov %s1688_s15 }
 0x630   :  { %12 = sbr.rel (!%p10_p6) target bundleno = 2 (0x2), region = 82 }

</bundles_post_ra>
